<compile_context>
chip_gen: v7x
topology: tpu7x:2x2x1
jax: 0.10.0
libtpu: 0.0.40
codegen_flags: <defaults>
</compile_context>

<pallas_src>
import functools

import jax
import jax.numpy as jnp
from jax.experimental import pallas as pl
from jax.experimental.pallas import tpu as pltpu


def _round_up(x, m):
    return pl.cdiv(x, m) * m


@functools.lru_cache(maxsize=1)
def _tile_caps():
    """(tm_cap, tn_cap, tk_cap) per TPU generation."""
    try:
        kind = jax.devices()[0].device_kind.lower()
    except Exception:  # pragma: no cover
        kind = ""
    if "v5 lite" in kind or "v5e" in kind or "v5litepod" in kind:
        # v5e MXU is 4x128x128 with a single vector-store slot: keep 128-wide
        # output tiles, amortize with a deeper K tile.
        return 128, 128, 512
    # v6e / v7x: 2x256x256 MXU.  Per-call VMEM stays ~1-2 MiB, well inside the
    # 64 MiB physical VMEM on v7x.
    return 256, 256, 256


# ----------------------------------------------------------------------------
# Tiled MXU matmul (bf16 inputs, f32 accumulate, optional fused tanh epilogue)
# ----------------------------------------------------------------------------
def _matmul_kernel(a_ref, b_ref, o_ref, acc_ref, *, activation):
    @pl.when(pl.program_id(2) == 0)
    def _():
        acc_ref[...] = jnp.zeros_like(acc_ref)

    acc_ref[...] += jnp.dot(a_ref[...], b_ref[...],
                            preferred_element_type=jnp.float32)

    @pl.when(pl.program_id(2) == pl.num_programs(2) - 1)
    def _():
        acc = acc_ref[...]
        if activation == "tanh":
            acc = jnp.tanh(acc)          # EUP slot; free under MXU/DMA
        o_ref[...] = acc.astype(o_ref.dtype)


def pallas_matmul(a, b, activation=None):
    """(M,K) @ (K,N) -> (M,N) f32.  Inputs are cast to bf16, accumulate in f32."""
    M, K = a.shape
    K2, N = b.shape
    assert K == K2
    tm_cap, tn_cap, tk_cap = _tile_caps()
    tm = min(tm_cap, _round_up(M, 128))
    tn = min(tn_cap, _round_up(N, 128))
    tk = min(tk_cap, _round_up(K, 128))
    Mp, Kp, Np = _round_up(M, tm), _round_up(K, tk), _round_up(N, tn)

    a = a.astype(jnp.bfloat16)
    b = b.astype(jnp.bfloat16)
    if (Mp, Kp) != (M, K):               # skip pad pass when already aligned
        a = jnp.pad(a, ((0, Mp - M), (0, Kp - K)))
    if (Kp, Np) != (K, N):
        b = jnp.pad(b, ((0, Kp - K), (0, Np - N)))

    kern = functools.partial(_matmul_kernel, activation=activation)
    out = pl.pallas_call(
        kern,
        out_shape=jax.ShapeDtypeStruct((Mp, Np), jnp.float32),
        grid_spec=pltpu.PrefetchScalarGridSpec(
            num_scalar_prefetch=0,
            grid=(Mp // tm, Np // tn, Kp // tk),
            in_specs=[
                pl.BlockSpec((tm, tk), lambda i, j, k: (i, k)),
                pl.BlockSpec((tk, tn), lambda i, j, k: (k, j)),
            ],
            out_specs=pl.BlockSpec((tm, tn), lambda i, j, k: (i, j)),
            scratch_shapes=[pltpu.VMEM((tm, tn), jnp.float32)],
        ),
        compiler_params=pltpu.CompilerParams(
            dimension_semantics=("parallel", "parallel", "arbitrary")),
    )(a, b)
    if (Mp, Np) != (M, N):
        out = out[:M, :N]
    return out


# ----------------------------------------------------------------------------
# BatchNorm2d (train mode) — two-pass tiled Pallas: stats reduction + apply.
# LeakyReLU(negative_slope=1.0) from the reference is the identity -> omitted.
# ----------------------------------------------------------------------------
def _bn_stats_kernel(x_ref, sum_ref, sq_ref):
    @pl.when(pl.program_id(0) == 0)
    def _():
        sum_ref[...] = jnp.zeros_like(sum_ref)
        sq_ref[...] = jnp.zeros_like(sq_ref)

    x = x_ref[...]
    sum_ref[...] += jnp.sum(x, axis=0, keepdims=True)
    sq_ref[...] += jnp.sum(x * x, axis=0, keepdims=True)


def _bn_apply_kernel(x_ref, scale_ref, shift_ref, o_ref):
    # BN affine transform; LeakyReLU(slope=1.0) == identity (not emitted).
    o_ref[...] = x_ref[...] * scale_ref[...] + shift_ref[...]


def batchnorm_lrelu(y_nhwc, gamma, beta, eps=1e-5):
    N, H, W, C = y_nhwc.shape
    M = N * H * W
    x = y_nhwc.reshape(M, C)

    tm = min(512, _round_up(M, 8))
    Mp = _round_up(M, tm)
    xp = jnp.pad(x, ((0, Mp - M), (0, 0))) if Mp != M else x  # zero rows: stats-safe

    sums, sqs = pl.pallas_call(
        _bn_stats_kernel,
        out_shape=[jax.ShapeDtypeStruct((1, C), jnp.float32),
                   jax.ShapeDtypeStruct((1, C), jnp.float32)],
        grid=(Mp // tm,),
        in_specs=[pl.BlockSpec((tm, C), lambda i: (i, 0))],
        out_specs=[pl.BlockSpec((1, C), lambda i: (0, 0)),
                   pl.BlockSpec((1, C), lambda i: (0, 0))],
        compiler_params=pltpu.CompilerParams(dimension_semantics=("arbitrary",)),
    )(xp)

    # Tiny (1, C) scalar glue in plain JAX (f32): mean / biased variance.
    mean = sums / M
    var = jnp.maximum(sqs / M - mean * mean, 0.0)
    inv = jax.lax.rsqrt(var + eps)
    scale = gamma * inv
    shift = beta - mean * scale

    out = pl.pallas_call(
        _bn_apply_kernel,
        out_shape=jax.ShapeDtypeStruct((Mp, C), jnp.float32),
        grid=(Mp // tm,),
        in_specs=[pl.BlockSpec((tm, C), lambda i: (i, 0)),
                  pl.BlockSpec((1, C), lambda i: (0, 0)),
                  pl.BlockSpec((1, C), lambda i: (0, 0))],
        out_specs=pl.BlockSpec((tm, C), lambda i: (i, 0)),
        compiler_params=pltpu.CompilerParams(dimension_semantics=("parallel",)),
    )(xp, scale, shift)
    if Mp != M:
        out = out[:M]
    return out.reshape(N, H, W, C)


# ----------------------------------------------------------------------------
# ConvTranspose2d (bias=False) variants
# ----------------------------------------------------------------------------
def conv_transpose_1x1_input(x, w):
    """ConvTranspose2d(stride=1, padding=0) on a 1x1 spatial input.

    out[n, oh, ow, co] = sum_ci x[n, ci] * w[ci, co, oh, ow]  -> single matmul.
    x: (N, 1, 1, Cin);  w: (Cin, Cout, K, K).  Returns (N, K, K, Cout) f32.
    """
    N, H, W, Cin = x.shape
    assert H == 1 and W == 1
    Cin2, Cout, K, K2 = w.shape
    assert Cin == Cin2 and K == K2
    wm = jnp.transpose(w, (0, 2, 3, 1)).reshape(Cin, K * K * Cout)
    y = pallas_matmul(x.reshape(N, Cin), wm)          # (N, K*K*Cout)
    return y.reshape(N, K, K, Cout)


def conv_transpose_stride2(x, w, padding, activation=None):
    """ConvTranspose2d(stride=2, bias=False) via 4-way sub-pixel decomposition.

    Each output parity (oh%2, ow%2) is a regular conv with K*K/4 taps, lowered
    to an im2col matmul — no zero-dilated input is ever materialized.
    x: (N, H, W, Cin);  w: (Cin, Cout, K, K).  Returns (N, Ho, Wo, Cout) f32.
    """
    N, H, W, Cin = x.shape
    Cin2, Cout, K, K2 = w.shape
    assert Cin == Cin2 and K == K2
    pad = K - 1 - padding
    assert pad >= 0
    Ho = (H - 1) * 2 - 2 * padding + K
    Wo = (W - 1) * 2 - 2 * padding + K
    assert Ho % 2 == 0 and Wo % 2 == 0
    Hh, Wh = Ho // 2, Wo // 2

    wf = w[:, :, ::-1, ::-1]                         # flipped kernel, taps (dh, dw)

    # Per-parity valid taps and corresponding input shifts.
    taps = {}
    all_shifts = []
    for par in range(2):
        ds = [d for d in range(K) if (par + d - pad) % 2 == 0]
        ss = [(par + d - pad) // 2 for d in ds]
        taps[par] = (ds, ss)
        all_shifts.extend(ss)
    smin, smax = min(all_shifts), max(all_shifts)
    p0 = max(0, -smin)
    p1h = max(0, (Hh - 1) + smax - (H - 1))
    p1w = max(0, (Wh - 1) + smax - (W - 1))
    if p0 or p1h or p1w:
        xp = jnp.pad(x, ((0, 0), (p0, p1h), (p0, p1w), (0, 0)))
    else:
        xp = x

    parts = []
    for po in range(2):
        dhs, shs = taps[po]
        for qo in range(2):
            dws, sws = taps[qo]
            cols, wts = [], []
            for dh, sh in zip(dhs, shs):
                for dw, sw in zip(dws, sws):
                    r0 = p0 + sh
                    c0 = p0 + sw
                    cols.append(xp[:, r0:r0 + Hh, c0:c0 + Wh, :])
                    wts.append(wf[:, :, dh, dw])          # (Cin, Cout)
            T = len(cols)
            patches = jnp.stack(cols, axis=3).reshape(N * Hh * Wh, T * Cin)
            wm = jnp.stack(wts, axis=0).reshape(T * Cin, Cout)
            y = pallas_matmul(patches, wm, activation=activation)
            parts.append(y.reshape(N, Hh, Wh, Cout))

    # Pixel-shuffle the 4 parity grids back into (N, Ho, Wo, Cout).
    stacked = jnp.stack(parts, axis=0).reshape(2, 2, N, Hh, Wh, Cout)
    out = jnp.transpose(stacked, (2, 3, 0, 4, 1, 5)).reshape(N, Ho, Wo, Cout)
    return out


# ----------------------------------------------------------------------------
# Generator forward
# ----------------------------------------------------------------------------
def generator_forward(x_nchw, params, dataset_name):
    x = jnp.transpose(x_nchw, (0, 2, 3, 1)).astype(jnp.float32)  # NCHW -> NHWC

    def hidden_s2(h, p, padding):
        h = conv_transpose_stride2(h, p["w"], padding)
        return batchnorm_lrelu(h, p["gamma"], p["beta"])

    # hidden0: ConvT(nz, ngf*8, 4, 1, 0) on 1x1 -> 4x4
    p0 = params["hidden0"]
    y = conv_transpose_1x1_input(x, p0["w"])
    y = batchnorm_lrelu(y, p0["gamma"], p0["beta"])

    y = hidden_s2(y, params["hidden1"], padding=1)    # -> 8x8,  ngf*4
    y = hidden_s2(y, params["hidden2"], padding=1)    # -> 16x16, ngf*2

    if dataset_name != "mnist":
        y = hidden_s2(y, params["hidden3"], padding=1)                        # -> 32x32, ngf
        y = conv_transpose_stride2(y, params["out_others"]["w"], padding=1,
                                   activation="tanh")                         # -> 64x64, nc
    else:
        y = conv_transpose_stride2(y, params["out_mnist"]["w"], padding=3,
                                   activation="tanh")                         # -> 28x28, nc

    return jnp.transpose(y, (0, 3, 1, 2))             # NHWC -> NCHW


def init_params(key, nz, ngf, nc):
    ks = jax.random.split(key, 6)

    def conv_w(k, cin, cout):
        # Pre-cast once to bf16: the MXU consumes bf16 operands (f32 accumulate).
        return (jax.random.normal(k, (cin, cout, 4, 4), jnp.float32) * 0.05
                ).astype(jnp.bfloat16)

    def bn(c):
        # PyTorch BatchNorm2d defaults: weight=1, bias=0 (kept in f32).
        return jnp.ones((1, c), jnp.float32), jnp.zeros((1, c), jnp.float32)

    params = {}
    g, b = bn(ngf * 8)
    params["hidden0"] = {"w": conv_w(ks[0], nz, ngf * 8), "gamma": g, "beta": b}
    g, b = bn(ngf * 4)
    params["hidden1"] = {"w": conv_w(ks[1], ngf * 8, ngf * 4), "gamma": g, "beta": b}
    g, b = bn(ngf * 2)
    params["hidden2"] = {"w": conv_w(ks[2], ngf * 4, ngf * 2), "gamma": g, "beta": b}
    g, b = bn(ngf)
    params["hidden3"] = {"w": conv_w(ks[3], ngf * 2, ngf), "gamma": g, "beta": b}
    params["out_mnist"] = {"w": conv_w(ks[4], ngf * 2, nc)}
    params["out_others"] = {"w": conv_w(ks[5], ngf, nc)}
    return params


if __name__ == "__main__":
    key = jax.random.PRNGKey(0)
    kx, kp = jax.random.split(key)

    N, nz, ngf = 2, 16, 8
    x = jax.random.normal(kx, (N, nz, 1, 1), jnp.float32)

    fwd = jax.jit(generator_forward, static_argnames=("dataset_name",))

    # mnist branch: hidden0-2 + out_mnist -> (N, 1, 28, 28)
    params_mnist = init_params(kp, nz, ngf, nc=1)
    out_mnist = jax.block_until_ready(fwd(x, params_mnist, dataset_name="mnist"))
    assert out_mnist.shape == (N, 1, 28, 28), out_mnist.shape
    assert bool(jnp.all(jnp.isfinite(out_mnist)))

    # non-mnist branch: hidden0-3 + out_others -> (N, 3, 64, 64)
    params_rgb = init_params(kp, nz, ngf, nc=3)
    out_rgb = jax.block_until_ready(fwd(x, params_rgb, dataset_name="cifar10"))
    assert out_rgb.shape == (N, 3, 64, 64), out_rgb.shape
    assert bool(jnp.all(jnp.isfinite(out_rgb)))

    print("KERNEL_OK")
</pallas_src>

<mosaic_0001>
module attributes {stable_mosaic.version = 11 : i64} {
  func.func @_bn_apply_kernel(%arg0: i32, %arg1: memref<32x64xf32, #tpu.memory_space<vmem>>, %arg2: memref<1x64xf32, #tpu.memory_space<vmem>>, %arg3: memref<1x64xf32, #tpu.memory_space<vmem>>, %arg4: memref<32x64xf32, #tpu.memory_space<vmem>>) attributes {dimension_semantics = [#tpu.dimension_semantics<parallel>], iteration_bounds = array<i64: 1>, scalar_prefetch = 0 : i64, scratch_operands = 0 : i64, tpu.core_type = #tpu.core_type<tc>, window_params = [{transform_indices = @transform_0, window_bounds = array<i64: 32, 64>}, {pipeline_mode = #tpu.pipeline_mode<synchronous>, transform_indices = @transform_1, window_bounds = array<i64: 1, 64>}, {pipeline_mode = #tpu.pipeline_mode<synchronous>, transform_indices = @transform_2, window_bounds = array<i64: 1, 64>}, {transform_indices = @transform_3, window_bounds = array<i64: 32, 64>}]} {
    %c0 = arith.constant 0 : index
    %c0_0 = arith.constant 0 : index
    %0 = vector.load %arg1[%c0, %c0_0] : memref<32x64xf32, #tpu.memory_space<vmem>>, vector<32x64xf32>
    %c0_1 = arith.constant 0 : index
    %c0_2 = arith.constant 0 : index
    %1 = vector.load %arg2[%c0_1, %c0_2] : memref<1x64xf32, #tpu.memory_space<vmem>>, vector<1x64xf32>
    %2 = vector.broadcast %1 : vector<1x64xf32> to vector<32x64xf32>
    %3 = arith.mulf %0, %2 : vector<32x64xf32>
    %c0_3 = arith.constant 0 : index
    %c0_4 = arith.constant 0 : index
    %4 = vector.load %arg3[%c0_3, %c0_4] : memref<1x64xf32, #tpu.memory_space<vmem>>, vector<1x64xf32>
    %5 = vector.broadcast %4 : vector<1x64xf32> to vector<32x64xf32>
    %6 = arith.addf %3, %5 : vector<32x64xf32>
    %c0_5 = arith.constant 0 : index
    %c0_6 = arith.constant 0 : index
    %7 = vector.load %arg4[%c0_5, %c0_6] : memref<32x64xf32, #tpu.memory_space<vmem>>, vector<32x64xf32>
    tpu.vector_store %arg4[%c0_5, %c0_6], %6 {strides = array<i32>} : memref<32x64xf32, #tpu.memory_space<vmem>>, vector<32x64xf32>,
    return
  }
  func.func @transform_0(%arg0: i32) -> (i32, i32) {
    %c0_i32 = arith.constant 0 : i32
    %c0_i32_0 = arith.constant 0 : i32
    return %arg0, %c0_i32 : i32, i32
  }
  func.func @transform_1(%arg0: i32) -> (i32, i32) {
    %c0_i32 = arith.constant 0 : i32
    %c0_i32_0 = arith.constant 0 : i32
    %c0_i32_1 = arith.constant 0 : i32
    return %c0_i32, %c0_i32_0 : i32, i32
  }
  func.func @transform_2(%arg0: i32) -> (i32, i32) {
    %c0_i32 = arith.constant 0 : i32
    %c0_i32_0 = arith.constant 0 : i32
    %c0_i32_1 = arith.constant 0 : i32
    return %c0_i32, %c0_i32_0 : i32, i32
  }
  func.func @transform_3(%arg0: i32) -> (i32, i32) {
    %c0_i32 = arith.constant 0 : i32
    %c0_i32_0 = arith.constant 0 : i32
    return %arg0, %c0_i32 : i32, i32
  }
}

module attributes {stable_mosaic.version = 11 : i64} {
  func.func @_matmul_kernel(%arg0: i32, %arg1: i32, %arg2: i32, %arg3: memref<128x128xbf16, #tpu.memory_space<vmem>>, %arg4: memref<128x256xbf16, #tpu.memory_space<vmem>>, %arg5: memref<128x256xf32, #tpu.memory_space<vmem>>, %arg6: memref<128x256xf32, #tpu.memory_space<vmem>>) attributes {dimension_semantics = [#tpu.dimension_semantics<parallel>, #tpu.dimension_semantics<parallel>, #tpu.dimension_semantics<arbitrary>], iteration_bounds = array<i64: 1, 4, 1>, scalar_prefetch = 0 : i64, scratch_operands = 1 : i64, tpu.core_type = #tpu.core_type<tc>, window_params = [{transform_indices = @transform_0, window_bounds = array<i64: 128, 128>}, {transform_indices = @transform_1, window_bounds = array<i64: 128, 256>}, {transform_indices = @transform_2, window_bounds = array<i64: 128, 256>}]} {
    %c0_i32 = arith.constant 0 : i32
    %0 = arith.cmpi eq, %arg2, %c0_i32 : i32
    %1 = arith.extui %0 : i1 to i32
    %c0_i32_0 = arith.constant 0 : i32
    %2 = arith.cmpi ne, %1, %c0_i32_0 : i32
    scf.if %2 {
      %cst_10 = arith.constant 0.000000e+00 : f32
      %12 = vector.broadcast %cst_10 : f32 to vector<128x256xf32>
      %c0_11 = arith.constant 0 : index
      %c0_12 = arith.constant 0 : index
      %13 = vector.load %arg6[%c0_11, %c0_12] : memref<128x256xf32, #tpu.memory_space<vmem>>, vector<128x256xf32>
      tpu.vector_store %arg6[%c0_11, %c0_12], %12 {strides = array<i32>} : memref<128x256xf32, #tpu.memory_space<vmem>>, vector<128x256xf32>,
    } else {
    }
    %c0 = arith.constant 0 : index
    %c0_1 = arith.constant 0 : index
    %3 = vector.load %arg6[%c0, %c0_1] : memref<128x256xf32, #tpu.memory_space<vmem>>, vector<128x256xf32>
    %c0_2 = arith.constant 0 : index
    %c0_3 = arith.constant 0 : index
    %4 = vector.load %arg3[%c0_2, %c0_3] : memref<128x128xbf16, #tpu.memory_space<vmem>>, vector<128x128xbf16>
    %c0_4 = arith.constant 0 : index
    %c0_5 = arith.constant 0 : index
    %5 = vector.load %arg4[%c0_4, %c0_5] : memref<128x256xbf16, #tpu.memory_space<vmem>>, vector<128x256xbf16>
    %cst = arith.constant dense<0.000000e+00> : vector<128x256xf32>
    %6 = tpu.matmul %4, %5, %cst {dimension_numbers = #tpu.dot_dimension_numbers<[1], [0], [0], [1], [0, 0, 1, 1], [], []>} : vector<128x128xbf16>, vector<128x256xbf16>, vector<128x256xf32> -> vector<128x256xf32>
    %7 = arith.addf %3, %6 : vector<128x256xf32>
    %c0_6 = arith.constant 0 : index
    %c0_7 = arith.constant 0 : index
    %8 = vector.load %arg6[%c0_6, %c0_7] : memref<128x256xf32, #tpu.memory_space<vmem>>, vector<128x256xf32>
    tpu.vector_store %arg6[%c0_6, %c0_7], %7 {strides = array<i32>} : memref<128x256xf32, #tpu.memory_space<vmem>>, vector<128x256xf32>,
    %c0_i32_8 = arith.constant 0 : i32
    %9 = arith.cmpi eq, %arg2, %c0_i32_8 : i32
    %10 = arith.extui %9 : i1 to i32
    %c0_i32_9 = arith.constant 0 : i32
    %11 = arith.cmpi ne, %10, %c0_i32_9 : i32
    scf.if %11 {
      %c0_10 = arith.constant 0 : index
      %c0_11 = arith.constant 0 : index
      %12 = vector.load %arg6[%c0_10, %c0_11] : memref<128x256xf32, #tpu.memory_space<vmem>>, vector<128x256xf32>
      %c0_12 = arith.constant 0 : index
      %c0_13 = arith.constant 0 : index
      %13 = vector.load %arg5[%c0_12, %c0_13] : memref<128x256xf32, #tpu.memory_space<vmem>>, vector<128x256xf32>
      tpu.vector_store %arg5[%c0_12, %c0_13], %12 {strides = array<i32>} : memref<128x256xf32, #tpu.memory_space<vmem>>, vector<128x256xf32>,
    } else {
    }
    return
  }
  func.func @transform_0(%arg0: i32, %arg1: i32, %arg2: i32) -> (i32, i32) {
    %c0_i32 = arith.constant 0 : i32
    return %arg0, %arg2 : i32, i32
  }
  func.func @transform_1(%arg0: i32, %arg1: i32, %arg2: i32) -> (i32, i32) {
    %c0_i32 = arith.constant 0 : i32
    return %arg2, %arg1 : i32, i32
  }
  func.func @transform_2(%arg0: i32, %arg1: i32, %arg2: i32) -> (i32, i32) {
    %c0_i32 = arith.constant 0 : i32
    return %arg0, %arg1 : i32, i32
  }
}

module attributes {stable_mosaic.version = 11 : i64} {
  func.func @_bn_stats_kernel(%arg0: i32, %arg1: memref<32x64xf32, #tpu.memory_space<vmem>>, %arg2: memref<1x64xf32, #tpu.memory_space<vmem>>, %arg3: memref<1x64xf32, #tpu.memory_space<vmem>>) attributes {dimension_semantics = [#tpu.dimension_semantics<arbitrary>], iteration_bounds = array<i64: 1>, scalar_prefetch = 0 : i64, scratch_operands = 0 : i64, tpu.core_type = #tpu.core_type<tc>, window_params = [{transform_indices = @transform_0, window_bounds = array<i64: 32, 64>}, {pipeline_mode = #tpu.pipeline_mode<synchronous>, transform_indices = @transform_1, window_bounds = array<i64: 1, 64>}, {pipeline_mode = #tpu.pipeline_mode<synchronous>, transform_indices = @transform_2, window_bounds = array<i64: 1, 64>}]} {
    %c0_i32 = arith.constant 0 : i32
    %0 = arith.cmpi eq, %arg0, %c0_i32 : i32
    %1 = arith.extui %0 : i1 to i32
    %c0_i32_0 = arith.constant 0 : i32
    %2 = arith.cmpi ne, %1, %c0_i32_0 : i32
    scf.if %2 {
      %cst_11 = arith.constant 0.000000e+00 : f32
      %15 = vector.broadcast %cst_11 : f32 to vector<1x64xf32>
      %c0_12 = arith.constant 0 : index
      %c0_13 = arith.constant 0 : index
      %16 = vector.load %arg2[%c0_12, %c0_13] : memref<1x64xf32, #tpu.memory_space<vmem>>, vector<1x64xf32>
      tpu.vector_store %arg2[%c0_12, %c0_13], %15 {strides = array<i32>} : memref<1x64xf32, #tpu.memory_space<vmem>>, vector<1x64xf32>,
      %cst_14 = arith.constant 0.000000e+00 : f32
      %17 = vector.broadcast %cst_14 : f32 to vector<1x64xf32>
      %c0_15 = arith.constant 0 : index
      %c0_16 = arith.constant 0 : index
      %18 = vector.load %arg3[%c0_15, %c0_16] : memref<1x64xf32, #tpu.memory_space<vmem>>, vector<1x64xf32>
      tpu.vector_store %arg3[%c0_15, %c0_16], %17 {strides = array<i32>} : memref<1x64xf32, #tpu.memory_space<vmem>>, vector<1x64xf32>,
    } else {
    }
    %c0 = arith.constant 0 : index
    %c0_1 = arith.constant 0 : index
    %3 = vector.load %arg1[%c0, %c0_1] : memref<32x64xf32, #tpu.memory_space<vmem>>, vector<32x64xf32>
    %c0_2 = arith.constant 0 : index
    %c0_3 = arith.constant 0 : index
    %4 = vector.load %arg2[%c0_2, %c0_3] : memref<1x64xf32, #tpu.memory_space<vmem>>, vector<1x64xf32>
    %cst = arith.constant dense<0.000000e+00> : vector<64xf32>
    %5 = vector.multi_reduction <add>, %3, %cst [0] : vector<32x64xf32> to vector<64xf32>
    %6 = vector.shape_cast %5 : vector<64xf32> to vector<1x64xf32>
    %7 = arith.addf %4, %6 : vector<1x64xf32>
    %c0_4 = arith.constant 0 : index
    %c0_5 = arith.constant 0 : index
    %8 = vector.load %arg2[%c0_4, %c0_5] : memref<1x64xf32, #tpu.memory_space<vmem>>, vector<1x64xf32>
    tpu.vector_store %arg2[%c0_4, %c0_5], %7 {strides = array<i32>} : memref<1x64xf32, #tpu.memory_space<vmem>>, vector<1x64xf32>,
    %c0_6 = arith.constant 0 : index
    %c0_7 = arith.constant 0 : index
    %9 = vector.load %arg3[%c0_6, %c0_7] : memref<1x64xf32, #tpu.memory_space<vmem>>, vector<1x64xf32>
    %10 = arith.mulf %3, %3 : vector<32x64xf32>
    %cst_8 = arith.constant dense<0.000000e+00> : vector<64xf32>
    %11 = vector.multi_reduction <add>, %10, %cst_8 [0] : vector<32x64xf32> to vector<64xf32>
    %12 = vector.shape_cast %11 : vector<64xf32> to vector<1x64xf32>
    %13 = arith.addf %9, %12 : vector<1x64xf32>
    %c0_9 = arith.constant 0 : index
    %c0_10 = arith.constant 0 : index
    %14 = vector.load %arg3[%c0_9, %c0_10] : memref<1x64xf32, #tpu.memory_space<vmem>>, vector<1x64xf32>
    tpu.vector_store %arg3[%c0_9, %c0_10], %13 {strides = array<i32>} : memref<1x64xf32, #tpu.memory_space<vmem>>, vector<1x64xf32>,
    return
  }
  func.func @transform_0(%arg0: i32) -> (i32, i32) {
    %c0_i32 = arith.constant 0 : i32
    %c0_i32_0 = arith.constant 0 : i32
    return %arg0, %c0_i32 : i32, i32
  }
  func.func @transform_1(%arg0: i32) -> (i32, i32) {
    %c0_i32 = arith.constant 0 : i32
    %c0_i32_0 = arith.constant 0 : i32
    %c0_i32_1 = arith.constant 0 : i32
    return %c0_i32, %c0_i32_0 : i32, i32
  }
  func.func @transform_2(%arg0: i32) -> (i32, i32) {
    %c0_i32 = arith.constant 0 : i32
    %c0_i32_0 = arith.constant 0 : i32
    %c0_i32_1 = arith.constant 0 : i32
    return %c0_i32, %c0_i32_0 : i32, i32
  }
}

module attributes {stable_mosaic.version = 11 : i64} {
  func.func @_matmul_kernel(%arg0: i32, %arg1: i32, %arg2: i32, %arg3: memref<128x256xbf16, #tpu.memory_space<vmem>>, %arg4: memref<256x128xbf16, #tpu.memory_space<vmem>>, %arg5: memref<128x128xf32, #tpu.memory_space<vmem>>, %arg6: memref<128x128xf32, #tpu.memory_space<vmem>>) attributes {dimension_semantics = [#tpu.dimension_semantics<parallel>, #tpu.dimension_semantics<parallel>, #tpu.dimension_semantics<arbitrary>], iteration_bounds = array<i64: 1, 1, 1>, scalar_prefetch = 0 : i64, scratch_operands = 1 : i64, tpu.core_type = #tpu.core_type<tc>, window_params = [{transform_indices = @transform_0, window_bounds = array<i64: 128, 256>}, {transform_indices = @transform_1, window_bounds = array<i64: 256, 128>}, {transform_indices = @transform_2, window_bounds = array<i64: 128, 128>}]} {
    %c0_i32 = arith.constant 0 : i32
    %0 = arith.cmpi eq, %arg2, %c0_i32 : i32
    %1 = arith.extui %0 : i1 to i32
    %c0_i32_0 = arith.constant 0 : i32
    %2 = arith.cmpi ne, %1, %c0_i32_0 : i32
    scf.if %2 {
      %cst_10 = arith.constant 0.000000e+00 : f32
      %12 = vector.broadcast %cst_10 : f32 to vector<128x128xf32>
      %c0_11 = arith.constant 0 : index
      %c0_12 = arith.constant 0 : index
      %13 = vector.load %arg6[%c0_11, %c0_12] : memref<128x128xf32, #tpu.memory_space<vmem>>, vector<128x128xf32>
      tpu.vector_store %arg6[%c0_11, %c0_12], %12 {strides = array<i32>} : memref<128x128xf32, #tpu.memory_space<vmem>>, vector<128x128xf32>,
    } else {
    }
    %c0 = arith.constant 0 : index
    %c0_1 = arith.constant 0 : index
    %3 = vector.load %arg6[%c0, %c0_1] : memref<128x128xf32, #tpu.memory_space<vmem>>, vector<128x128xf32>
    %c0_2 = arith.constant 0 : index
    %c0_3 = arith.constant 0 : index
    %4 = vector.load %arg3[%c0_2, %c0_3] : memref<128x256xbf16, #tpu.memory_space<vmem>>, vector<128x256xbf16>
    %c0_4 = arith.constant 0 : index
    %c0_5 = arith.constant 0 : index
    %5 = vector.load %arg4[%c0_4, %c0_5] : memref<256x128xbf16, #tpu.memory_space<vmem>>, vector<256x128xbf16>
    %cst = arith.constant dense<0.000000e+00> : vector<128x128xf32>
    %6 = tpu.matmul %4, %5, %cst {dimension_numbers = #tpu.dot_dimension_numbers<[1], [0], [0], [1], [0, 0, 1, 1], [], []>} : vector<128x256xbf16>, vector<256x128xbf16>, vector<128x128xf32> -> vector<128x128xf32>
    %7 = arith.addf %3, %6 : vector<128x128xf32>
    %c0_6 = arith.constant 0 : index
    %c0_7 = arith.constant 0 : index
    %8 = vector.load %arg6[%c0_6, %c0_7] : memref<128x128xf32, #tpu.memory_space<vmem>>, vector<128x128xf32>
    tpu.vector_store %arg6[%c0_6, %c0_7], %7 {strides = array<i32>} : memref<128x128xf32, #tpu.memory_space<vmem>>, vector<128x128xf32>,
    %c0_i32_8 = arith.constant 0 : i32
    %9 = arith.cmpi eq, %arg2, %c0_i32_8 : i32
    %10 = arith.extui %9 : i1 to i32
    %c0_i32_9 = arith.constant 0 : i32
    %11 = arith.cmpi ne, %10, %c0_i32_9 : i32
    scf.if %11 {
      %c0_10 = arith.constant 0 : index
      %c0_11 = arith.constant 0 : index
      %12 = vector.load %arg6[%c0_10, %c0_11] : memref<128x128xf32, #tpu.memory_space<vmem>>, vector<128x128xf32>
      %c0_12 = arith.constant 0 : index
      %c0_13 = arith.constant 0 : index
      %13 = vector.load %arg5[%c0_12, %c0_13] : memref<128x128xf32, #tpu.memory_space<vmem>>, vector<128x128xf32>
      tpu.vector_store %arg5[%c0_12, %c0_13], %12 {strides = array<i32>} : memref<128x128xf32, #tpu.memory_space<vmem>>, vector<128x128xf32>,
    } else {
    }
    return
  }
  func.func @transform_0(%arg0: i32, %arg1: i32, %arg2: i32) -> (i32, i32) {
    %c0_i32 = arith.constant 0 : i32
    return %arg0, %arg2 : i32, i32
  }
  func.func @transform_1(%arg0: i32, %arg1: i32, %arg2: i32) -> (i32, i32) {
    %c0_i32 = arith.constant 0 : i32
    return %arg2, %arg1 : i32, i32
  }
  func.func @transform_2(%arg0: i32, %arg1: i32, %arg2: i32) -> (i32, i32) {
    %c0_i32 = arith.constant 0 : i32
    return %arg0, %arg1 : i32, i32
  }
}

module attributes {stable_mosaic.version = 11 : i64} {
  func.func @_bn_stats_kernel(%arg0: i32, %arg1: memref<128x32xf32, #tpu.memory_space<vmem>>, %arg2: memref<1x32xf32, #tpu.memory_space<vmem>>, %arg3: memref<1x32xf32, #tpu.memory_space<vmem>>) attributes {dimension_semantics = [#tpu.dimension_semantics<arbitrary>], iteration_bounds = array<i64: 1>, scalar_prefetch = 0 : i64, scratch_operands = 0 : i64, tpu.core_type = #tpu.core_type<tc>, window_params = [{transform_indices = @transform_0, window_bounds = array<i64: 128, 32>}, {pipeline_mode = #tpu.pipeline_mode<synchronous>, transform_indices = @transform_1, window_bounds = array<i64: 1, 32>}, {pipeline_mode = #tpu.pipeline_mode<synchronous>, transform_indices = @transform_2, window_bounds = array<i64: 1, 32>}]} {
    %c0_i32 = arith.constant 0 : i32
    %0 = arith.cmpi eq, %arg0, %c0_i32 : i32
    %1 = arith.extui %0 : i1 to i32
    %c0_i32_0 = arith.constant 0 : i32
    %2 = arith.cmpi ne, %1, %c0_i32_0 : i32
    scf.if %2 {
      %cst_11 = arith.constant 0.000000e+00 : f32
      %15 = vector.broadcast %cst_11 : f32 to vector<1x32xf32>
      %c0_12 = arith.constant 0 : index
      %c0_13 = arith.constant 0 : index
      %16 = vector.load %arg2[%c0_12, %c0_13] : memref<1x32xf32, #tpu.memory_space<vmem>>, vector<1x32xf32>
      tpu.vector_store %arg2[%c0_12, %c0_13], %15 {strides = array<i32>} : memref<1x32xf32, #tpu.memory_space<vmem>>, vector<1x32xf32>,
      %cst_14 = arith.constant 0.000000e+00 : f32
      %17 = vector.broadcast %cst_14 : f32 to vector<1x32xf32>
      %c0_15 = arith.constant 0 : index
      %c0_16 = arith.constant 0 : index
      %18 = vector.load %arg3[%c0_15, %c0_16] : memref<1x32xf32, #tpu.memory_space<vmem>>, vector<1x32xf32>
      tpu.vector_store %arg3[%c0_15, %c0_16], %17 {strides = array<i32>} : memref<1x32xf32, #tpu.memory_space<vmem>>, vector<1x32xf32>,
    } else {
    }
    %c0 = arith.constant 0 : index
    %c0_1 = arith.constant 0 : index
    %3 = vector.load %arg1[%c0, %c0_1] : memref<128x32xf32, #tpu.memory_space<vmem>>, vector<128x32xf32>
    %c0_2 = arith.constant 0 : index
    %c0_3 = arith.constant 0 : index
    %4 = vector.load %arg2[%c0_2, %c0_3] : memref<1x32xf32, #tpu.memory_space<vmem>>, vector<1x32xf32>
    %cst = arith.constant dense<0.000000e+00> : vector<32xf32>
    %5 = vector.multi_reduction <add>, %3, %cst [0] : vector<128x32xf32> to vector<32xf32>
    %6 = vector.shape_cast %5 : vector<32xf32> to vector<1x32xf32>
    %7 = arith.addf %4, %6 : vector<1x32xf32>
    %c0_4 = arith.constant 0 : index
    %c0_5 = arith.constant 0 : index
    %8 = vector.load %arg2[%c0_4, %c0_5] : memref<1x32xf32, #tpu.memory_space<vmem>>, vector<1x32xf32>
    tpu.vector_store %arg2[%c0_4, %c0_5], %7 {strides = array<i32>} : memref<1x32xf32, #tpu.memory_space<vmem>>, vector<1x32xf32>,
    %c0_6 = arith.constant 0 : index
    %c0_7 = arith.constant 0 : index
    %9 = vector.load %arg3[%c0_6, %c0_7] : memref<1x32xf32, #tpu.memory_space<vmem>>, vector<1x32xf32>
    %10 = arith.mulf %3, %3 : vector<128x32xf32>
    %cst_8 = arith.constant dense<0.000000e+00> : vector<32xf32>
    %11 = vector.multi_reduction <add>, %10, %cst_8 [0] : vector<128x32xf32> to vector<32xf32>
    %12 = vector.shape_cast %11 : vector<32xf32> to vector<1x32xf32>
    %13 = arith.addf %9, %12 : vector<1x32xf32>
    %c0_9 = arith.constant 0 : index
    %c0_10 = arith.constant 0 : index
    %14 = vector.load %arg3[%c0_9, %c0_10] : memref<1x32xf32, #tpu.memory_space<vmem>>, vector<1x32xf32>
    tpu.vector_store %arg3[%c0_9, %c0_10], %13 {strides = array<i32>} : memref<1x32xf32, #tpu.memory_space<vmem>>, vector<1x32xf32>,
    return
  }
  func.func @transform_0(%arg0: i32) -> (i32, i32) {
    %c0_i32 = arith.constant 0 : i32
    %c0_i32_0 = arith.constant 0 : i32
    return %arg0, %c0_i32 : i32, i32
  }
  func.func @transform_1(%arg0: i32) -> (i32, i32) {
    %c0_i32 = arith.constant 0 : i32
    %c0_i32_0 = arith.constant 0 : i32
    %c0_i32_1 = arith.constant 0 : i32
    return %c0_i32, %c0_i32_0 : i32, i32
  }
  func.func @transform_2(%arg0: i32) -> (i32, i32) {
    %c0_i32 = arith.constant 0 : i32
    %c0_i32_0 = arith.constant 0 : i32
    %c0_i32_1 = arith.constant 0 : i32
    return %c0_i32, %c0_i32_0 : i32, i32
  }
}

module attributes {stable_mosaic.version = 11 : i64} {
  func.func @_bn_apply_kernel(%arg0: i32, %arg1: memref<128x32xf32, #tpu.memory_space<vmem>>, %arg2: memref<1x32xf32, #tpu.memory_space<vmem>>, %arg3: memref<1x32xf32, #tpu.memory_space<vmem>>, %arg4: memref<128x32xf32, #tpu.memory_space<vmem>>) attributes {dimension_semantics = [#tpu.dimension_semantics<parallel>], iteration_bounds = array<i64: 1>, scalar_prefetch = 0 : i64, scratch_operands = 0 : i64, tpu.core_type = #tpu.core_type<tc>, window_params = [{transform_indices = @transform_0, window_bounds = array<i64: 128, 32>}, {pipeline_mode = #tpu.pipeline_mode<synchronous>, transform_indices = @transform_1, window_bounds = array<i64: 1, 32>}, {pipeline_mode = #tpu.pipeline_mode<synchronous>, transform_indices = @transform_2, window_bounds = array<i64: 1, 32>}, {transform_indices = @transform_3, window_bounds = array<i64: 128, 32>}]} {
    %c0 = arith.constant 0 : index
    %c0_0 = arith.constant 0 : index
    %0 = vector.load %arg1[%c0, %c0_0] : memref<128x32xf32, #tpu.memory_space<vmem>>, vector<128x32xf32>
    %c0_1 = arith.constant 0 : index
    %c0_2 = arith.constant 0 : index
    %1 = vector.load %arg2[%c0_1, %c0_2] : memref<1x32xf32, #tpu.memory_space<vmem>>, vector<1x32xf32>
    %2 = vector.broadcast %1 : vector<1x32xf32> to vector<128x32xf32>
    %3 = arith.mulf %0, %2 : vector<128x32xf32>
    %c0_3 = arith.constant 0 : index
    %c0_4 = arith.constant 0 : index
    %4 = vector.load %arg3[%c0_3, %c0_4] : memref<1x32xf32, #tpu.memory_space<vmem>>, vector<1x32xf32>
    %5 = vector.broadcast %4 : vector<1x32xf32> to vector<128x32xf32>
    %6 = arith.addf %3, %5 : vector<128x32xf32>
    %c0_5 = arith.constant 0 : index
    %c0_6 = arith.constant 0 : index
    %7 = vector.load %arg4[%c0_5, %c0_6] : memref<128x32xf32, #tpu.memory_space<vmem>>, vector<128x32xf32>
    tpu.vector_store %arg4[%c0_5, %c0_6], %6 {strides = array<i32>} : memref<128x32xf32, #tpu.memory_space<vmem>>, vector<128x32xf32>,
    return
  }
  func.func @transform_0(%arg0: i32) -> (i32, i32) {
    %c0_i32 = arith.constant 0 : i32
    %c0_i32_0 = arith.constant 0 : i32
    return %arg0, %c0_i32 : i32, i32
  }
  func.func @transform_1(%arg0: i32) -> (i32, i32) {
    %c0_i32 = arith.constant 0 : i32
    %c0_i32_0 = arith.constant 0 : i32
    %c0_i32_1 = arith.constant 0 : i32
    return %c0_i32, %c0_i32_0 : i32, i32
  }
  func.func @transform_2(%arg0: i32) -> (i32, i32) {
    %c0_i32 = arith.constant 0 : i32
    %c0_i32_0 = arith.constant 0 : i32
    %c0_i32_1 = arith.constant 0 : i32
    return %c0_i32, %c0_i32_0 : i32, i32
  }
  func.func @transform_3(%arg0: i32) -> (i32, i32) {
    %c0_i32 = arith.constant 0 : i32
    %c0_i32_0 = arith.constant 0 : i32
    return %arg0, %c0_i32 : i32, i32
  }
}

module attributes {stable_mosaic.version = 11 : i64} {
  func.func @_matmul_kernel(%arg0: i32, %arg1: i32, %arg2: i32, %arg3: memref<128x128xbf16, #tpu.memory_space<vmem>>, %arg4: memref<128x128xbf16, #tpu.memory_space<vmem>>, %arg5: memref<128x128xf32, #tpu.memory_space<vmem>>, %arg6: memref<128x128xf32, #tpu.memory_space<vmem>>) attributes {dimension_semantics = [#tpu.dimension_semantics<parallel>, #tpu.dimension_semantics<parallel>, #tpu.dimension_semantics<arbitrary>], iteration_bounds = array<i64: 1, 1, 1>, scalar_prefetch = 0 : i64, scratch_operands = 1 : i64, tpu.core_type = #tpu.core_type<tc>, window_params = [{transform_indices = @transform_0, window_bounds = array<i64: 128, 128>}, {transform_indices = @transform_1, window_bounds = array<i64: 128, 128>}, {transform_indices = @transform_2, window_bounds = array<i64: 128, 128>}]} {
    %c0_i32 = arith.constant 0 : i32
    %0 = arith.cmpi eq, %arg2, %c0_i32 : i32
    %1 = arith.extui %0 : i1 to i32
    %c0_i32_0 = arith.constant 0 : i32
    %2 = arith.cmpi ne, %1, %c0_i32_0 : i32
    scf.if %2 {
      %cst_10 = arith.constant 0.000000e+00 : f32
      %12 = vector.broadcast %cst_10 : f32 to vector<128x128xf32>
      %c0_11 = arith.constant 0 : index
      %c0_12 = arith.constant 0 : index
      %13 = vector.load %arg6[%c0_11, %c0_12] : memref<128x128xf32, #tpu.memory_space<vmem>>, vector<128x128xf32>
      tpu.vector_store %arg6[%c0_11, %c0_12], %12 {strides = array<i32>} : memref<128x128xf32, #tpu.memory_space<vmem>>, vector<128x128xf32>,
    } else {
    }
    %c0 = arith.constant 0 : index
    %c0_1 = arith.constant 0 : index
    %3 = vector.load %arg6[%c0, %c0_1] : memref<128x128xf32, #tpu.memory_space<vmem>>, vector<128x128xf32>
    %c0_2 = arith.constant 0 : index
    %c0_3 = arith.constant 0 : index
    %4 = vector.load %arg3[%c0_2, %c0_3] : memref<128x128xbf16, #tpu.memory_space<vmem>>, vector<128x128xbf16>
    %c0_4 = arith.constant 0 : index
    %c0_5 = arith.constant 0 : index
    %5 = vector.load %arg4[%c0_4, %c0_5] : memref<128x128xbf16, #tpu.memory_space<vmem>>, vector<128x128xbf16>
    %cst = arith.constant dense<0.000000e+00> : vector<128x128xf32>
    %6 = tpu.matmul %4, %5, %cst {dimension_numbers = #tpu.dot_dimension_numbers<[1], [0], [0], [1], [0, 0, 1, 1], [], []>} : vector<128x128xbf16>, vector<128x128xbf16>, vector<128x128xf32> -> vector<128x128xf32>
    %7 = arith.addf %3, %6 : vector<128x128xf32>
    %c0_6 = arith.constant 0 : index
    %c0_7 = arith.constant 0 : index
    %8 = vector.load %arg6[%c0_6, %c0_7] : memref<128x128xf32, #tpu.memory_space<vmem>>, vector<128x128xf32>
    tpu.vector_store %arg6[%c0_6, %c0_7], %7 {strides = array<i32>} : memref<128x128xf32, #tpu.memory_space<vmem>>, vector<128x128xf32>,
    %c0_i32_8 = arith.constant 0 : i32
    %9 = arith.cmpi eq, %arg2, %c0_i32_8 : i32
    %10 = arith.extui %9 : i1 to i32
    %c0_i32_9 = arith.constant 0 : i32
    %11 = arith.cmpi ne, %10, %c0_i32_9 : i32
    scf.if %11 {
      %c0_10 = arith.constant 0 : index
      %c0_11 = arith.constant 0 : index
      %12 = vector.load %arg6[%c0_10, %c0_11] : memref<128x128xf32, #tpu.memory_space<vmem>>, vector<128x128xf32>
      %c0_12 = arith.constant 0 : index
      %c0_13 = arith.constant 0 : index
      %13 = vector.load %arg5[%c0_12, %c0_13] : memref<128x128xf32, #tpu.memory_space<vmem>>, vector<128x128xf32>
      tpu.vector_store %arg5[%c0_12, %c0_13], %12 {strides = array<i32>} : memref<128x128xf32, #tpu.memory_space<vmem>>, vector<128x128xf32>,
    } else {
    }
    return
  }
  func.func @transform_0(%arg0: i32, %arg1: i32, %arg2: i32) -> (i32, i32) {
    %c0_i32 = arith.constant 0 : i32
    return %arg0, %arg2 : i32, i32
  }
  func.func @transform_1(%arg0: i32, %arg1: i32, %arg2: i32) -> (i32, i32) {
    %c0_i32 = arith.constant 0 : i32
    return %arg2, %arg1 : i32, i32
  }
  func.func @transform_2(%arg0: i32, %arg1: i32, %arg2: i32) -> (i32, i32) {
    %c0_i32 = arith.constant 0 : i32
    return %arg0, %arg1 : i32, i32
  }
}

module attributes {stable_mosaic.version = 11 : i64} {
  func.func @_bn_apply_kernel(%arg0: i32, %arg1: memref<512x16xf32, #tpu.memory_space<vmem>>, %arg2: memref<1x16xf32, #tpu.memory_space<vmem>>, %arg3: memref<1x16xf32, #tpu.memory_space<vmem>>, %arg4: memref<512x16xf32, #tpu.memory_space<vmem>>) attributes {dimension_semantics = [#tpu.dimension_semantics<parallel>], iteration_bounds = array<i64: 1>, scalar_prefetch = 0 : i64, scratch_operands = 0 : i64, tpu.core_type = #tpu.core_type<tc>, window_params = [{transform_indices = @transform_0, window_bounds = array<i64: 512, 16>}, {pipeline_mode = #tpu.pipeline_mode<synchronous>, transform_indices = @transform_1, window_bounds = array<i64: 1, 16>}, {pipeline_mode = #tpu.pipeline_mode<synchronous>, transform_indices = @transform_2, window_bounds = array<i64: 1, 16>}, {transform_indices = @transform_3, window_bounds = array<i64: 512, 16>}]} {
    %c0 = arith.constant 0 : index
    %c0_0 = arith.constant 0 : index
    %0 = vector.load %arg1[%c0, %c0_0] : memref<512x16xf32, #tpu.memory_space<vmem>>, vector<512x16xf32>
    %c0_1 = arith.constant 0 : index
    %c0_2 = arith.constant 0 : index
    %1 = vector.load %arg2[%c0_1, %c0_2] : memref<1x16xf32, #tpu.memory_space<vmem>>, vector<1x16xf32>
    %2 = vector.broadcast %1 : vector<1x16xf32> to vector<512x16xf32>
    %3 = arith.mulf %0, %2 : vector<512x16xf32>
    %c0_3 = arith.constant 0 : index
    %c0_4 = arith.constant 0 : index
    %4 = vector.load %arg3[%c0_3, %c0_4] : memref<1x16xf32, #tpu.memory_space<vmem>>, vector<1x16xf32>
    %5 = vector.broadcast %4 : vector<1x16xf32> to vector<512x16xf32>
    %6 = arith.addf %3, %5 : vector<512x16xf32>
    %c0_5 = arith.constant 0 : index
    %c0_6 = arith.constant 0 : index
    %7 = vector.load %arg4[%c0_5, %c0_6] : memref<512x16xf32, #tpu.memory_space<vmem>>, vector<512x16xf32>
    tpu.vector_store %arg4[%c0_5, %c0_6], %6 {strides = array<i32>} : memref<512x16xf32, #tpu.memory_space<vmem>>, vector<512x16xf32>,
    return
  }
  func.func @transform_0(%arg0: i32) -> (i32, i32) {
    %c0_i32 = arith.constant 0 : i32
    %c0_i32_0 = arith.constant 0 : i32
    return %arg0, %c0_i32 : i32, i32
  }
  func.func @transform_1(%arg0: i32) -> (i32, i32) {
    %c0_i32 = arith.constant 0 : i32
    %c0_i32_0 = arith.constant 0 : i32
    %c0_i32_1 = arith.constant 0 : i32
    return %c0_i32, %c0_i32_0 : i32, i32
  }
  func.func @transform_2(%arg0: i32) -> (i32, i32) {
    %c0_i32 = arith.constant 0 : i32
    %c0_i32_0 = arith.constant 0 : i32
    %c0_i32_1 = arith.constant 0 : i32
    return %c0_i32, %c0_i32_0 : i32, i32
  }
  func.func @transform_3(%arg0: i32) -> (i32, i32) {
    %c0_i32 = arith.constant 0 : i32
    %c0_i32_0 = arith.constant 0 : i32
    return %arg0, %c0_i32 : i32, i32
  }
}

module attributes {stable_mosaic.version = 11 : i64} {
  func.func @_bn_stats_kernel(%arg0: i32, %arg1: memref<512x16xf32, #tpu.memory_space<vmem>>, %arg2: memref<1x16xf32, #tpu.memory_space<vmem>>, %arg3: memref<1x16xf32, #tpu.memory_space<vmem>>) attributes {dimension_semantics = [#tpu.dimension_semantics<arbitrary>], iteration_bounds = array<i64: 1>, scalar_prefetch = 0 : i64, scratch_operands = 0 : i64, tpu.core_type = #tpu.core_type<tc>, window_params = [{transform_indices = @transform_0, window_bounds = array<i64: 512, 16>}, {pipeline_mode = #tpu.pipeline_mode<synchronous>, transform_indices = @transform_1, window_bounds = array<i64: 1, 16>}, {pipeline_mode = #tpu.pipeline_mode<synchronous>, transform_indices = @transform_2, window_bounds = array<i64: 1, 16>}]} {
    %c0_i32 = arith.constant 0 : i32
    %0 = arith.cmpi eq, %arg0, %c0_i32 : i32
    %1 = arith.extui %0 : i1 to i32
    %c0_i32_0 = arith.constant 0 : i32
    %2 = arith.cmpi ne, %1, %c0_i32_0 : i32
    scf.if %2 {
      %cst_11 = arith.constant 0.000000e+00 : f32
      %15 = vector.broadcast %cst_11 : f32 to vector<1x16xf32>
      %c0_12 = arith.constant 0 : index
      %c0_13 = arith.constant 0 : index
      %16 = vector.load %arg2[%c0_12, %c0_13] : memref<1x16xf32, #tpu.memory_space<vmem>>, vector<1x16xf32>
      tpu.vector_store %arg2[%c0_12, %c0_13], %15 {strides = array<i32>} : memref<1x16xf32, #tpu.memory_space<vmem>>, vector<1x16xf32>,
      %cst_14 = arith.constant 0.000000e+00 : f32
      %17 = vector.broadcast %cst_14 : f32 to vector<1x16xf32>
      %c0_15 = arith.constant 0 : index
      %c0_16 = arith.constant 0 : index
      %18 = vector.load %arg3[%c0_15, %c0_16] : memref<1x16xf32, #tpu.memory_space<vmem>>, vector<1x16xf32>
      tpu.vector_store %arg3[%c0_15, %c0_16], %17 {strides = array<i32>} : memref<1x16xf32, #tpu.memory_space<vmem>>, vector<1x16xf32>,
    } else {
    }
    %c0 = arith.constant 0 : index
    %c0_1 = arith.constant 0 : index
    %3 = vector.load %arg1[%c0, %c0_1] : memref<512x16xf32, #tpu.memory_space<vmem>>, vector<512x16xf32>
    %c0_2 = arith.constant 0 : index
    %c0_3 = arith.constant 0 : index
    %4 = vector.load %arg2[%c0_2, %c0_3] : memref<1x16xf32, #tpu.memory_space<vmem>>, vector<1x16xf32>
    %cst = arith.constant dense<0.000000e+00> : vector<16xf32>
    %5 = vector.multi_reduction <add>, %3, %cst [0] : vector<512x16xf32> to vector<16xf32>
    %6 = vector.shape_cast %5 : vector<16xf32> to vector<1x16xf32>
    %7 = arith.addf %4, %6 : vector<1x16xf32>
    %c0_4 = arith.constant 0 : index
    %c0_5 = arith.constant 0 : index
    %8 = vector.load %arg2[%c0_4, %c0_5] : memref<1x16xf32, #tpu.memory_space<vmem>>, vector<1x16xf32>
    tpu.vector_store %arg2[%c0_4, %c0_5], %7 {strides = array<i32>} : memref<1x16xf32, #tpu.memory_space<vmem>>, vector<1x16xf32>,
    %c0_6 = arith.constant 0 : index
    %c0_7 = arith.constant 0 : index
    %9 = vector.load %arg3[%c0_6, %c0_7] : memref<1x16xf32, #tpu.memory_space<vmem>>, vector<1x16xf32>
    %10 = arith.mulf %3, %3 : vector<512x16xf32>
    %cst_8 = arith.constant dense<0.000000e+00> : vector<16xf32>
    %11 = vector.multi_reduction <add>, %10, %cst_8 [0] : vector<512x16xf32> to vector<16xf32>
    %12 = vector.shape_cast %11 : vector<16xf32> to vector<1x16xf32>
    %13 = arith.addf %9, %12 : vector<1x16xf32>
    %c0_9 = arith.constant 0 : index
    %c0_10 = arith.constant 0 : index
    %14 = vector.load %arg3[%c0_9, %c0_10] : memref<1x16xf32, #tpu.memory_space<vmem>>, vector<1x16xf32>
    tpu.vector_store %arg3[%c0_9, %c0_10], %13 {strides = array<i32>} : memref<1x16xf32, #tpu.memory_space<vmem>>, vector<1x16xf32>,
    return
  }
  func.func @transform_0(%arg0: i32) -> (i32, i32) {
    %c0_i32 = arith.constant 0 : i32
    %c0_i32_0 = arith.constant 0 : i32
    return %arg0, %c0_i32 : i32, i32
  }
  func.func @transform_1(%arg0: i32) -> (i32, i32) {
    %c0_i32 = arith.constant 0 : i32
    %c0_i32_0 = arith.constant 0 : i32
    %c0_i32_1 = arith.constant 0 : i32
    return %c0_i32, %c0_i32_0 : i32, i32
  }
  func.func @transform_2(%arg0: i32) -> (i32, i32) {
    %c0_i32 = arith.constant 0 : i32
    %c0_i32_0 = arith.constant 0 : i32
    %c0_i32_1 = arith.constant 0 : i32
    return %c0_i32, %c0_i32_0 : i32, i32
  }
}

module attributes {stable_mosaic.version = 11 : i64} {
  func.func @_matmul_kernel(%arg0: i32, %arg1: i32, %arg2: i32, %arg3: memref<256x128xbf16, #tpu.memory_space<vmem>>, %arg4: memref<128x128xbf16, #tpu.memory_space<vmem>>, %arg5: memref<256x128xf32, #tpu.memory_space<vmem>>, %arg6: memref<256x128xf32, #tpu.memory_space<vmem>>) attributes {dimension_semantics = [#tpu.dimension_semantics<parallel>, #tpu.dimension_semantics<parallel>, #tpu.dimension_semantics<arbitrary>], iteration_bounds = array<i64: 2, 1, 1>, scalar_prefetch = 0 : i64, scratch_operands = 1 : i64, tpu.core_type = #tpu.core_type<tc>, window_params = [{transform_indices = @transform_0, window_bounds = array<i64: 256, 128>}, {transform_indices = @transform_1, window_bounds = array<i64: 128, 128>}, {transform_indices = @transform_2, window_bounds = array<i64: 256, 128>}]} {
    %c0_i32 = arith.constant 0 : i32
    %0 = arith.cmpi eq, %arg2, %c0_i32 : i32
    %1 = arith.extui %0 : i1 to i32
    %c0_i32_0 = arith.constant 0 : i32
    %2 = arith.cmpi ne, %1, %c0_i32_0 : i32
    scf.if %2 {
      %cst_10 = arith.constant 0.000000e+00 : f32
      %12 = vector.broadcast %cst_10 : f32 to vector<256x128xf32>
      %c0_11 = arith.constant 0 : index
      %c0_12 = arith.constant 0 : index
      %13 = vector.load %arg6[%c0_11, %c0_12] : memref<256x128xf32, #tpu.memory_space<vmem>>, vector<256x128xf32>
      tpu.vector_store %arg6[%c0_11, %c0_12], %12 {strides = array<i32>} : memref<256x128xf32, #tpu.memory_space<vmem>>, vector<256x128xf32>,
    } else {
    }
    %c0 = arith.constant 0 : index
    %c0_1 = arith.constant 0 : index
    %3 = vector.load %arg6[%c0, %c0_1] : memref<256x128xf32, #tpu.memory_space<vmem>>, vector<256x128xf32>
    %c0_2 = arith.constant 0 : index
    %c0_3 = arith.constant 0 : index
    %4 = vector.load %arg3[%c0_2, %c0_3] : memref<256x128xbf16, #tpu.memory_space<vmem>>, vector<256x128xbf16>
    %c0_4 = arith.constant 0 : index
    %c0_5 = arith.constant 0 : index
    %5 = vector.load %arg4[%c0_4, %c0_5] : memref<128x128xbf16, #tpu.memory_space<vmem>>, vector<128x128xbf16>
    %cst = arith.constant dense<0.000000e+00> : vector<256x128xf32>
    %6 = tpu.matmul %4, %5, %cst {dimension_numbers = #tpu.dot_dimension_numbers<[1], [0], [0], [1], [0, 0, 1, 1], [], []>} : vector<256x128xbf16>, vector<128x128xbf16>, vector<256x128xf32> -> vector<256x128xf32>
    %7 = arith.addf %3, %6 : vector<256x128xf32>
    %c0_6 = arith.constant 0 : index
    %c0_7 = arith.constant 0 : index
    %8 = vector.load %arg6[%c0_6, %c0_7] : memref<256x128xf32, #tpu.memory_space<vmem>>, vector<256x128xf32>
    tpu.vector_store %arg6[%c0_6, %c0_7], %7 {strides = array<i32>} : memref<256x128xf32, #tpu.memory_space<vmem>>, vector<256x128xf32>,
    %c0_i32_8 = arith.constant 0 : i32
    %9 = arith.cmpi eq, %arg2, %c0_i32_8 : i32
    %10 = arith.extui %9 : i1 to i32
    %c0_i32_9 = arith.constant 0 : i32
    %11 = arith.cmpi ne, %10, %c0_i32_9 : i32
    scf.if %11 {
      %c0_10 = arith.constant 0 : index
      %c0_11 = arith.constant 0 : index
      %12 = vector.load %arg6[%c0_10, %c0_11] : memref<256x128xf32, #tpu.memory_space<vmem>>, vector<256x128xf32>
      %13 = math.tanh %12 : vector<256x128xf32>
      %c0_12 = arith.constant 0 : index
      %c0_13 = arith.constant 0 : index
      %14 = vector.load %arg5[%c0_12, %c0_13] : memref<256x128xf32, #tpu.memory_space<vmem>>, vector<256x128xf32>
      tpu.vector_store %arg5[%c0_12, %c0_13], %13 {strides = array<i32>} : memref<256x128xf32, #tpu.memory_space<vmem>>, vector<256x128xf32>,
    } else {
    }
    return
  }
  func.func @transform_0(%arg0: i32, %arg1: i32, %arg2: i32) -> (i32, i32) {
    %c0_i32 = arith.constant 0 : i32
    return %arg0, %arg2 : i32, i32
  }
  func.func @transform_1(%arg0: i32, %arg1: i32, %arg2: i32) -> (i32, i32) {
    %c0_i32 = arith.constant 0 : i32
    return %arg2, %arg1 : i32, i32
  }
  func.func @transform_2(%arg0: i32, %arg1: i32, %arg2: i32) -> (i32, i32) {
    %c0_i32 = arith.constant 0 : i32
    return %arg0, %arg1 : i32, i32
  }
}

</mosaic_0001>

<bundles_post_ra>
// kernel: generator_forward.20
= control target key start
LH: loop header
LB: loop body
LE: loop exit
PB: predicated region body
PF: predicated region fallthrough
CT: control target
= control target key end

     0   :  { %vm14_vm0 = vcmask 516096   ;;  %vm22_vm1 = vcmask 523264   ;;  %v68_v0 = vmov 0.0   ;;  %s126_s0 = inlined_call_operand.vmem [shape: f32[32,64], index: 0, kind: input, shape index: {}]   ;;  %s127_s1 = inlined_call_operand.vmem [shape: f32[1,64], index: 1, kind: output, shape index: {0}]   ;;  %s128_s2 = inlined_call_operand.vmem [shape: f32[1,64], index: 2, kind: output, shape index: {1}]  }
   0x1   :  { %15 = vst.msk [vmem:[%s127_s1] sm:$0x1] %vm14_vm0, %v68_v0  ;;  %v17_v1 = vld [vmem:[%s126_s0] sm:$0xff]  ;;  %v18_v2 = vld [vmem:[%s126_s0 + $0x8] sm:$0xff]  ;;  %v19_v3 = vld [vmem:[%s126_s0 + $0x10] sm:$0xff] }
   0x2   :  { %16 = vst.msk [vmem:[%s128_s2] sm:$0x1] %vm14_vm0, %v68_v0  ;;  %v20_v4 = vld [vmem:[%s126_s0 + $0x18] sm:$0xff]  ;;  %v23_v5 = vsel %vm22_vm1, %v17_v1, 0.0  ;;  %v24_v6 = vsel %vm22_vm1, %v18_v2, 0.0  ;;  %v26_v7 = vsel %vm22_vm1, %v19_v3, 0.0  ;;  %v40_v8 = vmul.f32 %v17_v1, %v17_v1 }
   0x3   :  { %v25_v9 = vadd.f32 %v24_v6, %v23_v5  ;;  %v41_v10 = vmul.f32 %v18_v2, %v18_v2  ;;  %v42_v11 = vmul.f32 %v19_v3, %v19_v3  ;;  %v28_v12 = vsel %vm22_vm1, %v20_v4, 0.0 }
   0x4   :  { %v43_v13 = vmul.f32 %v20_v4, %v20_v4  ;;  %v44_v14 = vsel %vm22_vm1, %v40_v8, 0.0 }
   0x5   :  { %v27_v15 = vadd.f32 %v26_v7, %v25_v9  ;;  %v45_v16 = vsel %vm22_vm1, %v41_v10, 0.0  ;;  %v47_v17 = vsel %vm22_vm1, %v42_v11, 0.0 }
   0x6   :  { %v46_v18 = vadd.f32 %v45_v16, %v44_v14  ;;  %v49_v20 = vsel %vm22_vm1, %v43_v13, 0.0 }
   0x7   :  { %v29_v19 = vadd.f32 %v28_v12, %v27_v15 }
   0x8   :  { %v48_v21 = vadd.f32 %v47_v17, %v46_v18  ;;  %v21_v31 = vld [vmem:[%s127_s1] sm:$0x1] }
   0x9   :  { %v30_v22 = vrot.slane %v29_v19, 4  ;;  %v39_v36 = vld [vmem:[%s128_s2] sm:$0x1] }
   0xa   :  { %v50_v23 = vadd.f32 %v49_v20, %v48_v21 }
   0xb   :  { %v31_v24 = vadd.f32 %v30_v22, %v29_v19 }
   0xc   :  { %v51_v25 = vrot.slane %v50_v23, 4 }
   0xd   :  { %v32_v26 = vrot.slane %v31_v24, 2 }
   0xe   :  { %v52_v27 = vadd.f32 %v51_v25, %v50_v23 }
   0xf   :  { %v33_v28 = vadd.f32 %v32_v26, %v31_v24 }
  0x10   :  { %v53_v29 = vrot.slane %v52_v27, 2 }
  0x11   :  { %v34_v30 = vrot.slane %v33_v28, 1 }
  0x12   :  { %v54_v32 = vadd.f32 %v53_v29, %v52_v27 }
  0x13   :  { %v35_v33 = vadd.f32 %v34_v30, %v33_v28 }
  0x14   :  { %v55_v34 = vrot.slane %v54_v32, 1 }
  0x15   :  { %v36_v35 = vadd.f32 %v35_v33, %v21_v31 }
  0x16   :  { %v56_v37 = vadd.f32 %v55_v34, %v54_v32 }
  0x17   :  { %38 = vst.msk [vmem:[%s127_s1] sm:$0x1] %vm14_vm0, %v36_v35 }
  0x18   :  { %v57_v38 = vadd.f32 %v56_v37, %v39_v36 }
  0x1a   :  { %58 = vst.msk [vmem:[%s128_s2] sm:$0x1] %vm14_vm0, %v57_v38 }

// kernel: generator_forward.21
= control target key start
LH: loop header
LB: loop body
LE: loop exit
PB: predicated region body
PF: predicated region fallthrough
CT: control target
= control target key end

     0   :  { %vm40_vm0 = vcmask 523264   ;;  %s101_s0 = inlined_call_operand.vmem [shape: f32[32,64], index: 0, kind: input, shape index: {}]   ;;  %s102_s1 = inlined_call_operand.vmem [shape: f32[1,64], index: 1, kind: input, shape index: {}]   ;;  %s103_s2 = inlined_call_operand.vmem [shape: f32[1,64], index: 2, kind: input, shape index: {}]   ;;  %s104_s3 = inlined_call_operand.vmem [shape: f32[32,64], index: 3, kind: output, shape index: {}]  }
   0x1   :  { %v14_v0 = vld [vmem:[%s101_s0] sm:$0xff]  ;;  %v15_v4 = vld [vmem:[%s101_s0 + $0x8] sm:$0xff]  ;;  %v16_v5 = vld [vmem:[%s101_s0 + $0x10] sm:$0xff] }
   0x2   :  { %v49_v1 = vld [vmem:[%s102_s1] ss:$0 sm:$0xff]  ;;  %v17_v6 = vld [vmem:[%s101_s0 + $0x18] sm:$0xff] }
   0x3   :  { %v50_v2 = vld [vmem:[%s103_s2] ss:$0 sm:$0xff]  ;;  %v25_v3 = vmul.f32 %v49_v1, %v14_v0  ;;  %v26_v7 = vmul.f32 %v49_v1, %v15_v4  ;;  %v27_v8 = vmul.f32 %v49_v1, %v16_v5  ;;  %v28_v9 = vmul.f32 %v49_v1, %v17_v6 }
   0x5   :  { %v36_v10 = vadd.f32 %v50_v2, %v25_v3  ;;  %v37_v11 = vadd.f32 %v50_v2, %v26_v7  ;;  %v38_v12 = vadd.f32 %v50_v2, %v27_v8  ;;  %v39_v13 = vadd.f32 %v50_v2, %v28_v9 }
   0x7   :  { %41 = vst.msk [vmem:[%s104_s3] sm:$0xff] %vm40_vm0, %v36_v10  ;;  %42 = vst.msk [vmem:[%s104_s3 + $0x8] sm:$0xff] %vm40_vm0, %v37_v11 }
   0x8   :  { %43 = vst.msk [vmem:[%s104_s3 + $0x10] sm:$0xff] %vm40_vm0, %v38_v12  ;;  %44 = vst.msk [vmem:[%s104_s3 + $0x18] sm:$0xff] %vm40_vm0, %v39_v13 }

// kernel: generator_forward.19
= control target key start
LH: loop header
LB: loop body
LE: loop exit
PB: predicated region body
PF: predicated region fallthrough
CT: control target
= control target key end

     0   :  { %s1140_s9 = smov 0   ;;  %s1142_s10 = smov 0   ;;  %s1384_s0 = inlined_call_operand.vmem [shape: bf16[128,128], index: 0, kind: input, shape index: {}]   ;;  %s1385_s1 = inlined_call_operand.vmem [shape: bf16[128,1024], index: 1, kind: input, shape index: {}]   ;;  %s1386_s2 = inlined_call_operand.vmem [shape: f32[128,1024], index: 2, kind: output, shape index: {}]  }
   0x1   :  { %s1144_s11 = smov 0   ;;  %s1146_s12 = smov 0  }
   0x2   :  { %s1148_s13 = smov 0  }
   0x3 LB: > { %s27_s14 = sadd.s32 1, %s1118_s12  ;;  %s953_s15 = sadd.s32 4294967295, %s1122_s13   ;;  %s1122_s13 = sphi %s1148_s13, %s12_s13   ;;  %s1118_s12 = sphi %s1146_s12, %s1391_s12   ;;  %s1114_s11 = sphi %s1144_s11, %s1390_s11   ;;  %s1110_s10 = sphi %s1142_s10, %s1389_s10   ;;  %s1106_s9 = sphi %s1140_s9, %s1388_s9  }
   0x4   : > { %p29_p0 = scmp.ge.s32.totalorder %s27_s14, 4  ;;  %p75_p1 = scmp.ne.s32.totalorder %s1110_s10, %s1106_s9 }
   0x5   : > { %p76_p2 = scmp.eq.s32.totalorder %s1122_s13, 0  ;;  %p107_p4 = scmp.eq.s32.totalorder %s953_s15, 3 }
   0x6   : > { %s1393_s14 = smov (%p29_p0, %s27_s14), 0  ;;  %s68_s17 = sadd.s32 1, %s1110_s10 }
   0x7   : > { %p77_p3 = por %p76_p2, %p75_p1  ;;  %s64_s16 = ssub.s32 %s1118_s12, %s1393_s14 }
   0x8   : > { %p66_p5 = scmp.eq.s32.totalorder %s64_s16, 0  ;;  %p1175_p6 = por %p107_p4, %p75_p1 }
   0x9   : > { %p957_p7 = scmp.ge.s32.totalorder %s1122_s13, 4 }
   0xa   : > { %s1180_s19 = scalar_select %p66_p5, %s1110_s10, %s68_s17  }
   0xb   : > { %141 = sbr.rel (%p957_p7) target bundleno = 38 (0x26), region = 20 }
  0x12   : > { %144 = sbr.rel (!%p77_p3) target bundleno = 38 (0x26), region = 24  ;;  %s146_s20 = sand.u32 (%p77_p3), 1, %s1110_s10  }
  0x13   : > { %s993_s21 = sshll.u32 (%p77_p3), %s1118_s12, 3  ;;  %s958_s22 = sshll.u32 (%p77_p3), %s146_s20, 7 }
  0x14   : > { %s1188_s25 = scalar_lea.vmem (%p77_p3), %s1385_s1, %s993_s21  ;;  %s148_s26 = scalar_lea.vmem (%p77_p3), [#allocation3], %s958_s22 }
  0x15   : > { %v212_v0 = vld [vmem:[%s1188_s25] sm:$0xff] (%p77_p3) }
  0x16   : > { %v214_v1 = vld [vmem:[%s1188_s25 + $0x20] sm:$0xff] (%p77_p3)  ;;  %213 = vst [vmem:[%s148_s26] sm:$0xff] (%p77_p3), %v212_v0 }
  0x17   : > { %v216_v2 = vld [vmem:[%s1188_s25 + $0x40] sm:$0xff] (%p77_p3)  ;;  %215 = vst [vmem:[%s148_s26 + $0x8] sm:$0xff] (%p77_p3), %v214_v1 }
  0x18   : > { %217 = vst [vmem:[%s148_s26 + $0x10] sm:$0xff] (%p77_p3), %v216_v2  ;;  %v218_v3 = vld [vmem:[%s1188_s25 + $0x60] sm:$0xff] (%p77_p3) }
  0x19   : > { %v220_v4 = vld [vmem:[%s1188_s25 + $0x80] sm:$0xff]  ;;  %219 = vst [vmem:[%s148_s26 + $0x18] sm:$0xff] %v218_v3 }
  0x1a   : > { %v222_v5 = vld [vmem:[%s1188_s25 + $0xa0] sm:$0xff]  ;;  %221 = vst [vmem:[%s148_s26 + $0x20] sm:$0xff] %v220_v4 }
  0x1b   : > { %223 = vst [vmem:[%s148_s26 + $0x28] sm:$0xff] %v222_v5  ;;  %v224_v6 = vld [vmem:[%s1188_s25 + $0xc0] sm:$0xff] }
  0x1c   : > { %v226_v7 = vld [vmem:[%s1188_s25 + $0xe0] sm:$0xff]  ;;  %225 = vst [vmem:[%s148_s26 + $0x30] sm:$0xff] %v224_v6 }
  0x1d   : > { %v228_v8 = vld [vmem:[%s1188_s25 + $0x100] sm:$0xff]  ;;  %227 = vst [vmem:[%s148_s26 + $0x38] sm:$0xff] %v226_v7 }
  0x1e   : > { %229 = vst [vmem:[%s148_s26 + $0x40] sm:$0xff] %v228_v8  ;;  %v230_v9 = vld [vmem:[%s1188_s25 + $0x120] sm:$0xff] }
  0x1f   : > { %v232_v10 = vld [vmem:[%s1188_s25 + $0x140] sm:$0xff]  ;;  %231 = vst [vmem:[%s148_s26 + $0x48] sm:$0xff] %v230_v9 }
  0x20   : > { %v234_v11 = vld [vmem:[%s1188_s25 + $0x160] sm:$0xff]  ;;  %233 = vst [vmem:[%s148_s26 + $0x50] sm:$0xff] %v232_v10 }
  0x21   : > { %235 = vst [vmem:[%s148_s26 + $0x58] sm:$0xff] %v234_v11  ;;  %v236_v12 = vld [vmem:[%s1188_s25 + $0x180] sm:$0xff] }
  0x22   : > { %v238_v13 = vld [vmem:[%s1188_s25 + $0x1a0] sm:$0xff]  ;;  %237 = vst [vmem:[%s148_s26 + $0x60] sm:$0xff] %v236_v12 }
  0x23   : > { %v240_v14 = vld [vmem:[%s1188_s25 + $0x1c0] sm:$0xff]  ;;  %239 = vst [vmem:[%s148_s26 + $0x68] sm:$0xff] %v238_v13 }
  0x24   : > { %241 = vst [vmem:[%s148_s26 + $0x70] sm:$0xff] %v240_v14  ;;  %v242_v15 = vld [vmem:[%s1188_s25 + $0x1e0] sm:$0xff] }
  0x25   : > { %243 = vst [vmem:[%s148_s26 + $0x78] sm:$0xff] %v242_v15 }
  0x26 PF: > { %p961_p8 = scmp.ge.s32.totalorder %s1122_s13, 1  ;;  %p248_p9 = scmp.lt.s32.totalorder %s1122_s13, 5 }
  0x28   : > { %p249_p10 = pnand %p961_p8, %p248_p9 }
  0x29   : > { %s255_s27 = sand.u32 (!%p249_p10), 1, %s1106_s9   ;;  %v1124_v16 = vmov (!%p249_p10), 0   ;;  %v1076_v33 = vld [vmem:[%s1384_s0] sm:$0xff] (!%p249_p10)   ;;  %v1078_v35 = vld [vmem:[%s1384_s0 + $0x8] sm:$0xff] (!%p249_p10)   ;;  %v1080_v37 = vld [vmem:[%s1384_s0 + $0x10] sm:$0xff] (!%p249_p10)  }
  0x2a   : > { %252 = sbr.rel (%p249_p10) target bundleno = 326 (0x146), region = 62  ;;  %s962_s28 = sshll.u32 (!%p249_p10), %s255_s27, 7  ;;  %557 = vmatprep.mubr.bf16.mxu0 (!%p249_p10), %v1124_v16  ;;  %597 = vmatprep.mubr.bf16.mxu1 (!%p249_p10), %v1124_v16  ;;  %v1077_v34 = vld [vmem:[%s1384_s0 + $0x20] sm:$0xff] (!%p249_p10)   ;;  %v1079_v36 = vld [vmem:[%s1384_s0 + $0x28] sm:$0xff] (!%p249_p10)   ;;  %v1081_v38 = vld [vmem:[%s1384_s0 + $0x30] sm:$0xff] (!%p249_p10)  }
  0x2b   : > { %s1213_s29 = scalar_lea.vmem (!%p249_p10), [#allocation3], %s962_s28  ;;  %v1082_v39 = vld [vmem:[%s1384_s0 + $0x18] sm:$0xff] (!%p249_p10)   ;;  %s963_s26 = sshll.u32 (!%p249_p10), %s255_s27, 8 }
  0x2c   : > { %v1052_v17 = vld [vmem:[%s1213_s29 + $0x4] ss:$8 sps:$4 sm:$0xff] (!%p249_p10)   ;;  %v1054_v18 = vld [vmem:[%s1213_s29] ss:$8 sps:$4 sm:$0xff] (!%p249_p10)   ;;  %v1055_v19 = vld [vmem:[%s1213_s29 + $0x14] ss:$8 sps:$4 sm:$0xff] (!%p249_p10)  }
  0x2d   : > { %525 = vmatprep.subr.bf16.mxu0 (!%p249_p10), %v1052_v17  ;;  %995 = vmatprep.subr.bf16.mxu1 (!%p249_p10), %v1052_v17  ;;  %v1057_v20 = vld [vmem:[%s1213_s29 + $0x10] ss:$8 sps:$4 sm:$0xff] (!%p249_p10)   ;;  %v1058_v21 = vld [vmem:[%s1213_s29 + $0x24] ss:$8 sps:$4 sm:$0xff] (!%p249_p10)   ;;  %v1060_v22 = vld [vmem:[%s1213_s29 + $0x20] ss:$8 sps:$4 sm:$0xff] (!%p249_p10)  }
  0x2e   : > { %526 = vmatpush1.bf16.msra.mxu0 (!%p249_p10), %v1054_v18  ;;  %1003 = vmatpush1.bf16.msra.mxu1 (!%p249_p10), %v1054_v18  ;;  %v1061_v23 = vld [vmem:[%s1213_s29 + $0x34] ss:$8 sps:$4 sm:$0xff] (!%p249_p10)   ;;  %v1063_v24 = vld [vmem:[%s1213_s29 + $0x30] ss:$8 sps:$4 sm:$0xff] (!%p249_p10)   ;;  %v1064_v25 = vld [vmem:[%s1213_s29 + $0x44] ss:$8 sps:$4 sm:$0xff] (!%p249_p10)  }
  0x2f   : > { %527 = vmatprep.subr.bf16.mxu0 (!%p249_p10), %v1055_v19  ;;  %996 = vmatprep.subr.bf16.mxu1 (!%p249_p10), %v1055_v19  ;;  %v1066_v26 = vld [vmem:[%s1213_s29 + $0x40] ss:$8 sps:$4 sm:$0xff] (!%p249_p10)   ;;  %v1067_v27 = vld [vmem:[%s1213_s29 + $0x54] ss:$8 sps:$4 sm:$0xff] (!%p249_p10)   ;;  %v1069_v28 = vld [vmem:[%s1213_s29 + $0x50] ss:$8 sps:$4 sm:$0xff] (!%p249_p10)  }
  0x30   : > { %v1070_v29 = vld [vmem:[%s1213_s29 + $0x64] ss:$8 sps:$4 sm:$0xff] (!%p249_p10)   ;;  %v1072_v30 = vld [vmem:[%s1213_s29 + $0x60] ss:$8 sps:$4 sm:$0xff] (!%p249_p10)   ;;  %v1073_v31 = vld [vmem:[%s1213_s29 + $0x74] ss:$8 sps:$4 sm:$0xff] (!%p249_p10)  }
  0x31   : > { %v1075_v32 = vld [vmem:[%s1213_s29 + $0x70] ss:$8 sps:$4 sm:$0xff]   ;;  %s1263_s28 = scalar_lea.vmem [#allocation4], %s963_s26  ;;  %s994_s9 = sshll.u32 (%p1175_p6), %s1114_s11, 4 }
  0x32   : > { %528 = vmatpush1.bf16.msra.mxu0 %v1057_v20  ;;  %1004 = vmatpush1.bf16.msra.mxu1 %v1057_v20  ;;  %v1083_v40 = vld [vmem:[%s1384_s0 + $0x38] sm:$0xff]   ;;  %s1306_s30 = scalar_lea.vmem (%p1175_p6), %s1386_s2, %s994_s9 }
  0x33   : > { %529 = vmatprep.subr.bf16.mxu0 %v1058_v21  ;;  %997 = vmatprep.subr.bf16.mxu1 %v1058_v21 }
  0x36   : > { %530 = vmatpush1.bf16.msra.mxu0 %v1060_v22  ;;  %1005 = vmatpush1.bf16.msra.mxu1 %v1060_v22 }
  0x37   : > { %531 = vmatprep.subr.bf16.mxu0 %v1061_v23  ;;  %998 = vmatprep.subr.bf16.mxu1 %v1061_v23 }
  0x3a   : > { %532 = vmatpush1.bf16.msra.mxu0 %v1063_v24  ;;  %1006 = vmatpush1.bf16.msra.mxu1 %v1063_v24 }
  0x3b   : > { %533 = vmatprep.subr.bf16.mxu0 %v1064_v25  ;;  %999 = vmatprep.subr.bf16.mxu1 %v1064_v25 }
  0x3e   : > { %534 = vmatpush1.bf16.msra.mxu0 %v1066_v26  ;;  %1007 = vmatpush1.bf16.msra.mxu1 %v1066_v26 }
  0x3f   : > { %535 = vmatprep.subr.bf16.mxu0 %v1067_v27  ;;  %1000 = vmatprep.subr.bf16.mxu1 %v1067_v27 }
  0x42   : > { %536 = vmatpush1.bf16.msra.mxu0 %v1069_v28  ;;  %1008 = vmatpush1.bf16.msra.mxu1 %v1069_v28 }
  0x43   : > { %537 = vmatprep.subr.bf16.mxu0 %v1070_v29  ;;  %1001 = vmatprep.subr.bf16.mxu1 %v1070_v29 }
  0x46   : > { %538 = vmatpush1.bf16.msra.mxu0 %v1072_v30  ;;  %1009 = vmatpush1.bf16.msra.mxu1 %v1072_v30 }
  0x47   : > { %539 = vmatprep.subr.bf16.mxu0 %v1073_v31  ;;  %1002 = vmatprep.subr.bf16.mxu1 %v1073_v31 }
  0x4a   : > { %540 = vmatpush1.bf16.msra.mxu0 %v1075_v32  ;;  %1010 = vmatpush1.bf16.msra.mxu1 %v1075_v32 }
  0x4d   : > { %558 = vmatmul.mubr.bf16.vlgmr.msra.gmra.mrb[0].mxu0 %v1076_v33  ;;  %598 = vmatmul.mubr.bf16.vlgmr.msra.gmra.mrb[0].mxu1 %v1077_v34 }
  0x4e   : > { %567 = vmatprep.mubr.bf16.mxu0 %v1124_v16  ;;  %607 = vmatprep.mubr.bf16.mxu1 %v1124_v16 }
  0x55   : > { %568 = vmatmul.mubr.bf16.gmra.mrb[4].mxu0 %v1078_v35  ;;  %608 = vmatmul.mubr.bf16.gmra.mrb[4].mxu1 %v1079_v36 }
  0x56   : > { %577 = vmatprep.mubr.bf16.mxu0 %v1124_v16  ;;  %617 = vmatprep.mubr.bf16.mxu1 %v1124_v16 }
  0x5d   : > { %578 = vmatmul.mubr.bf16.gmra.mrb[8].mxu0 %v1080_v37  ;;  %618 = vmatmul.mubr.bf16.gmra.mrb[8].mxu1 %v1081_v38 }
  0x5e   : > { %587 = vmatprep.mubr.bf16.mxu0 %v1124_v16  ;;  %627 = vmatprep.mubr.bf16.mxu1 %v1124_v16 }
  0x65   : > { %588 = vmatmul.mubr.bf16.gmra.mrb[12].mxu0 %v1082_v39  ;;  %628 = vmatmul.mubr.bf16.gmra.mrb[12].mxu1 %v1083_v40 }
 0x120   : > { %v559_v41 = vpop.f32.mrb[0].mxu0  ;;  %v599_v42 = vpop.f32.mrb[0].mxu1 }
 0x121   : > { %737 = vst [vmem:[%s1263_s28] sm:$0xff] %v559_v41  ;;  %753 = vst [vmem:[%s1263_s28 + $0x80] sm:$0xff] %v599_v42  ;;  %v561_v43 = vpop.f32.mrb[1].mxu0  ;;  %v601_v44 = vpop.f32.mrb[1].mxu1 }
 0x122   : > { %738 = vst [vmem:[%s1263_s28 + $0x8] sm:$0xff] %v561_v43  ;;  %754 = vst [vmem:[%s1263_s28 + $0x88] sm:$0xff] %v601_v44  ;;  %v563_v45 = vpop.f32.mrb[2].mxu0  ;;  %v603_v46 = vpop.f32.mrb[2].mxu1 }
 0x123   : > { %739 = vst [vmem:[%s1263_s28 + $0x10] sm:$0xff] %v563_v45  ;;  %755 = vst [vmem:[%s1263_s28 + $0x90] sm:$0xff] %v603_v46  ;;  %v565_v47 = vpop.f32.mrb[3].mxu0  ;;  %v605_v48 = vpop.f32.mrb[3].mxu1 }
 0x124   : > { %740 = vst [vmem:[%s1263_s28 + $0x18] sm:$0xff] %v565_v47  ;;  %756 = vst [vmem:[%s1263_s28 + $0x98] sm:$0xff] %v605_v48 }
 0x128   : > { %v569_v49 = vpop.f32.mrb[4].mxu0  ;;  %v609_v50 = vpop.f32.mrb[4].mxu1  ;;  %v794_v9 = vld [vmem:[%s1263_s28] sm:$0xff] (%p1175_p6) }
 0x129   : > { %741 = vst [vmem:[%s1263_s28 + $0x20] sm:$0xff] %v569_v49  ;;  %757 = vst [vmem:[%s1263_s28 + $0xa0] sm:$0xff] %v609_v50  ;;  %v571_v51 = vpop.f32.mrb[5].mxu0  ;;  %v611_v52 = vpop.f32.mrb[5].mxu1  ;;  %v796_v10 = vld [vmem:[%s1263_s28 + $0x8] sm:$0xff] (%p1175_p6)  ;;  %v826_v25 = vld [vmem:[%s1263_s28 + $0x80] sm:$0xff] (%p1175_p6) }
 0x12a   : > { %742 = vst [vmem:[%s1263_s28 + $0x28] sm:$0xff] %v571_v51  ;;  %758 = vst [vmem:[%s1263_s28 + $0xa8] sm:$0xff] %v611_v52  ;;  %v573_v53 = vpop.f32.mrb[6].mxu0  ;;  %v613_v54 = vpop.f32.mrb[6].mxu1  ;;  %v798_v11 = vld [vmem:[%s1263_s28 + $0x10] sm:$0xff] (%p1175_p6)  ;;  %v828_v26 = vld [vmem:[%s1263_s28 + $0x88] sm:$0xff] (%p1175_p6) }
 0x12b   : > { %743 = vst [vmem:[%s1263_s28 + $0x30] sm:$0xff] %v573_v53  ;;  %759 = vst [vmem:[%s1263_s28 + $0xb0] sm:$0xff] %v613_v54  ;;  %v575_v55 = vpop.f32.mrb[7].mxu0  ;;  %v615_v56 = vpop.f32.mrb[7].mxu1  ;;  %v800_v12 = vld [vmem:[%s1263_s28 + $0x18] sm:$0xff] (%p1175_p6)  ;;  %v830_v27 = vld [vmem:[%s1263_s28 + $0x90] sm:$0xff] (%p1175_p6) }
 0x12c   : > { %744 = vst [vmem:[%s1263_s28 + $0x38] sm:$0xff] %v575_v55  ;;  %760 = vst [vmem:[%s1263_s28 + $0xb8] sm:$0xff] %v615_v56  ;;  %v832_v28 = vld [vmem:[%s1263_s28 + $0x98] sm:$0xff] (%p1175_p6) }
 0x12d   : > { %795 = vst [vmem:[%s1306_s30] sm:$0xff] (%p1175_p6), %v794_v9  ;;  %797 = vst [vmem:[%s1306_s30 + $0x8] sm:$0xff] (%p1175_p6), %v796_v10 }
 0x12e   : > { %799 = vst [vmem:[%s1306_s30 + $0x40] sm:$0xff] (%p1175_p6), %v798_v11  ;;  %801 = vst [vmem:[%s1306_s30 + $0x48] sm:$0xff] (%p1175_p6), %v800_v12 }
 0x12f   : > { %827 = vst [vmem:[%s1306_s30 + $0x200] sm:$0xff] (%p1175_p6), %v826_v25  ;;  %829 = vst [vmem:[%s1306_s30 + $0x208] sm:$0xff] (%p1175_p6), %v828_v26 }
 0x130   : > { %v579_v57 = vpop.f32.mrb[8].mxu0  ;;  %v619_v58 = vpop.f32.mrb[8].mxu1  ;;  %v802_v13 = vld [vmem:[%s1263_s28 + $0x20] sm:$0xff] (%p1175_p6)  ;;  %831 = vst [vmem:[%s1306_s30 + $0x240] sm:$0xff] (%p1175_p6), %v830_v27  ;;  %833 = vst [vmem:[%s1306_s30 + $0x248] sm:$0xff] (%p1175_p6), %v832_v28 }
 0x131   : > { %745 = vst [vmem:[%s1263_s28 + $0x40] sm:$0xff] %v579_v57  ;;  %761 = vst [vmem:[%s1263_s28 + $0xc0] sm:$0xff] %v619_v58  ;;  %v581_v59 = vpop.f32.mrb[9].mxu0  ;;  %v621_v60 = vpop.f32.mrb[9].mxu1  ;;  %v804_v14 = vld [vmem:[%s1263_s28 + $0x28] sm:$0xff] (%p1175_p6)  ;;  %v834_v29 = vld [vmem:[%s1263_s28 + $0xa0] sm:$0xff] (%p1175_p6) }
 0x132   : > { %746 = vst [vmem:[%s1263_s28 + $0x48] sm:$0xff] %v581_v59  ;;  %762 = vst [vmem:[%s1263_s28 + $0xc8] sm:$0xff] %v621_v60  ;;  %v583_v61 = vpop.f32.mrb[10].mxu0  ;;  %v623_v62 = vpop.f32.mrb[10].mxu1  ;;  %v806_v15 = vld [vmem:[%s1263_s28 + $0x30] sm:$0xff] (%p1175_p6)  ;;  %v836_v30 = vld [vmem:[%s1263_s28 + $0xa8] sm:$0xff] (%p1175_p6) }
 0x133   : > { %747 = vst [vmem:[%s1263_s28 + $0x50] sm:$0xff] %v583_v61  ;;  %763 = vst [vmem:[%s1263_s28 + $0xd0] sm:$0xff] %v623_v62  ;;  %v585_v63 = vpop.f32.mrb[11].mxu0  ;;  %v625_v0 = vpop.f32.mrb[11].mxu1  ;;  %v808_v16 = vld [vmem:[%s1263_s28 + $0x38] sm:$0xff] (%p1175_p6)  ;;  %v838_v31 = vld [vmem:[%s1263_s28 + $0xb0] sm:$0xff] (%p1175_p6) }
 0x134   : > { %748 = vst [vmem:[%s1263_s28 + $0x58] sm:$0xff] %v585_v63  ;;  %764 = vst [vmem:[%s1263_s28 + $0xd8] sm:$0xff] %v625_v0  ;;  %v840_v32 = vld [vmem:[%s1263_s28 + $0xb8] sm:$0xff] (%p1175_p6) }
 0x135   : > { %803 = vst [vmem:[%s1306_s30 + $0x80] sm:$0xff] (%p1175_p6), %v802_v13  ;;  %805 = vst [vmem:[%s1306_s30 + $0x88] sm:$0xff] (%p1175_p6), %v804_v14 }
 0x136   : > { %775 = sbr.rel (!%p1175_p6) target bundleno = 326 (0x146), region = 78  ;;  %807 = vst [vmem:[%s1306_s30 + $0xc0] sm:$0xff] (%p1175_p6), %v806_v15  ;;  %809 = vst [vmem:[%s1306_s30 + $0xc8] sm:$0xff] (%p1175_p6), %v808_v16 }
 0x137   : > { %835 = vst [vmem:[%s1306_s30 + $0x280] sm:$0xff] (%p1175_p6), %v834_v29  ;;  %837 = vst [vmem:[%s1306_s30 + $0x288] sm:$0xff] (%p1175_p6), %v836_v30 }
 0x138   : > { %v589_v1 = vpop.f32.mrb[12].mxu0  ;;  %v629_v2 = vpop.f32.mrb[12].mxu1  ;;  %v810_v17 = vld [vmem:[%s1263_s28 + $0x40] sm:$0xff] (%p1175_p6)  ;;  %839 = vst [vmem:[%s1306_s30 + $0x2c0] sm:$0xff] (%p1175_p6), %v838_v31  ;;  %841 = vst [vmem:[%s1306_s30 + $0x2c8] sm:$0xff] (%p1175_p6), %v840_v32 }
 0x139   : > { %749 = vst [vmem:[%s1263_s28 + $0x60] sm:$0xff] %v589_v1  ;;  %765 = vst [vmem:[%s1263_s28 + $0xe0] sm:$0xff] %v629_v2  ;;  %v591_v3 = vpop.f32.mrb[13].mxu0  ;;  %v631_v4 = vpop.f32.mrb[13].mxu1  ;;  %v812_v18 = vld [vmem:[%s1263_s28 + $0x48] sm:$0xff] (%p1175_p6)  ;;  %v842_v33 = vld [vmem:[%s1263_s28 + $0xc0] sm:$0xff] (%p1175_p6) }
 0x13a   : > { %750 = vst [vmem:[%s1263_s28 + $0x68] sm:$0xff] %v591_v3  ;;  %766 = vst [vmem:[%s1263_s28 + $0xe8] sm:$0xff] %v631_v4  ;;  %v593_v5 = vpop.f32.mrb[14].mxu0  ;;  %v633_v6 = vpop.f32.mrb[14].mxu1  ;;  %v814_v19 = vld [vmem:[%s1263_s28 + $0x50] sm:$0xff] (%p1175_p6)  ;;  %v844_v34 = vld [vmem:[%s1263_s28 + $0xc8] sm:$0xff] (%p1175_p6) }
 0x13b   : > { %751 = vst [vmem:[%s1263_s28 + $0x70] sm:$0xff] %v593_v5  ;;  %767 = vst [vmem:[%s1263_s28 + $0xf0] sm:$0xff] %v633_v6  ;;  %v595_v7 = vpop.f32.mrb[15].mxu0  ;;  %v635_v8 = vpop.f32.mrb[15].mxu1  ;;  %v816_v20 = vld [vmem:[%s1263_s28 + $0x58] sm:$0xff] (%p1175_p6)  ;;  %v846_v35 = vld [vmem:[%s1263_s28 + $0xd0] sm:$0xff] (%p1175_p6) }
 0x13c   : > { %752 = vst [vmem:[%s1263_s28 + $0x78] sm:$0xff] %v595_v7  ;;  %768 = vst [vmem:[%s1263_s28 + $0xf8] sm:$0xff] %v635_v8  ;;  %v848_v36 = vld [vmem:[%s1263_s28 + $0xd8] sm:$0xff] (%p1175_p6) }
 0x13d   : > { %811 = vst [vmem:[%s1306_s30 + $0x100] sm:$0xff] %v810_v17  ;;  %813 = vst [vmem:[%s1306_s30 + $0x108] sm:$0xff] %v812_v18 }
 0x13e   : > { %815 = vst [vmem:[%s1306_s30 + $0x140] sm:$0xff] %v814_v19  ;;  %817 = vst [vmem:[%s1306_s30 + $0x148] sm:$0xff] %v816_v20 }
 0x13f   : > { %843 = vst [vmem:[%s1306_s30 + $0x300] sm:$0xff] %v842_v33  ;;  %845 = vst [vmem:[%s1306_s30 + $0x308] sm:$0xff] %v844_v34 }
 0x140   : > { %v818_v21 = vld [vmem:[%s1263_s28 + $0x60] sm:$0xff]  ;;  %847 = vst [vmem:[%s1306_s30 + $0x340] sm:$0xff] %v846_v35  ;;  %849 = vst [vmem:[%s1306_s30 + $0x348] sm:$0xff] %v848_v36 }
 0x141   : > { %v820_v22 = vld [vmem:[%s1263_s28 + $0x68] sm:$0xff]  ;;  %819 = vst [vmem:[%s1306_s30 + $0x180] sm:$0xff] %v818_v21  ;;  %v850_v37 = vld [vmem:[%s1263_s28 + $0xe0] sm:$0xff] }
 0x142   : > { %v822_v23 = vld [vmem:[%s1263_s28 + $0x70] sm:$0xff]  ;;  %821 = vst [vmem:[%s1306_s30 + $0x188] sm:$0xff] %v820_v22  ;;  %v852_v38 = vld [vmem:[%s1263_s28 + $0xe8] sm:$0xff]  ;;  %851 = vst [vmem:[%s1306_s30 + $0x380] sm:$0xff] %v850_v37 }
 0x143   : > { %823 = vst [vmem:[%s1306_s30 + $0x1c0] sm:$0xff] %v822_v23  ;;  %v824_v24 = vld [vmem:[%s1263_s28 + $0x78] sm:$0xff]  ;;  %853 = vst [vmem:[%s1306_s30 + $0x388] sm:$0xff] %v852_v38  ;;  %v854_v39 = vld [vmem:[%s1263_s28 + $0xf0] sm:$0xff] }
 0x144   : > { %825 = vst [vmem:[%s1306_s30 + $0x1c8] sm:$0xff] %v824_v24  ;;  %v856_v40 = vld [vmem:[%s1263_s28 + $0xf8] sm:$0xff]  ;;  %855 = vst [vmem:[%s1306_s30 + $0x3c0] sm:$0xff] %v854_v39 }
 0x145   : > { %857 = vst [vmem:[%s1306_s30 + $0x3c8] sm:$0xff] %v856_v40 }
 0x146 PF: > { %s12_s13 = sadd.s32 1, %s1122_s13   ;;  %s1388_s9 = smov %s1110_s10 }
 0x147   : > { %p9_p11 = scmp.ge.s32.totalorder %s12_s13, 6   ;;  %s1389_s10 = smov %s1180_s19 }
 0x148   : > { %s1390_s11 = smov %s1118_s12  ;;  %s1391_s12 = smov %s1393_s14 }
 0x149   :  { %11 = sbr.rel (!%p9_p11) target bundleno = 3 (0x3), region = 135 }

// kernel: generator_forward.26
= control target key start
LH: loop header
LB: loop body
LE: loop exit
PB: predicated region body
PF: predicated region fallthrough
CT: control target
= control target key end

     0   :  { %vm14_vm0 = vcmask 253952   ;;  %vm34_vm1 = vcmask 261120   ;;  %v140_v0 = vmov 0.0   ;;  %s258_s0 = inlined_call_operand.vmem [shape: f32[128,32], index: 0, kind: input, shape index: {}]   ;;  %s259_s1 = inlined_call_operand.vmem [shape: f32[1,32], index: 1, kind: output, shape index: {0}]   ;;  %s260_s2 = inlined_call_operand.vmem [shape: f32[1,32], index: 2, kind: output, shape index: {1}]  }
   0x1   :  { %15 = vst.msk [vmem:[%s259_s1] sm:$0x1] %vm14_vm0, %v140_v0  ;;  %v17_v1 = vld [vmem:[%s258_s0] sm:$0xff]  ;;  %v18_v2 = vld [vmem:[%s258_s0 + $0x8] sm:$0xff]  ;;  %v19_v3 = vld [vmem:[%s258_s0 + $0x10] sm:$0xff] }
   0x2   :  { %16 = vst.msk [vmem:[%s260_s2] sm:$0x1] %vm14_vm0, %v140_v0  ;;  %v35_v4 = vsel %vm34_vm1, %v17_v1, 0.0  ;;  %v36_v5 = vsel %vm34_vm1, %v18_v2, 0.0  ;;  %v38_v6 = vsel %vm34_vm1, %v19_v3, 0.0  ;;  %v20_v7 = vld [vmem:[%s258_s0 + $0x18] sm:$0xff]  ;;  %v76_v15 = vmul.f32 %v17_v1, %v17_v1 }
   0x3   :  { %v37_v8 = vadd.f32 %v36_v5, %v35_v4  ;;  %v40_v9 = vsel %vm34_vm1, %v20_v7, 0.0  ;;  %v21_v10 = vld [vmem:[%s258_s0 + $0x20] sm:$0xff]  ;;  %v22_v13 = vld [vmem:[%s258_s0 + $0x28] sm:$0xff]  ;;  %v77_v16 = vmul.f32 %v18_v2, %v18_v2  ;;  %v78_v17 = vmul.f32 %v19_v3, %v19_v3  ;;  %v23_v19 = vld [vmem:[%s258_s0 + $0x30] sm:$0xff] }
   0x4   :  { %v42_v12 = vsel %vm34_vm1, %v21_v10, 0.0  ;;  %v44_v18 = vsel %vm34_vm1, %v22_v13, 0.0  ;;  %v79_v21 = vmul.f32 %v20_v7, %v20_v7  ;;  %v46_v22 = vsel %vm34_vm1, %v23_v19, 0.0  ;;  %v24_v24 = vld [vmem:[%s258_s0 + $0x38] sm:$0xff]  ;;  %v25_v31 = vld [vmem:[%s258_s0 + $0x40] sm:$0xff]  ;;  %v26_v37 = vld [vmem:[%s258_s0 + $0x48] sm:$0xff] }
   0x5   :  { %v39_v11 = vadd.f32 %v38_v6, %v37_v8  ;;  %v80_v23 = vmul.f32 %v21_v10, %v21_v10  ;;  %v92_v26 = vsel %vm34_vm1, %v76_v15, 0.0  ;;  %v93_v27 = vsel %vm34_vm1, %v77_v16, 0.0  ;;  %v27_v43 = vld [vmem:[%s258_s0 + $0x50] sm:$0xff]  ;;  %v28_v49 = vld [vmem:[%s258_s0 + $0x58] sm:$0xff]  ;;  %v29_v55 = vld [vmem:[%s258_s0 + $0x60] sm:$0xff] }
   0x6   :  { %v95_v28 = vsel %vm34_vm1, %v78_v17, 0.0  ;;  %v48_v29 = vsel %vm34_vm1, %v24_v24, 0.0  ;;  %v94_v30 = vadd.f32 %v93_v27, %v92_v26  ;;  %v81_v33 = vmul.f32 %v22_v13, %v22_v13  ;;  %v30_v61 = vld [vmem:[%s258_s0 + $0x68] sm:$0xff]  ;;  %v31_v3 = vld [vmem:[%s258_s0 + $0x70] sm:$0xff] }
   0x7   :  { %v41_v14 = vadd.f32 %v40_v9, %v39_v11  ;;  %v97_v34 = vsel %vm34_vm1, %v79_v21, 0.0  ;;  %v50_v35 = vsel %vm34_vm1, %v25_v31, 0.0  ;;  %v82_v39 = vmul.f32 %v23_v19, %v23_v19  ;;  %v32_v9 = vld [vmem:[%s258_s0 + $0x78] sm:$0xff] }
   0x8   :  { %v96_v36 = vadd.f32 %v95_v28, %v94_v30  ;;  %v99_v40 = vsel %vm34_vm1, %v80_v23, 0.0  ;;  %v52_v41 = vsel %vm34_vm1, %v26_v37, 0.0  ;;  %v83_v45 = vmul.f32 %v24_v24, %v24_v24 }
   0x9   :  { %v43_v20 = vadd.f32 %v42_v12, %v41_v14  ;;  %v101_v46 = vsel %vm34_vm1, %v81_v33, 0.0  ;;  %v54_v47 = vsel %vm34_vm1, %v27_v43, 0.0  ;;  %v84_v51 = vmul.f32 %v25_v31, %v25_v31 }
   0xa   :  { %v98_v42 = vadd.f32 %v97_v34, %v96_v36  ;;  %v103_v52 = vsel %vm34_vm1, %v82_v39, 0.0  ;;  %v56_v53 = vsel %vm34_vm1, %v28_v49, 0.0  ;;  %v85_v57 = vmul.f32 %v26_v37, %v26_v37  ;;  %v33_v36 = vld [vmem:[%s259_s1] sm:$0x1] }
   0xb   :  { %v45_v25 = vadd.f32 %v44_v18, %v43_v20  ;;  %v105_v58 = vsel %vm34_vm1, %v83_v45, 0.0  ;;  %v58_v59 = vsel %vm34_vm1, %v29_v55, 0.0  ;;  %v86_v63 = vmul.f32 %v27_v43, %v27_v43 }
   0xc   :  { %v100_v48 = vadd.f32 %v99_v40, %v98_v42  ;;  %v107_v0 = vsel %vm34_vm1, %v84_v51, 0.0  ;;  %v60_v1 = vsel %vm34_vm1, %v30_v61, 0.0  ;;  %v87_v5 = vmul.f32 %v28_v49, %v28_v49 }
   0xd   :  { %v47_v32 = vadd.f32 %v46_v22, %v45_v25  ;;  %v109_v6 = vsel %vm34_vm1, %v85_v57, 0.0  ;;  %v62_v7 = vsel %vm34_vm1, %v31_v3, 0.0  ;;  %v88_v11 = vmul.f32 %v29_v55, %v29_v55 }
   0xe   :  { %v102_v54 = vadd.f32 %v101_v46, %v100_v48  ;;  %v111_v12 = vsel %vm34_vm1, %v86_v63, 0.0  ;;  %v64_v13 = vsel %vm34_vm1, %v32_v9, 0.0  ;;  %v89_v16 = vmul.f32 %v30_v61, %v30_v61 }
   0xf   :  { %v49_v38 = vadd.f32 %v48_v29, %v47_v32  ;;  %v113_v17 = vsel %vm34_vm1, %v87_v5, 0.0  ;;  %v90_v20 = vmul.f32 %v31_v3, %v31_v3  ;;  %v115_v21 = vsel %vm34_vm1, %v88_v11, 0.0 }
  0x10   :  { %v104_v60 = vadd.f32 %v103_v52, %v102_v54  ;;  %v91_v24 = vmul.f32 %v32_v9, %v32_v9  ;;  %v117_v25 = vsel %vm34_vm1, %v89_v16, 0.0 }
  0x11   :  { %v51_v44 = vadd.f32 %v50_v35, %v49_v38  ;;  %v119_v28 = vsel %vm34_vm1, %v90_v20, 0.0 }
  0x12   :  { %v106_v2 = vadd.f32 %v105_v58, %v104_v60  ;;  %v121_v31 = vsel %vm34_vm1, %v91_v24, 0.0 }
  0x13   :  { %v53_v50 = vadd.f32 %v52_v41, %v51_v44  ;;  %v75_v44 = vld [vmem:[%s260_s2] sm:$0x1] }
  0x14   :  { %v108_v8 = vadd.f32 %v107_v0, %v106_v2 }
  0x15   :  { %v55_v56 = vadd.f32 %v54_v47, %v53_v50 }
  0x16   :  { %v110_v14 = vadd.f32 %v109_v6, %v108_v8 }
  0x17   :  { %v57_v62 = vadd.f32 %v56_v53, %v55_v56 }
  0x18   :  { %v112_v18 = vadd.f32 %v111_v12, %v110_v14 }
  0x19   :  { %v59_v4 = vadd.f32 %v58_v59, %v57_v62 }
  0x1a   :  { %v114_v22 = vadd.f32 %v113_v17, %v112_v18 }
  0x1b   :  { %v61_v10 = vadd.f32 %v60_v1, %v59_v4 }
  0x1c   :  { %v116_v26 = vadd.f32 %v115_v21, %v114_v22 }
  0x1d   :  { %v63_v15 = vadd.f32 %v62_v7, %v61_v10 }
  0x1e   :  { %v118_v29 = vadd.f32 %v117_v25, %v116_v26 }
  0x1f   :  { %v65_v19 = vadd.f32 %v64_v13, %v63_v15 }
  0x20   :  { %v120_v32 = vadd.f32 %v119_v28, %v118_v29 }
  0x21   :  { %v66_v23 = vrot.slane %v65_v19, 4 }
  0x22   :  { %v122_v34 = vadd.f32 %v121_v31, %v120_v32 }
  0x23   :  { %v67_v27 = vadd.f32 %v66_v23, %v65_v19 }
  0x24   :  { %v123_v37 = vrot.slane %v122_v34, 4 }
  0x25   :  { %v68_v30 = vrot.slane %v67_v27, 2 }
  0x26   :  { %v124_v39 = vadd.f32 %v123_v37, %v122_v34 }
  0x27   :  { %v69_v33 = vadd.f32 %v68_v30, %v67_v27 }
  0x28   :  { %v125_v41 = vrot.slane %v124_v39, 2 }
  0x29   :  { %v70_v35 = vrot.slane %v69_v33, 1 }
  0x2a   :  { %v126_v42 = vadd.f32 %v125_v41, %v124_v39 }
  0x2b   :  { %v71_v38 = vadd.f32 %v70_v35, %v69_v33 }
  0x2c   :  { %v127_v43 = vrot.slane %v126_v42, 1 }
  0x2d   :  { %v72_v40 = vadd.f32 %v71_v38, %v33_v36 }
  0x2e   :  { %v128_v45 = vadd.f32 %v127_v43, %v126_v42 }
  0x2f   :  { %74 = vst.msk [vmem:[%s259_s1] sm:$0x1] %vm14_vm0, %v72_v40 }
  0x30   :  { %v129_v46 = vadd.f32 %v128_v45, %v75_v44 }
  0x32   :  { %130 = vst.msk [vmem:[%s260_s2] sm:$0x1] %vm14_vm0, %v129_v46 }

// kernel: generator_forward.22
= control target key start
LH: loop header
LB: loop body
LE: loop exit
PB: predicated region body
PF: predicated region fallthrough
CT: control target
= control target key end

     0   :  { %s751_s1 = inlined_call_operand.vmem [shape: bf16[256,128], index: 1, kind: input, shape index: {}]   ;;  %s752_s0 = inlined_call_operand.vmem [shape: bf16[128,256], index: 0, kind: input, shape index: {}]   ;;  %s753_s2 = inlined_call_operand.vmem [shape: f32[128,128], index: 2, kind: output, shape index: {}]  }
   0x1   :  { %v552_v0 = vld [vmem:[%s751_s1 + $0x40] sm:$0xff]   ;;  %v554_v2 = vld [vmem:[%s751_s1 + $0x48] sm:$0xff]   ;;  %v556_v4 = vld [vmem:[%s751_s1 + $0x50] sm:$0xff]  }
   0x2   :  { %v553_v1 = vld [vmem:[%s751_s1] sm:$0xff]   ;;  %472 = vmatprep.subr.bf16.mxu0 %v552_v0  ;;  %536 = vmatprep.subr.bf16.mxu1 %v552_v0  ;;  %v555_v3 = vld [vmem:[%s751_s1 + $0x8] sm:$0xff]   ;;  %v557_v5 = vld [vmem:[%s751_s1 + $0x10] sm:$0xff]  }
   0x3   :  { %473 = vmatpush3.bf16.msra.mxu0 %v553_v1  ;;  %544 = vmatpush3.bf16.msra.mxu1 %v553_v1  ;;  %v558_v6 = vld [vmem:[%s751_s1 + $0x58] sm:$0xff]   ;;  %v560_v8 = vld [vmem:[%s751_s1 + $0x60] sm:$0xff]   ;;  %v562_v10 = vld [vmem:[%s751_s1 + $0x68] sm:$0xff]  }
   0x4   :  { %474 = vmatprep.subr.bf16.mxu0 %v554_v2  ;;  %537 = vmatprep.subr.bf16.mxu1 %v554_v2  ;;  %v559_v7 = vld [vmem:[%s751_s1 + $0x18] sm:$0xff]   ;;  %v561_v9 = vld [vmem:[%s751_s1 + $0x20] sm:$0xff]   ;;  %v563_v13 = vld [vmem:[%s751_s1 + $0x28] sm:$0xff]  }
   0x5   :  { %v570_v11 = vld [vmem:[%s752_s0 + $0x4] ss:$8 sps:$4 sm:$0xff]   ;;  %v564_v14 = vld [vmem:[%s751_s1 + $0x70] sm:$0xff]   ;;  %v566_v16 = vld [vmem:[%s751_s1 + $0x78] sm:$0xff]  }
   0x6   :  { %v573_v12 = vld [vmem:[%s752_s0 + $0x44] ss:$8 sps:$4 sm:$0xff]   ;;  %304 = vmatprep.mubr.bf16.mxu0 %v570_v11  ;;  %v565_v15 = vld [vmem:[%s751_s1 + $0x30] sm:$0xff]   ;;  %v567_v17 = vld [vmem:[%s751_s1 + $0x38] sm:$0xff]  }
   0x7   :  { %475 = vmatpush3.bf16.msra.mxu0 %v555_v3  ;;  %545 = vmatpush3.bf16.msra.mxu1 %v555_v3  ;;  %v568_v18 = vld [vmem:[%s752_s0] ss:$8 sps:$4 sm:$0xff]   ;;  %v574_v20 = vld [vmem:[%s752_s0 + $0x14] ss:$8 sps:$4 sm:$0xff]   ;;  %v578_v22 = vld [vmem:[%s752_s0 + $0x10] ss:$8 sps:$4 sm:$0xff]  }
   0x8   :  { %476 = vmatprep.subr.bf16.mxu0 %v556_v4  ;;  %538 = vmatprep.subr.bf16.mxu1 %v556_v4  ;;  %v571_v19 = vld [vmem:[%s752_s0 + $0x40] ss:$8 sps:$4 sm:$0xff]   ;;  %v576_v21 = vld [vmem:[%s752_s0 + $0x54] ss:$8 sps:$4 sm:$0xff]   ;;  %v579_v23 = vld [vmem:[%s752_s0 + $0x50] ss:$8 sps:$4 sm:$0xff]  }
   0x9   :  { %336 = vmatprep.mubr.bf16.mxu1 %v573_v12  ;;  %v580_v24 = vld [vmem:[%s752_s0 + $0x24] ss:$8 sps:$4 sm:$0xff]   ;;  %v584_v26 = vld [vmem:[%s752_s0 + $0x20] ss:$8 sps:$4 sm:$0xff]   ;;  %v586_v28 = vld [vmem:[%s752_s0 + $0x34] ss:$8 sps:$4 sm:$0xff]  }
   0xa   :  { %v582_v25 = vld [vmem:[%s752_s0 + $0x64] ss:$8 sps:$4 sm:$0xff]   ;;  %v585_v27 = vld [vmem:[%s752_s0 + $0x60] ss:$8 sps:$4 sm:$0xff]   ;;  %v588_v29 = vld [vmem:[%s752_s0 + $0x74] ss:$8 sps:$4 sm:$0xff]  }
   0xb   :  { %477 = vmatpush3.bf16.msra.mxu0 %v557_v5  ;;  %546 = vmatpush3.bf16.msra.mxu1 %v557_v5  ;;  %v590_v30 = vld [vmem:[%s752_s0 + $0x30] ss:$8 sps:$4 sm:$0xff]  }
   0xc   :  { %478 = vmatprep.subr.bf16.mxu0 %v558_v6  ;;  %539 = vmatprep.subr.bf16.mxu1 %v558_v6  ;;  %v591_v31 = vld [vmem:[%s752_s0 + $0x70] ss:$8 sps:$4 sm:$0xff]  }
   0xf   :  { %479 = vmatpush3.bf16.msra.mxu0 %v559_v7  ;;  %547 = vmatpush3.bf16.msra.mxu1 %v559_v7 }
  0x10   :  { %480 = vmatprep.subr.bf16.mxu0 %v560_v8  ;;  %540 = vmatprep.subr.bf16.mxu1 %v560_v8 }
  0x13   :  { %481 = vmatpush3.bf16.msra.mxu0 %v561_v9  ;;  %548 = vmatpush3.bf16.msra.mxu1 %v561_v9 }
  0x14   :  { %482 = vmatprep.subr.bf16.mxu0 %v562_v10  ;;  %541 = vmatprep.subr.bf16.mxu1 %v562_v10 }
  0x17   :  { %483 = vmatpush3.bf16.msra.mxu0 %v563_v13  ;;  %549 = vmatpush3.bf16.msra.mxu1 %v563_v13 }
  0x18   :  { %484 = vmatprep.subr.bf16.mxu0 %v564_v14  ;;  %542 = vmatprep.subr.bf16.mxu1 %v564_v14 }
  0x1b   :  { %485 = vmatpush3.bf16.msra.mxu0 %v565_v15  ;;  %550 = vmatpush3.bf16.msra.mxu1 %v565_v15 }
  0x1c   :  { %486 = vmatprep.subr.bf16.mxu0 %v566_v16  ;;  %543 = vmatprep.subr.bf16.mxu1 %v566_v16 }
  0x1f   :  { %487 = vmatpush3.bf16.msra.mxu0 %v567_v17  ;;  %551 = vmatpush3.bf16.msra.mxu1 %v567_v17 }
  0x22   :  { %305 = vmatmul.mubr.bf16.vlgmr.msra.gmra.mrb[0].mxu0 %v568_v18  ;;  %337 = vmatmul.mubr.bf16.vlgmr.msra.gmra.mrb[0].mxu1 %v571_v19 }
  0x23   :  { %312 = vmatprep.mubr.bf16.mxu0 %v574_v20  ;;  %344 = vmatprep.mubr.bf16.mxu1 %v576_v21 }
  0x2a   :  { %313 = vmatmul.mubr.bf16.gmra.mrb[4].mxu0 %v578_v22  ;;  %345 = vmatmul.mubr.bf16.gmra.mrb[4].mxu1 %v579_v23 }
  0x2b   :  { %320 = vmatprep.mubr.bf16.mxu0 %v580_v24  ;;  %352 = vmatprep.mubr.bf16.mxu1 %v582_v25 }
  0x32   :  { %321 = vmatmul.mubr.bf16.gmra.mrb[8].mxu0 %v584_v26  ;;  %353 = vmatmul.mubr.bf16.gmra.mrb[8].mxu1 %v585_v27 }
  0x33   :  { %328 = vmatprep.mubr.bf16.mxu0 %v586_v28  ;;  %360 = vmatprep.mubr.bf16.mxu1 %v588_v29 }
  0x3a   :  { %329 = vmatmul.mubr.bf16.gmra.mrb[12].mxu0 %v590_v30  ;;  %361 = vmatmul.mubr.bf16.gmra.mrb[12].mxu1 %v591_v31 }
  0xf5   :  { %v488_v32 = vpop.f32.mrb[0].mxu0  ;;  %v512_v33 = vpop.f32.mrb[0].mxu1 }
  0xf6   :  { %v489_v34 = vpop.f32.mrb[1].mxu0  ;;  %v513_v35 = vpop.f32.mrb[1].mxu1 }
  0xf7   :  { %v490_v36 = vadd.f32 %v489_v34, %v488_v32  ;;  %v514_v37 = vadd.f32 %v513_v35, %v512_v33  ;;  %v491_v38 = vpop.f32.mrb[2].mxu0  ;;  %v515_v39 = vpop.f32.mrb[2].mxu1 }
  0xf8   :  { %v492_v40 = vpop.f32.mrb[3].mxu0  ;;  %v516_v41 = vpop.f32.mrb[3].mxu1 }
  0xf9   :  { %420 = vst [vmem:[%s753_s2] sm:$0xff] %v490_v36  ;;  %428 = vst [vmem:[%s753_s2 + $0x40] sm:$0xff] %v514_v37  ;;  %v493_v42 = vadd.f32 %v492_v40, %v491_v38  ;;  %v517_v43 = vadd.f32 %v516_v41, %v515_v39 }
  0xfb   :  { %421 = vst [vmem:[%s753_s2 + $0x8] sm:$0xff] %v493_v42  ;;  %429 = vst [vmem:[%s753_s2 + $0x48] sm:$0xff] %v517_v43 }
  0xfd   :  { %v494_v44 = vpop.f32.mrb[4].mxu0  ;;  %v518_v45 = vpop.f32.mrb[4].mxu1 }
  0xfe   :  { %v495_v46 = vpop.f32.mrb[5].mxu0  ;;  %v519_v47 = vpop.f32.mrb[5].mxu1 }
  0xff   :  { %v496_v48 = vadd.f32 %v495_v46, %v494_v44  ;;  %v520_v49 = vadd.f32 %v519_v47, %v518_v45  ;;  %v497_v50 = vpop.f32.mrb[6].mxu0  ;;  %v521_v51 = vpop.f32.mrb[6].mxu1 }
 0x100   :  { %v498_v52 = vpop.f32.mrb[7].mxu0  ;;  %v522_v53 = vpop.f32.mrb[7].mxu1 }
 0x101   :  { %422 = vst [vmem:[%s753_s2 + $0x10] sm:$0xff] %v496_v48  ;;  %430 = vst [vmem:[%s753_s2 + $0x50] sm:$0xff] %v520_v49  ;;  %v499_v54 = vadd.f32 %v498_v52, %v497_v50  ;;  %v523_v55 = vadd.f32 %v522_v53, %v521_v51 }
 0x103   :  { %423 = vst [vmem:[%s753_s2 + $0x18] sm:$0xff] %v499_v54  ;;  %431 = vst [vmem:[%s753_s2 + $0x58] sm:$0xff] %v523_v55 }
 0x105   :  { %v500_v56 = vpop.f32.mrb[8].mxu0  ;;  %v524_v57 = vpop.f32.mrb[8].mxu1 }
 0x106   :  { %v501_v58 = vpop.f32.mrb[9].mxu0  ;;  %v525_v59 = vpop.f32.mrb[9].mxu1 }
 0x107   :  { %v502_v60 = vadd.f32 %v501_v58, %v500_v56  ;;  %v526_v61 = vadd.f32 %v525_v59, %v524_v57  ;;  %v503_v62 = vpop.f32.mrb[10].mxu0  ;;  %v527_v63 = vpop.f32.mrb[10].mxu1 }
 0x108   :  { %v504_v0 = vpop.f32.mrb[11].mxu0  ;;  %v528_v1 = vpop.f32.mrb[11].mxu1 }
 0x109   :  { %424 = vst [vmem:[%s753_s2 + $0x20] sm:$0xff] %v502_v60  ;;  %432 = vst [vmem:[%s753_s2 + $0x60] sm:$0xff] %v526_v61  ;;  %v505_v2 = vadd.f32 %v504_v0, %v503_v62  ;;  %v529_v3 = vadd.f32 %v528_v1, %v527_v63 }
 0x10b   :  { %425 = vst [vmem:[%s753_s2 + $0x28] sm:$0xff] %v505_v2  ;;  %433 = vst [vmem:[%s753_s2 + $0x68] sm:$0xff] %v529_v3 }
 0x10d   :  { %v506_v4 = vpop.f32.mrb[12].mxu0  ;;  %v530_v5 = vpop.f32.mrb[12].mxu1 }
 0x10e   :  { %v507_v6 = vpop.f32.mrb[13].mxu0  ;;  %v531_v7 = vpop.f32.mrb[13].mxu1 }
 0x10f   :  { %v508_v8 = vadd.f32 %v507_v6, %v506_v4  ;;  %v532_v9 = vadd.f32 %v531_v7, %v530_v5  ;;  %v509_v10 = vpop.f32.mrb[14].mxu0  ;;  %v533_v11 = vpop.f32.mrb[14].mxu1 }
 0x110   :  { %v510_v12 = vpop.f32.mrb[15].mxu0  ;;  %v534_v13 = vpop.f32.mrb[15].mxu1 }
 0x111   :  { %426 = vst [vmem:[%s753_s2 + $0x30] sm:$0xff] %v508_v8  ;;  %434 = vst [vmem:[%s753_s2 + $0x70] sm:$0xff] %v532_v9  ;;  %v511_v14 = vadd.f32 %v510_v12, %v509_v10  ;;  %v535_v15 = vadd.f32 %v534_v13, %v533_v11 }
 0x113   :  { %427 = vst [vmem:[%s753_s2 + $0x38] sm:$0xff] %v511_v14  ;;  %435 = vst [vmem:[%s753_s2 + $0x78] sm:$0xff] %v535_v15 }

// kernel: generator_forward.27
= control target key start
LH: loop header
LB: loop body
LE: loop exit
PB: predicated region body
PF: predicated region fallthrough
CT: control target
= control target key end

     0   :  { %vm76_vm0 = vcmask 261120   ;;  %s237_s0 = inlined_call_operand.vmem [shape: f32[128,32], index: 0, kind: input, shape index: {}]   ;;  %s238_s1 = inlined_call_operand.vmem [shape: f32[1,32], index: 1, kind: input, shape index: {}]   ;;  %s239_s2 = inlined_call_operand.vmem [shape: f32[1,32], index: 2, kind: input, shape index: {}]   ;;  %s240_s3 = inlined_call_operand.vmem [shape: f32[128,32], index: 3, kind: output, shape index: {}]  }
   0x1   :  { %v14_v0 = vld [vmem:[%s237_s0] sm:$0xff]  ;;  %v15_v4 = vld [vmem:[%s237_s0 + $0x8] sm:$0xff]  ;;  %v16_v5 = vld [vmem:[%s237_s0 + $0x10] sm:$0xff] }
   0x2   :  { %v97_v1 = vld [vmem:[%s238_s1] ss:$0 sm:$0xff]  ;;  %v17_v6 = vld [vmem:[%s237_s0 + $0x18] sm:$0xff]  ;;  %v19_v11 = vld [vmem:[%s237_s0 + $0x28] sm:$0xff] }
   0x3   :  { %v98_v2 = vld [vmem:[%s239_s2] ss:$0 sm:$0xff]  ;;  %v37_v3 = vmul.f32 %v97_v1, %v14_v0  ;;  %v38_v7 = vmul.f32 %v97_v1, %v15_v4  ;;  %v39_v8 = vmul.f32 %v97_v1, %v16_v5  ;;  %v40_v9 = vmul.f32 %v97_v1, %v17_v6  ;;  %v20_v12 = vld [vmem:[%s237_s0 + $0x30] sm:$0xff]  ;;  %v21_v17 = vld [vmem:[%s237_s0 + $0x38] sm:$0xff] }
   0x4   :  { %v18_v10 = vld [vmem:[%s237_s0 + $0x20] sm:$0xff]  ;;  %v42_v15 = vmul.f32 %v97_v1, %v19_v11  ;;  %v43_v16 = vmul.f32 %v97_v1, %v20_v12  ;;  %v23_v19 = vld [vmem:[%s237_s0 + $0x48] sm:$0xff]  ;;  %v44_v23 = vmul.f32 %v97_v1, %v21_v17  ;;  %v24_v24 = vld [vmem:[%s237_s0 + $0x50] sm:$0xff] }
   0x5   :  { %v60_v13 = vadd.f32 %v98_v2, %v37_v3  ;;  %v41_v14 = vmul.f32 %v97_v1, %v18_v10  ;;  %v22_v18 = vld [vmem:[%s237_s0 + $0x40] sm:$0xff]  ;;  %v61_v20 = vadd.f32 %v98_v2, %v38_v7  ;;  %v62_v21 = vadd.f32 %v98_v2, %v39_v8  ;;  %v25_v25 = vld [vmem:[%s237_s0 + $0x58] sm:$0xff]  ;;  %v27_v31 = vld [vmem:[%s237_s0 + $0x68] sm:$0xff] }
   0x6   :  { %v63_v22 = vadd.f32 %v98_v2, %v40_v9  ;;  %v26_v26 = vld [vmem:[%s237_s0 + $0x60] sm:$0xff]  ;;  %v65_v28 = vadd.f32 %v98_v2, %v42_v15  ;;  %v66_v29 = vadd.f32 %v98_v2, %v43_v16  ;;  %v45_v30 = vmul.f32 %v97_v1, %v22_v18  ;;  %v28_v32 = vld [vmem:[%s237_s0 + $0x70] sm:$0xff]  ;;  %v29_v33 = vld [vmem:[%s237_s0 + $0x78] sm:$0xff] }
   0x7   :  { %77 = vst.msk [vmem:[%s240_s3] sm:$0xff] %vm76_vm0, %v60_v13  ;;  %v64_v27 = vadd.f32 %v98_v2, %v41_v14  ;;  %78 = vst.msk [vmem:[%s240_s3 + $0x8] sm:$0xff] %vm76_vm0, %v61_v20  ;;  %v67_v34 = vadd.f32 %v98_v2, %v44_v23  ;;  %v46_v35 = vmul.f32 %v97_v1, %v23_v19 }
   0x8   :  { %79 = vst.msk [vmem:[%s240_s3 + $0x10] sm:$0xff] %vm76_vm0, %v62_v21  ;;  %80 = vst.msk [vmem:[%s240_s3 + $0x18] sm:$0xff] %vm76_vm0, %v63_v22  ;;  %v47_v36 = vmul.f32 %v97_v1, %v24_v24  ;;  %v48_v37 = vmul.f32 %v97_v1, %v25_v25  ;;  %v68_v38 = vadd.f32 %v98_v2, %v45_v30 }
   0x9   :  { %81 = vst.msk [vmem:[%s240_s3 + $0x20] sm:$0xff] %vm76_vm0, %v64_v27  ;;  %82 = vst.msk [vmem:[%s240_s3 + $0x28] sm:$0xff] %vm76_vm0, %v65_v28  ;;  %v49_v39 = vmul.f32 %v97_v1, %v26_v26  ;;  %v50_v40 = vmul.f32 %v97_v1, %v27_v31  ;;  %v51_v41 = vmul.f32 %v97_v1, %v28_v32 }
   0xa   :  { %83 = vst.msk [vmem:[%s240_s3 + $0x30] sm:$0xff] %vm76_vm0, %v66_v29  ;;  %84 = vst.msk [vmem:[%s240_s3 + $0x38] sm:$0xff] %vm76_vm0, %v67_v34  ;;  %v69_v42 = vadd.f32 %v98_v2, %v46_v35  ;;  %v70_v43 = vadd.f32 %v98_v2, %v47_v36  ;;  %v71_v44 = vadd.f32 %v98_v2, %v48_v37 }
   0xb   :  { %v52_v45 = vmul.f32 %v97_v1, %v29_v33  ;;  %85 = vst.msk [vmem:[%s240_s3 + $0x40] sm:$0xff] %vm76_vm0, %v68_v38  ;;  %v72_v46 = vadd.f32 %v98_v2, %v49_v39  ;;  %v73_v47 = vadd.f32 %v98_v2, %v50_v40  ;;  %v74_v48 = vadd.f32 %v98_v2, %v51_v41 }
   0xc   :  { %86 = vst.msk [vmem:[%s240_s3 + $0x48] sm:$0xff] %vm76_vm0, %v69_v42  ;;  %87 = vst.msk [vmem:[%s240_s3 + $0x50] sm:$0xff] %vm76_vm0, %v70_v43 }
   0xd   :  { %88 = vst.msk [vmem:[%s240_s3 + $0x58] sm:$0xff] %vm76_vm0, %v71_v44  ;;  %v75_v49 = vadd.f32 %v98_v2, %v52_v45  ;;  %89 = vst.msk [vmem:[%s240_s3 + $0x60] sm:$0xff] %vm76_vm0, %v72_v46 }
   0xe   :  { %90 = vst.msk [vmem:[%s240_s3 + $0x68] sm:$0xff] %vm76_vm0, %v73_v47  ;;  %91 = vst.msk [vmem:[%s240_s3 + $0x70] sm:$0xff] %vm76_vm0, %v74_v48 }
   0xf   :  { %92 = vst.msk [vmem:[%s240_s3 + $0x78] sm:$0xff] %vm76_vm0, %v75_v49 }

// kernel: generator_forward.28
= control target key start
LH: loop header
LB: loop body
LE: loop exit
PB: predicated region body
PF: predicated region fallthrough
CT: control target
= control target key end

     0   :  { %s551_s1 = inlined_call_operand.vmem [shape: bf16[128,128], index: 1, kind: input, shape index: {}]   ;;  %s552_s0 = inlined_call_operand.vmem [shape: bf16[128,128], index: 0, kind: input, shape index: {}]   ;;  %s553_s2 = inlined_call_operand.vmem [shape: f32[128,128], index: 2, kind: output, shape index: {}]  }
   0x1   :  { %v424_v0 = vld [vmem:[%s551_s1] sm:$0xff]   ;;  %v425_v1 = vld [vmem:[%s551_s1 + $0x8] sm:$0xff]   ;;  %v426_v2 = vld [vmem:[%s551_s1 + $0x10] sm:$0xff]  }
   0x2   :  { %376 = vmatprep.subr.bf16.mxu0 %v424_v0  ;;  %408 = vmatprep.subr.bf16.mxu1 %v424_v0  ;;  %v427_v3 = vld [vmem:[%s551_s1 + $0x18] sm:$0xff]   ;;  %v432_v4 = vld [vmem:[%s552_s0] sm:$0xff]   ;;  %v429_v7 = vld [vmem:[%s551_s1 + $0x28] sm:$0xff]  }
   0x3   :  { %377 = vmatpush3.bf16.msra.mxu0 %v424_v0  ;;  %416 = vmatpush3.bf16.msra.mxu1 %v424_v0  ;;  %v433_v5 = vld [vmem:[%s552_s0 + $0x20] sm:$0xff]   ;;  %v430_v8 = vld [vmem:[%s551_s1 + $0x30] sm:$0xff]   ;;  %v431_v9 = vld [vmem:[%s551_s1 + $0x38] sm:$0xff]  }
   0x4   :  { %378 = vmatprep.subr.bf16.mxu0 %v425_v1  ;;  %409 = vmatprep.subr.bf16.mxu1 %v425_v1  ;;  %v428_v6 = vld [vmem:[%s551_s1 + $0x20] sm:$0xff]   ;;  %v434_v10 = vld [vmem:[%s552_s0 + $0x8] sm:$0xff]   ;;  %v436_v12 = vld [vmem:[%s552_s0 + $0x10] sm:$0xff]  }
   0x5   :  { %392 = vmatprep.mubr.bf16.mxu0 %v432_v4  ;;  %400 = vmatprep.mubr.bf16.mxu1 %v433_v5  ;;  %v435_v11 = vld [vmem:[%s552_s0 + $0x28] sm:$0xff]   ;;  %v437_v13 = vld [vmem:[%s552_s0 + $0x30] sm:$0xff]   ;;  %v438_v14 = vld [vmem:[%s552_s0 + $0x18] sm:$0xff]  }
   0x6   :  { %v439_v15 = vld [vmem:[%s552_s0 + $0x38] sm:$0xff]  }
   0x7   :  { %379 = vmatpush3.bf16.msra.mxu0 %v425_v1  ;;  %417 = vmatpush3.bf16.msra.mxu1 %v425_v1 }
   0x8   :  { %380 = vmatprep.subr.bf16.mxu0 %v426_v2  ;;  %410 = vmatprep.subr.bf16.mxu1 %v426_v2 }
   0xb   :  { %381 = vmatpush3.bf16.msra.mxu0 %v426_v2  ;;  %418 = vmatpush3.bf16.msra.mxu1 %v426_v2 }
   0xc   :  { %382 = vmatprep.subr.bf16.mxu0 %v427_v3  ;;  %411 = vmatprep.subr.bf16.mxu1 %v427_v3 }
   0xf   :  { %383 = vmatpush3.bf16.msra.mxu0 %v427_v3  ;;  %419 = vmatpush3.bf16.msra.mxu1 %v427_v3 }
  0x10   :  { %384 = vmatprep.subr.bf16.mxu0 %v428_v6  ;;  %412 = vmatprep.subr.bf16.mxu1 %v428_v6 }
  0x13   :  { %385 = vmatpush3.bf16.msra.mxu0 %v428_v6  ;;  %420 = vmatpush3.bf16.msra.mxu1 %v428_v6 }
  0x14   :  { %386 = vmatprep.subr.bf16.mxu0 %v429_v7  ;;  %413 = vmatprep.subr.bf16.mxu1 %v429_v7 }
  0x17   :  { %387 = vmatpush3.bf16.msra.mxu0 %v429_v7  ;;  %421 = vmatpush3.bf16.msra.mxu1 %v429_v7 }
  0x18   :  { %388 = vmatprep.subr.bf16.mxu0 %v430_v8  ;;  %414 = vmatprep.subr.bf16.mxu1 %v430_v8 }
  0x1b   :  { %389 = vmatpush3.bf16.msra.mxu0 %v430_v8  ;;  %422 = vmatpush3.bf16.msra.mxu1 %v430_v8 }
  0x1c   :  { %390 = vmatprep.subr.bf16.mxu0 %v431_v9  ;;  %415 = vmatprep.subr.bf16.mxu1 %v431_v9 }
  0x1f   :  { %391 = vmatpush3.bf16.msra.mxu0 %v431_v9  ;;  %423 = vmatpush3.bf16.msra.mxu1 %v431_v9 }
  0x22   :  { %393 = vmatmul.mubr.bf16.vlgmr.msra.gmra.mrb[0].mxu0 %v434_v10  ;;  %401 = vmatmul.mubr.bf16.vlgmr.msra.gmra.mrb[0].mxu1 %v435_v11 }
  0x23   :  { %396 = vmatprep.mubr.bf16.mxu0 %v436_v12  ;;  %404 = vmatprep.mubr.bf16.mxu1 %v437_v13 }
  0x2a   :  { %397 = vmatmul.mubr.bf16.gmra.mrb[4].mxu0 %v438_v14  ;;  %405 = vmatmul.mubr.bf16.gmra.mrb[4].mxu1 %v439_v15 }
  0xf5   :  { %v394_v16 = vpop.f32.mrb[0].mxu0  ;;  %v402_v17 = vpop.f32.mrb[0].mxu1 }
  0xf6   :  { %326 = vst [vmem:[%s553_s2 + $0x10] sm:$0xff] %v394_v16  ;;  %334 = vst [vmem:[%s553_s2 + $0x50] sm:$0xff] %v402_v17  ;;  %v210_v18 = vpop.f32.mrb[1].mxu0  ;;  %v242_v19 = vpop.f32.mrb[1].mxu1 }
  0xf7   :  { %324 = vst [vmem:[%s553_s2] sm:$0xff] %v210_v18  ;;  %332 = vst [vmem:[%s553_s2 + $0x40] sm:$0xff] %v242_v19  ;;  %v395_v20 = vpop.f32.mrb[2].mxu0  ;;  %v403_v21 = vpop.f32.mrb[2].mxu1 }
  0xf8   :  { %327 = vst [vmem:[%s553_s2 + $0x18] sm:$0xff] %v395_v20  ;;  %335 = vst [vmem:[%s553_s2 + $0x58] sm:$0xff] %v403_v21  ;;  %v213_v22 = vpop.f32.mrb[3].mxu0  ;;  %v245_v23 = vpop.f32.mrb[3].mxu1 }
  0xf9   :  { %325 = vst [vmem:[%s553_s2 + $0x8] sm:$0xff] %v213_v22  ;;  %333 = vst [vmem:[%s553_s2 + $0x48] sm:$0xff] %v245_v23 }
  0xfd   :  { %v398_v24 = vpop.f32.mrb[4].mxu0  ;;  %v406_v25 = vpop.f32.mrb[4].mxu1 }
  0xfe   :  { %330 = vst [vmem:[%s553_s2 + $0x30] sm:$0xff] %v398_v24  ;;  %338 = vst [vmem:[%s553_s2 + $0x70] sm:$0xff] %v406_v25  ;;  %v226_v26 = vpop.f32.mrb[5].mxu0  ;;  %v258_v27 = vpop.f32.mrb[5].mxu1 }
  0xff   :  { %328 = vst [vmem:[%s553_s2 + $0x20] sm:$0xff] %v226_v26  ;;  %336 = vst [vmem:[%s553_s2 + $0x60] sm:$0xff] %v258_v27  ;;  %v399_v28 = vpop.f32.mrb[6].mxu0  ;;  %v407_v29 = vpop.f32.mrb[6].mxu1 }
 0x100   :  { %331 = vst [vmem:[%s553_s2 + $0x38] sm:$0xff] %v399_v28  ;;  %339 = vst [vmem:[%s553_s2 + $0x78] sm:$0xff] %v407_v29  ;;  %v229_v30 = vpop.f32.mrb[7].mxu0  ;;  %v261_v31 = vpop.f32.mrb[7].mxu1 }
 0x101   :  { %329 = vst [vmem:[%s553_s2 + $0x28] sm:$0xff] %v229_v30  ;;  %337 = vst [vmem:[%s553_s2 + $0x68] sm:$0xff] %v261_v31 }

// kernel: generator_forward.33
= control target key start
LH: loop header
LB: loop body
LE: loop exit
PB: predicated region body
PF: predicated region fallthrough
CT: control target
= control target key end

     0   :  { %vm220_vm0 = vcmask 130048   ;;  %s897_s0 = inlined_call_operand.vmem [shape: f32[512,16], index: 0, kind: input, shape index: {}]   ;;  %s898_s1 = inlined_call_operand.vmem [shape: f32[1,16], index: 1, kind: input, shape index: {}]   ;;  %s899_s2 = inlined_call_operand.vmem [shape: f32[1,16], index: 2, kind: input, shape index: {}]   ;;  %s900_s3 = inlined_call_operand.vmem [shape: f32[512,16], index: 3, kind: output, shape index: {}]  }
   0x1   :  { %v14_v0 = vld [vmem:[%s897_s0] sm:$0xff]  ;;  %v15_v4 = vld [vmem:[%s897_s0 + $0x8] sm:$0xff]  ;;  %v16_v5 = vld [vmem:[%s897_s0 + $0x10] sm:$0xff] }
   0x2   :  { %v317_v1 = vld [vmem:[%s898_s1] ss:$0 sm:$0xff]  ;;  %v17_v6 = vld [vmem:[%s897_s0 + $0x18] sm:$0xff]  ;;  %v19_v11 = vld [vmem:[%s897_s0 + $0x28] sm:$0xff] }
   0x3   :  { %v322_v2 = vld [vmem:[%s899_s2] ss:$0 sm:$0xff]  ;;  %v85_v3 = vmul.f32 %v317_v1, %v14_v0  ;;  %v86_v7 = vmul.f32 %v317_v1, %v15_v4  ;;  %v87_v8 = vmul.f32 %v317_v1, %v16_v5  ;;  %v88_v9 = vmul.f32 %v317_v1, %v17_v6  ;;  %v20_v12 = vld [vmem:[%s897_s0 + $0x30] sm:$0xff]  ;;  %v21_v17 = vld [vmem:[%s897_s0 + $0x38] sm:$0xff] }
   0x4   :  { %v18_v10 = vld [vmem:[%s897_s0 + $0x20] sm:$0xff]  ;;  %v90_v15 = vmul.f32 %v317_v1, %v19_v11  ;;  %v91_v16 = vmul.f32 %v317_v1, %v20_v12  ;;  %v23_v19 = vld [vmem:[%s897_s0 + $0x48] sm:$0xff]  ;;  %v92_v23 = vmul.f32 %v317_v1, %v21_v17  ;;  %v24_v24 = vld [vmem:[%s897_s0 + $0x50] sm:$0xff] }
   0x5   :  { %v156_v13 = vadd.f32 %v322_v2, %v85_v3  ;;  %v89_v14 = vmul.f32 %v317_v1, %v18_v10  ;;  %v22_v18 = vld [vmem:[%s897_s0 + $0x40] sm:$0xff]  ;;  %v157_v20 = vadd.f32 %v322_v2, %v86_v7  ;;  %v158_v21 = vadd.f32 %v322_v2, %v87_v8  ;;  %v25_v25 = vld [vmem:[%s897_s0 + $0x58] sm:$0xff]  ;;  %v27_v31 = vld [vmem:[%s897_s0 + $0x68] sm:$0xff] }
   0x6   :  { %v159_v22 = vadd.f32 %v322_v2, %v88_v9  ;;  %v26_v26 = vld [vmem:[%s897_s0 + $0x60] sm:$0xff]  ;;  %v161_v28 = vadd.f32 %v322_v2, %v90_v15  ;;  %v162_v29 = vadd.f32 %v322_v2, %v91_v16  ;;  %v93_v30 = vmul.f32 %v317_v1, %v22_v18  ;;  %v28_v32 = vld [vmem:[%s897_s0 + $0x70] sm:$0xff]  ;;  %v29_v33 = vld [vmem:[%s897_s0 + $0x78] sm:$0xff] }
   0x7   :  { %221 = vst.msk [vmem:[%s900_s3] sm:$0xff] %vm220_vm0, %v156_v13  ;;  %v160_v27 = vadd.f32 %v322_v2, %v89_v14  ;;  %222 = vst.msk [vmem:[%s900_s3 + $0x8] sm:$0xff] %vm220_vm0, %v157_v20  ;;  %v163_v34 = vadd.f32 %v322_v2, %v92_v23  ;;  %v94_v35 = vmul.f32 %v317_v1, %v23_v19  ;;  %v30_v38 = vld [vmem:[%s897_s0 + $0x80] sm:$0xff]  ;;  %v31_v43 = vld [vmem:[%s897_s0 + $0x88] sm:$0xff] }
   0x8   :  { %223 = vst.msk [vmem:[%s900_s3 + $0x10] sm:$0xff] %vm220_vm0, %v158_v21  ;;  %224 = vst.msk [vmem:[%s900_s3 + $0x18] sm:$0xff] %vm220_vm0, %v159_v22  ;;  %v95_v36 = vmul.f32 %v317_v1, %v24_v24  ;;  %v96_v37 = vmul.f32 %v317_v1, %v25_v25  ;;  %v164_v39 = vadd.f32 %v322_v2, %v93_v30  ;;  %v32_v44 = vld [vmem:[%s897_s0 + $0x90] sm:$0xff]  ;;  %v33_v45 = vld [vmem:[%s897_s0 + $0x98] sm:$0xff] }
   0x9   :  { %225 = vst.msk [vmem:[%s900_s3 + $0x20] sm:$0xff] %vm220_vm0, %v160_v27  ;;  %226 = vst.msk [vmem:[%s900_s3 + $0x28] sm:$0xff] %vm220_vm0, %v161_v28  ;;  %v97_v40 = vmul.f32 %v317_v1, %v26_v26  ;;  %v98_v41 = vmul.f32 %v317_v1, %v27_v31  ;;  %v99_v42 = vmul.f32 %v317_v1, %v28_v32  ;;  %v34_v50 = vld [vmem:[%s897_s0 + $0xa0] sm:$0xff]  ;;  %v35_v51 = vld [vmem:[%s897_s0 + $0xa8] sm:$0xff] }
   0xa   :  { %227 = vst.msk [vmem:[%s900_s3 + $0x30] sm:$0xff] %vm220_vm0, %v162_v29  ;;  %228 = vst.msk [vmem:[%s900_s3 + $0x38] sm:$0xff] %vm220_vm0, %v163_v34  ;;  %v165_v46 = vadd.f32 %v322_v2, %v94_v35  ;;  %v166_v47 = vadd.f32 %v322_v2, %v95_v36  ;;  %v167_v48 = vadd.f32 %v322_v2, %v96_v37  ;;  %v36_v52 = vld [vmem:[%s897_s0 + $0xb0] sm:$0xff]  ;;  %v37_v57 = vld [vmem:[%s897_s0 + $0xb8] sm:$0xff] }
   0xb   :  { %v100_v49 = vmul.f32 %v317_v1, %v29_v33  ;;  %229 = vst.msk [vmem:[%s900_s3 + $0x40] sm:$0xff] %vm220_vm0, %v164_v39  ;;  %v168_v53 = vadd.f32 %v322_v2, %v97_v40  ;;  %v169_v54 = vadd.f32 %v322_v2, %v98_v41  ;;  %v170_v55 = vadd.f32 %v322_v2, %v99_v42  ;;  %v38_v62 = vld [vmem:[%s897_s0 + $0xc0] sm:$0xff]  ;;  %v39_v5 = vld [vmem:[%s897_s0 + $0xc8] sm:$0xff]  ;;  %v40_v6 = vld [vmem:[%s897_s0 + $0xd0] sm:$0xff] }
   0xc   :  { %v101_v56 = vmul.f32 %v317_v1, %v30_v38  ;;  %230 = vst.msk [vmem:[%s900_s3 + $0x48] sm:$0xff] %vm220_vm0, %v165_v46  ;;  %231 = vst.msk [vmem:[%s900_s3 + $0x50] sm:$0xff] %vm220_vm0, %v166_v47  ;;  %v102_v59 = vmul.f32 %v317_v1, %v31_v43  ;;  %v103_v60 = vmul.f32 %v317_v1, %v32_v44  ;;  %v41_v7 = vld [vmem:[%s897_s0 + $0xd8] sm:$0xff]  ;;  %v42_v12 = vld [vmem:[%s897_s0 + $0xe0] sm:$0xff] }
   0xd   :  { %232 = vst.msk [vmem:[%s900_s3 + $0x58] sm:$0xff] %vm220_vm0, %v167_v48  ;;  %v171_v58 = vadd.f32 %v322_v2, %v100_v49  ;;  %v104_v61 = vmul.f32 %v317_v1, %v33_v45  ;;  %233 = vst.msk [vmem:[%s900_s3 + $0x60] sm:$0xff] %vm220_vm0, %v168_v53  ;;  %v105_v0 = vmul.f32 %v317_v1, %v34_v50  ;;  %v43_v13 = vld [vmem:[%s897_s0 + $0xe8] sm:$0xff]  ;;  %v44_v14 = vld [vmem:[%s897_s0 + $0xf0] sm:$0xff] }
   0xe   :  { %234 = vst.msk [vmem:[%s900_s3 + $0x68] sm:$0xff] %vm220_vm0, %v169_v54  ;;  %235 = vst.msk [vmem:[%s900_s3 + $0x70] sm:$0xff] %vm220_vm0, %v170_v55  ;;  %v172_v63 = vadd.f32 %v322_v2, %v101_v56  ;;  %v106_v3 = vmul.f32 %v317_v1, %v35_v51  ;;  %v107_v4 = vmul.f32 %v317_v1, %v36_v52  ;;  %v45_v19 = vld [vmem:[%s897_s0 + $0xf8] sm:$0xff]  ;;  %v46_v24 = vld [vmem:[%s897_s0 + $0x100] sm:$0xff] }
   0xf   :  { %236 = vst.msk [vmem:[%s900_s3 + $0x78] sm:$0xff] %vm220_vm0, %v171_v58  ;;  %v173_v8 = vadd.f32 %v322_v2, %v102_v59  ;;  %v174_v9 = vadd.f32 %v322_v2, %v103_v60  ;;  %v175_v10 = vadd.f32 %v322_v2, %v104_v61  ;;  %v108_v11 = vmul.f32 %v317_v1, %v37_v57  ;;  %v47_v29 = vld [vmem:[%s897_s0 + $0x108] sm:$0xff]  ;;  %v48_v30 = vld [vmem:[%s897_s0 + $0x110] sm:$0xff]  ;;  %v49_v31 = vld [vmem:[%s897_s0 + $0x118] sm:$0xff] }
  0x10   :  { %237 = vst.msk [vmem:[%s900_s3 + $0x80] sm:$0xff] %vm220_vm0, %v172_v63  ;;  %v176_v15 = vadd.f32 %v322_v2, %v105_v0  ;;  %v177_v16 = vadd.f32 %v322_v2, %v106_v3  ;;  %v178_v17 = vadd.f32 %v322_v2, %v107_v4  ;;  %v109_v18 = vmul.f32 %v317_v1, %v38_v62  ;;  %v50_v36 = vld [vmem:[%s897_s0 + $0x120] sm:$0xff]  ;;  %v51_v37 = vld [vmem:[%s897_s0 + $0x128] sm:$0xff]  ;;  %v52_v38 = vld [vmem:[%s897_s0 + $0x130] sm:$0xff] }
  0x11   :  { %238 = vst.msk [vmem:[%s900_s3 + $0x88] sm:$0xff] %vm220_vm0, %v173_v8  ;;  %239 = vst.msk [vmem:[%s900_s3 + $0x90] sm:$0xff] %vm220_vm0, %v174_v9  ;;  %v179_v20 = vadd.f32 %v322_v2, %v108_v11  ;;  %v110_v21 = vmul.f32 %v317_v1, %v39_v5  ;;  %v111_v22 = vmul.f32 %v317_v1, %v40_v6  ;;  %v53_v43 = vld [vmem:[%s897_s0 + $0x138] sm:$0xff]  ;;  %v54_v48 = vld [vmem:[%s897_s0 + $0x140] sm:$0xff] }
  0x12   :  { %240 = vst.msk [vmem:[%s900_s3 + $0x98] sm:$0xff] %vm220_vm0, %v175_v10  ;;  %v112_v23 = vmul.f32 %v317_v1, %v41_v7  ;;  %241 = vst.msk [vmem:[%s900_s3 + $0xa0] sm:$0xff] %vm220_vm0, %v176_v15  ;;  %v180_v25 = vadd.f32 %v322_v2, %v109_v18  ;;  %v113_v26 = vmul.f32 %v317_v1, %v42_v12  ;;  %v55_v53 = vld [vmem:[%s897_s0 + $0x148] sm:$0xff]  ;;  %v56_v54 = vld [vmem:[%s897_s0 + $0x150] sm:$0xff] }
  0x13   :  { %242 = vst.msk [vmem:[%s900_s3 + $0xa8] sm:$0xff] %vm220_vm0, %v177_v16  ;;  %243 = vst.msk [vmem:[%s900_s3 + $0xb0] sm:$0xff] %vm220_vm0, %v178_v17  ;;  %v114_v27 = vmul.f32 %v317_v1, %v43_v13  ;;  %v115_v28 = vmul.f32 %v317_v1, %v44_v14  ;;  %v181_v32 = vadd.f32 %v322_v2, %v110_v21  ;;  %v57_v55 = vld [vmem:[%s897_s0 + $0x158] sm:$0xff]  ;;  %v58_v60 = vld [vmem:[%s897_s0 + $0x160] sm:$0xff] }
  0x14   :  { %244 = vst.msk [vmem:[%s900_s3 + $0xb8] sm:$0xff] %vm220_vm0, %v179_v20  ;;  %v182_v33 = vadd.f32 %v322_v2, %v111_v22  ;;  %v183_v34 = vadd.f32 %v322_v2, %v112_v23  ;;  %v116_v35 = vmul.f32 %v317_v1, %v45_v19  ;;  %245 = vst.msk [vmem:[%s900_s3 + $0xc0] sm:$0xff] %vm220_vm0, %v180_v25  ;;  %v59_v61 = vld [vmem:[%s897_s0 + $0x168] sm:$0xff]  ;;  %v60_v62 = vld [vmem:[%s897_s0 + $0x170] sm:$0xff] }
  0x15   :  { %v184_v39 = vadd.f32 %v322_v2, %v113_v26  ;;  %v185_v40 = vadd.f32 %v322_v2, %v114_v27  ;;  %v186_v41 = vadd.f32 %v322_v2, %v115_v28  ;;  %v117_v42 = vmul.f32 %v317_v1, %v46_v24  ;;  %246 = vst.msk [vmem:[%s900_s3 + $0xc8] sm:$0xff] %vm220_vm0, %v181_v32  ;;  %v61_v5 = vld [vmem:[%s897_s0 + $0x178] sm:$0xff]  ;;  %v62_v10 = vld [vmem:[%s897_s0 + $0x180] sm:$0xff]  ;;  %v63_v15 = vld [vmem:[%s897_s0 + $0x188] sm:$0xff] }
  0x16   :  { %247 = vst.msk [vmem:[%s900_s3 + $0xd0] sm:$0xff] %vm220_vm0, %v182_v33  ;;  %248 = vst.msk [vmem:[%s900_s3 + $0xd8] sm:$0xff] %vm220_vm0, %v183_v34  ;;  %v187_v44 = vadd.f32 %v322_v2, %v116_v35  ;;  %v118_v45 = vmul.f32 %v317_v1, %v47_v29  ;;  %v119_v46 = vmul.f32 %v317_v1, %v48_v30  ;;  %v64_v16 = vld [vmem:[%s897_s0 + $0x190] sm:$0xff]  ;;  %v65_v17 = vld [vmem:[%s897_s0 + $0x198] sm:$0xff] }
  0x17   :  { %v120_v47 = vmul.f32 %v317_v1, %v49_v31  ;;  %249 = vst.msk [vmem:[%s900_s3 + $0xe0] sm:$0xff] %vm220_vm0, %v184_v39  ;;  %250 = vst.msk [vmem:[%s900_s3 + $0xe8] sm:$0xff] %vm220_vm0, %v185_v40  ;;  %v188_v49 = vadd.f32 %v322_v2, %v117_v42  ;;  %v121_v50 = vmul.f32 %v317_v1, %v50_v36  ;;  %v66_v22 = vld [vmem:[%s897_s0 + $0x1a0] sm:$0xff]  ;;  %v67_v23 = vld [vmem:[%s897_s0 + $0x1a8] sm:$0xff] }
  0x18   :  { %251 = vst.msk [vmem:[%s900_s3 + $0xf0] sm:$0xff] %vm220_vm0, %v186_v41  ;;  %v122_v51 = vmul.f32 %v317_v1, %v51_v37  ;;  %v123_v52 = vmul.f32 %v317_v1, %v52_v38  ;;  %252 = vst.msk [vmem:[%s900_s3 + $0xf8] sm:$0xff] %vm220_vm0, %v187_v44  ;;  %v189_v56 = vadd.f32 %v322_v2, %v118_v45  ;;  %v68_v24 = vld [vmem:[%s897_s0 + $0x1b0] sm:$0xff]  ;;  %v69_v29 = vld [vmem:[%s897_s0 + $0x1b8] sm:$0xff] }
  0x19   :  { %v190_v57 = vadd.f32 %v322_v2, %v119_v46  ;;  %v191_v58 = vadd.f32 %v322_v2, %v120_v47  ;;  %v124_v59 = vmul.f32 %v317_v1, %v53_v43  ;;  %253 = vst.msk [vmem:[%s900_s3 + $0x100] sm:$0xff] %vm220_vm0, %v188_v49  ;;  %v192_v63 = vadd.f32 %v322_v2, %v121_v50  ;;  %v70_v34 = vld [vmem:[%s897_s0 + $0x1c0] sm:$0xff]  ;;  %v71_v39 = vld [vmem:[%s897_s0 + $0x1c8] sm:$0xff]  ;;  %v72_v40 = vld [vmem:[%s897_s0 + $0x1d0] sm:$0xff] }
  0x1a   :  { %v193_v0 = vadd.f32 %v322_v2, %v122_v51  ;;  %v194_v3 = vadd.f32 %v322_v2, %v123_v52  ;;  %v125_v4 = vmul.f32 %v317_v1, %v54_v48  ;;  %254 = vst.msk [vmem:[%s900_s3 + $0x108] sm:$0xff] %vm220_vm0, %v189_v56  ;;  %v126_v7 = vmul.f32 %v317_v1, %v55_v53  ;;  %v73_v41 = vld [vmem:[%s897_s0 + $0x1d8] sm:$0xff]  ;;  %v74_v46 = vld [vmem:[%s897_s0 + $0x1e0] sm:$0xff]  ;;  %v75_v47 = vld [vmem:[%s897_s0 + $0x1e8] sm:$0xff] }
  0x1b   :  { %255 = vst.msk [vmem:[%s900_s3 + $0x110] sm:$0xff] %vm220_vm0, %v190_v57  ;;  %256 = vst.msk [vmem:[%s900_s3 + $0x118] sm:$0xff] %vm220_vm0, %v191_v58  ;;  %v195_v6 = vadd.f32 %v322_v2, %v124_v59  ;;  %v127_v8 = vmul.f32 %v317_v1, %v56_v54  ;;  %v128_v9 = vmul.f32 %v317_v1, %v57_v55  ;;  %v76_v48 = vld [vmem:[%s897_s0 + $0x1f0] sm:$0xff]  ;;  %v77_v53 = vld [vmem:[%s897_s0 + $0x1f8] sm:$0xff] }
  0x1c   :  { %257 = vst.msk [vmem:[%s900_s3 + $0x120] sm:$0xff] %vm220_vm0, %v192_v63  ;;  %258 = vst.msk [vmem:[%s900_s3 + $0x128] sm:$0xff] %vm220_vm0, %v193_v0  ;;  %v196_v11 = vadd.f32 %v322_v2, %v125_v4  ;;  %v129_v12 = vmul.f32 %v317_v1, %v58_v60  ;;  %v130_v13 = vmul.f32 %v317_v1, %v59_v61 }
  0x1d   :  { %259 = vst.msk [vmem:[%s900_s3 + $0x130] sm:$0xff] %vm220_vm0, %v194_v3  ;;  %v131_v14 = vmul.f32 %v317_v1, %v60_v62  ;;  %260 = vst.msk [vmem:[%s900_s3 + $0x138] sm:$0xff] %vm220_vm0, %v195_v6  ;;  %v197_v18 = vadd.f32 %v322_v2, %v126_v7  ;;  %v198_v19 = vadd.f32 %v322_v2, %v127_v8 }
  0x1e   :  { %v199_v20 = vadd.f32 %v322_v2, %v128_v9  ;;  %v132_v21 = vmul.f32 %v317_v1, %v61_v5  ;;  %261 = vst.msk [vmem:[%s900_s3 + $0x140] sm:$0xff] %vm220_vm0, %v196_v11  ;;  %v200_v25 = vadd.f32 %v322_v2, %v129_v12  ;;  %v201_v26 = vadd.f32 %v322_v2, %v130_v13 }
  0x1f   :  { %v202_v27 = vadd.f32 %v322_v2, %v131_v14  ;;  %v133_v28 = vmul.f32 %v317_v1, %v62_v10  ;;  %262 = vst.msk [vmem:[%s900_s3 + $0x148] sm:$0xff] %vm220_vm0, %v197_v18  ;;  %263 = vst.msk [vmem:[%s900_s3 + $0x150] sm:$0xff] %vm220_vm0, %v198_v19  ;;  %v134_v31 = vmul.f32 %v317_v1, %v63_v15 }
  0x20   :  { %264 = vst.msk [vmem:[%s900_s3 + $0x158] sm:$0xff] %vm220_vm0, %v199_v20  ;;  %v203_v30 = vadd.f32 %v322_v2, %v132_v21  ;;  %v135_v32 = vmul.f32 %v317_v1, %v64_v16  ;;  %v136_v33 = vmul.f32 %v317_v1, %v65_v17  ;;  %265 = vst.msk [vmem:[%s900_s3 + $0x160] sm:$0xff] %vm220_vm0, %v200_v25 }
  0x21   :  { %266 = vst.msk [vmem:[%s900_s3 + $0x168] sm:$0xff] %vm220_vm0, %v201_v26  ;;  %267 = vst.msk [vmem:[%s900_s3 + $0x170] sm:$0xff] %vm220_vm0, %v202_v27  ;;  %v204_v35 = vadd.f32 %v322_v2, %v133_v28  ;;  %v137_v36 = vmul.f32 %v317_v1, %v66_v22  ;;  %v138_v37 = vmul.f32 %v317_v1, %v67_v23 }
  0x22   :  { %v139_v38 = vmul.f32 %v317_v1, %v68_v24  ;;  %268 = vst.msk [vmem:[%s900_s3 + $0x178] sm:$0xff] %vm220_vm0, %v203_v30  ;;  %v205_v42 = vadd.f32 %v322_v2, %v134_v31  ;;  %v206_v43 = vadd.f32 %v322_v2, %v135_v32  ;;  %v207_v44 = vadd.f32 %v322_v2, %v136_v33 }
  0x23   :  { %v140_v45 = vmul.f32 %v317_v1, %v69_v29  ;;  %269 = vst.msk [vmem:[%s900_s3 + $0x180] sm:$0xff] %vm220_vm0, %v204_v35  ;;  %v208_v49 = vadd.f32 %v322_v2, %v137_v36  ;;  %v209_v50 = vadd.f32 %v322_v2, %v138_v37  ;;  %v141_v52 = vmul.f32 %v317_v1, %v70_v34 }
  0x24   :  { %v210_v51 = vadd.f32 %v322_v2, %v139_v38  ;;  %270 = vst.msk [vmem:[%s900_s3 + $0x188] sm:$0xff] %vm220_vm0, %v205_v42  ;;  %271 = vst.msk [vmem:[%s900_s3 + $0x190] sm:$0xff] %vm220_vm0, %v206_v43  ;;  %v142_v55 = vmul.f32 %v317_v1, %v71_v39  ;;  %v143_v56 = vmul.f32 %v317_v1, %v72_v40 }
  0x25   :  { %272 = vst.msk [vmem:[%s900_s3 + $0x198] sm:$0xff] %vm220_vm0, %v207_v44  ;;  %v211_v54 = vadd.f32 %v322_v2, %v140_v45  ;;  %v144_v57 = vmul.f32 %v317_v1, %v73_v41  ;;  %273 = vst.msk [vmem:[%s900_s3 + $0x1a0] sm:$0xff] %vm220_vm0, %v208_v49  ;;  %v212_v58 = vadd.f32 %v322_v2, %v141_v52 }
  0x26   :  { %274 = vst.msk [vmem:[%s900_s3 + $0x1a8] sm:$0xff] %vm220_vm0, %v209_v50  ;;  %275 = vst.msk [vmem:[%s900_s3 + $0x1b0] sm:$0xff] %vm220_vm0, %v210_v51  ;;  %v145_v59 = vmul.f32 %v317_v1, %v74_v46  ;;  %v146_v60 = vmul.f32 %v317_v1, %v75_v47  ;;  %v147_v61 = vmul.f32 %v317_v1, %v76_v48 }
  0x27   :  { %276 = vst.msk [vmem:[%s900_s3 + $0x1b8] sm:$0xff] %vm220_vm0, %v211_v54  ;;  %v213_v62 = vadd.f32 %v322_v2, %v142_v55  ;;  %v214_v63 = vadd.f32 %v322_v2, %v143_v56  ;;  %v215_v0 = vadd.f32 %v322_v2, %v144_v57  ;;  %v148_v3 = vmul.f32 %v317_v1, %v77_v53 }
  0x28   :  { %277 = vst.msk [vmem:[%s900_s3 + $0x1c0] sm:$0xff] %vm220_vm0, %v212_v58  ;;  %v216_v4 = vadd.f32 %v322_v2, %v145_v59  ;;  %v217_v5 = vadd.f32 %v322_v2, %v146_v60  ;;  %v218_v6 = vadd.f32 %v322_v2, %v147_v61 }
  0x29   :  { %278 = vst.msk [vmem:[%s900_s3 + $0x1c8] sm:$0xff] %vm220_vm0, %v213_v62  ;;  %279 = vst.msk [vmem:[%s900_s3 + $0x1d0] sm:$0xff] %vm220_vm0, %v214_v63  ;;  %v219_v1 = vadd.f32 %v322_v2, %v148_v3 }
  0x2a   :  { %280 = vst.msk [vmem:[%s900_s3 + $0x1d8] sm:$0xff] %vm220_vm0, %v215_v0  ;;  %281 = vst.msk [vmem:[%s900_s3 + $0x1e0] sm:$0xff] %vm220_vm0, %v216_v4 }
  0x2b   :  { %282 = vst.msk [vmem:[%s900_s3 + $0x1e8] sm:$0xff] %vm220_vm0, %v217_v5  ;;  %283 = vst.msk [vmem:[%s900_s3 + $0x1f0] sm:$0xff] %vm220_vm0, %v218_v6 }
  0x2c   :  { %284 = vst.msk [vmem:[%s900_s3 + $0x1f8] sm:$0xff] %vm220_vm0, %v219_v1 }

// kernel: generator_forward.32
= control target key start
LH: loop header
LB: loop body
LE: loop exit
PB: predicated region body
PF: predicated region fallthrough
CT: control target
= control target key end

     0   :  { %vm14_vm0 = vcmask 122880   ;;  %vm82_vm1 = vcmask 130048   ;;  %v428_v0 = vmov 0.0   ;;  %s1318_s0 = inlined_call_operand.vmem [shape: f32[512,16], index: 0, kind: input, shape index: {}]   ;;  %s1319_s1 = inlined_call_operand.vmem [shape: f32[1,16], index: 1, kind: output, shape index: {0}]   ;;  %s1320_s2 = inlined_call_operand.vmem [shape: f32[1,16], index: 2, kind: output, shape index: {1}]  }
   0x1   :  { %15 = vst.msk [vmem:[%s1319_s1] sm:$0x1] %vm14_vm0, %v428_v0  ;;  %16 = vst.msk [vmem:[%s1320_s2] sm:$0x1] %vm14_vm0, %v428_v0  ;;  %v455_v1 = vld [vmem:[%s1318_s0] sm:$0xff]  ;;  %v460_v2 = vld [vmem:[%s1318_s0 + $0x8] sm:$0xff] }
   0x2   :  { %v465_v3 = vld [vmem:[%s1318_s0 + $0x10] sm:$0xff]  ;;  %v83_v4 = vsel %vm82_vm1, %v455_v1, 0.0  ;;  %v84_v5 = vsel %vm82_vm1, %v460_v2, 0.0  ;;  %v476_v7 = vld [vmem:[%s1318_s0 + $0x18] sm:$0xff]  ;;  %v483_v10 = vld [vmem:[%s1318_s0 + $0x20] sm:$0xff] }
   0x3   :  { %v86_v6 = vsel %vm82_vm1, %v465_v3, 0.0  ;;  %v85_v8 = vadd.f32 %v84_v5, %v83_v4  ;;  %v88_v9 = vsel %vm82_vm1, %v476_v7, 0.0  ;;  %v90_v12 = vsel %vm82_vm1, %v483_v10, 0.0  ;;  %v490_v13 = vld [vmem:[%s1318_s0 + $0x28] sm:$0xff]  ;;  %v497_v16 = vld [vmem:[%s1318_s0 + $0x30] sm:$0xff]  ;;  %v502_v18 = vld [vmem:[%s1318_s0 + $0x38] sm:$0xff] }
   0x4   :  { %v92_v15 = vsel %vm82_vm1, %v490_v13, 0.0  ;;  %v507_v19 = vld [vmem:[%s1318_s0 + $0x40] sm:$0xff]  ;;  %v94_v20 = vsel %vm82_vm1, %v497_v16, 0.0  ;;  %v514_v21 = vld [vmem:[%s1318_s0 + $0x48] sm:$0xff]  ;;  %v519_v22 = vld [vmem:[%s1318_s0 + $0x50] sm:$0xff]  ;;  %v96_v25 = vsel %vm82_vm1, %v502_v18, 0.0 }
   0x5   :  { %v87_v11 = vadd.f32 %v86_v6, %v85_v8  ;;  %v524_v23 = vld [vmem:[%s1318_s0 + $0x58] sm:$0xff]  ;;  %v98_v26 = vsel %vm82_vm1, %v507_v19, 0.0  ;;  %v533_v27 = vld [vmem:[%s1318_s0 + $0x108] sm:$0xff]  ;;  %v538_v28 = vld [vmem:[%s1318_s0 + $0x110] sm:$0xff]  ;;  %v100_v30 = vsel %vm82_vm1, %v514_v21, 0.0  ;;  %v102_v31 = vsel %vm82_vm1, %v519_v22, 0.0 }
   0x6   :  { %v543_v29 = vld [vmem:[%s1318_s0 + $0x118] sm:$0xff]  ;;  %v551_v32 = vsel %vm82_vm1, %v524_v23, 0.0  ;;  %v556_v33 = vld [vmem:[%s1318_s0 + $0x120] sm:$0xff]  ;;  %v561_v34 = vld [vmem:[%s1318_s0 + $0x128] sm:$0xff]  ;;  %v570_v37 = vsel %vm82_vm1, %v533_v27, 0.0  ;;  %v574_v38 = vsel %vm82_vm1, %v538_v28, 0.0 }
   0x7   :  { %v89_v14 = vadd.f32 %v88_v9, %v87_v11  ;;  %v566_v35 = vld [vmem:[%s1318_s0 + $0x130] sm:$0xff]  ;;  %1339 = vst [vmem:[#allocation2_spill] sm:$0xff] %v570_v37  ;;  %1340 = vst [vmem:[#allocation3_spill] sm:$0xff] %v574_v38  ;;  %v578_v39 = vsel %vm82_vm1, %v543_v29, 0.0  ;;  %v583_v40 = vld [vmem:[%s1318_s0 + $0x138] sm:$0xff]  ;;  %v597_v43 = vsel %vm82_vm1, %v556_v33, 0.0  ;;  %v222_v37 = vmul.f32 %v465_v3, %v465_v3 }
   0x8   :  { %1341 = vst [vmem:[#allocation4_spill] sm:$0xff] %v578_v39  ;;  %v588_v41 = vld [vmem:[%s1318_s0 + $0x140] sm:$0xff]  ;;  %v593_v42 = vld [vmem:[%s1318_s0 + $0x148] sm:$0xff]  ;;  %1342 = vst [vmem:[#allocation5_spill] sm:$0xff] %v597_v43  ;;  %v601_v44 = vsel %vm82_vm1, %v561_v34, 0.0  ;;  %v605_v45 = vsel %vm82_vm1, %v566_v35, 0.0 }
   0x9   :  { %v91_v17 = vadd.f32 %v90_v12, %v89_v14  ;;  %1343 = vst [vmem:[#allocation6_spill] sm:$0xff] %v601_v44  ;;  %1344 = vst [vmem:[#allocation7_spill] sm:$0xff] %v605_v45  ;;  %v610_v46 = vld [vmem:[%s1318_s0 + $0x150] sm:$0xff]  ;;  %v615_v47 = vld [vmem:[%s1318_s0 + $0x158] sm:$0xff]  ;;  %v624_v50 = vsel %vm82_vm1, %v583_v40, 0.0  ;;  %v628_v51 = vsel %vm82_vm1, %v588_v41, 0.0 }
   0xa   :  { %v620_v48 = vld [vmem:[%s1318_s0 + $0x160] sm:$0xff]  ;;  %1345 = vst [vmem:[#allocation8_spill] sm:$0xff] %v624_v50  ;;  %1346 = vst [vmem:[#allocation9_spill] sm:$0xff] %v628_v51  ;;  %v632_v52 = vsel %vm82_vm1, %v593_v42, 0.0  ;;  %v637_v53 = vld [vmem:[%s1318_s0 + $0x168] sm:$0xff]  ;;  %v651_v56 = vsel %vm82_vm1, %v610_v46, 0.0 }
   0xb   :  { %v93_v24 = vadd.f32 %v92_v15, %v91_v17  ;;  %1347 = vst [vmem:[#allocation10_spill] sm:$0xff] %v632_v52  ;;  %v642_v54 = vld [vmem:[%s1318_s0 + $0x170] sm:$0xff]  ;;  %v647_v55 = vld [vmem:[%s1318_s0 + $0x178] sm:$0xff]  ;;  %1348 = vst [vmem:[#allocation11_spill] sm:$0xff] %v651_v56  ;;  %v655_v57 = vsel %vm82_vm1, %v615_v47, 0.0  ;;  %v659_v58 = vsel %vm82_vm1, %v620_v48, 0.0 }
   0xc   :  { %1349 = vst [vmem:[#allocation12_spill] sm:$0xff] %v655_v57  ;;  %1350 = vst [vmem:[#allocation13_spill] sm:$0xff] %v659_v58  ;;  %v664_v59 = vld [vmem:[%s1318_s0 + $0x180] sm:$0xff]  ;;  %v669_v60 = vld [vmem:[%s1318_s0 + $0x188] sm:$0xff]  ;;  %v678_v63 = vsel %vm82_vm1, %v637_v53, 0.0  ;;  %v682_v0 = vsel %vm82_vm1, %v642_v54, 0.0 }
   0xd   :  { %v95_v36 = vadd.f32 %v94_v20, %v93_v24  ;;  %v674_v61 = vld [vmem:[%s1318_s0 + $0x190] sm:$0xff]  ;;  %1351 = vst [vmem:[#allocation14_spill] sm:$0xff] %v678_v63  ;;  %1352 = vst [vmem:[#allocation15_spill] sm:$0xff] %v682_v0  ;;  %v686_v4 = vsel %vm82_vm1, %v647_v55, 0.0  ;;  %v691_v5 = vld [vmem:[%s1318_s0 + $0x198] sm:$0xff]  ;;  %v705_v9 = vsel %vm82_vm1, %v664_v59, 0.0 }
   0xe   :  { %1353 = vst [vmem:[#allocation16_spill] sm:$0xff] %v686_v4  ;;  %v696_v6 = vld [vmem:[%s1318_s0 + $0x1a0] sm:$0xff]  ;;  %v701_v8 = vld [vmem:[%s1318_s0 + $0x1a8] sm:$0xff]  ;;  %1354 = vst [vmem:[#allocation17_spill] sm:$0xff] %v705_v9  ;;  %v709_v11 = vsel %vm82_vm1, %v669_v60, 0.0  ;;  %v713_v12 = vsel %vm82_vm1, %v674_v61, 0.0 }
   0xf   :  { %v97_v49 = vadd.f32 %v96_v25, %v95_v36  ;;  %1355 = vst [vmem:[#allocation18_spill] sm:$0xff] %v709_v11  ;;  %1356 = vst [vmem:[#allocation19_spill] sm:$0xff] %v713_v12  ;;  %v718_v14 = vld [vmem:[%s1318_s0 + $0x60] sm:$0xff]  ;;  %v723_v15 = vld [vmem:[%s1318_s0 + $0x1b0] sm:$0xff]  ;;  %v737_v25 = vsel %vm82_vm1, %v691_v5, 0.0  ;;  %v745_v36 = vsel %vm82_vm1, %v701_v8, 0.0 }
  0x10   :  { %v728_v17 = vld [vmem:[%s1318_s0 + $0x1b8] sm:$0xff]  ;;  %v733_v20 = vld [vmem:[%s1318_s0 + $0x1c0] sm:$0xff]  ;;  %1357 = vst [vmem:[#allocation20_spill] sm:$0xff] %v737_v25  ;;  %1359 = vst [vmem:[#allocation22_spill] sm:$0xff] %v745_v36 }
  0x11   :  { %v99_v62 = vadd.f32 %v98_v26, %v97_v49  ;;  %v741_v26 = vsel %vm82_vm1, %v696_v6, 0.0  ;;  %v750_v49 = vld [vmem:[%s1318_s0 + $0x1c8] sm:$0xff]  ;;  %v768_v36 = vsel %vm82_vm1, %v728_v17, 0.0  ;;  %v772_v25 = vsel %vm82_vm1, %v733_v20, 0.0  ;;  %v777_v12 = vld [vmem:[%s1318_s0 + $0x1e0] sm:$0xff]  ;;  %v804_v0 = vld [vmem:[%s1318_s0 + $0x1f8] sm:$0xff] }
  0x12   :  { %1358 = vst [vmem:[#allocation21_spill] sm:$0xff] %v741_v26  ;;  %v764_v26 = vsel %vm82_vm1, %v723_v15, 0.0  ;;  %1361 = vst [vmem:[#allocation24_spill] sm:$0xff] %v768_v36  ;;  %v782_v11 = vld [vmem:[%s1318_s0 + $0x1e8] sm:$0xff]  ;;  %v791_v9 = vsel %vm82_vm1, %v750_v49, 0.0  ;;  %v826_v58 = vsel %vm82_vm1, %v804_v0, 0.0 }
  0x13   :  { %v101_v24 = vadd.f32 %v100_v30, %v99_v62  ;;  %v755_v30 = vld [vmem:[%s1318_s0 + $0x1d0] sm:$0xff]  ;;  %v760_v62 = vld [vmem:[%s1318_s0 + $0x1d8] sm:$0xff]  ;;  %1360 = vst [vmem:[#allocation23_spill] sm:$0xff] %v764_v26  ;;  %1362 = vst [vmem:[#allocation25_spill] sm:$0xff] %v772_v25 }
  0x14   :  { %v787_v26 = vld [vmem:[%s1318_s0 + $0x1f0] sm:$0xff]  ;;  %1364 = vst [vmem:[#allocation27_spill] sm:$0xff] %v791_v9  ;;  %v795_v25 = vsel %vm82_vm1, %v755_v30, 0.0  ;;  %v799_v4 = vsel %vm82_vm1, %v760_v62, 0.0  ;;  %1367 = vst [vmem:[#allocation30_spill] sm:$0xff] %v804_v0  ;;  %v814_v9 = vsel %vm82_vm1, %v782_v11, 0.0 }
  0x15   :  { %1363 = vst [vmem:[#allocation26_spill] sm:$0xff] %v787_v26  ;;  %v103_v36 = vadd.f32 %v102_v31, %v101_v24  ;;  %1365 = vst [vmem:[#allocation28_spill] sm:$0xff] %v795_v25  ;;  %v106_v31 = vsel %vm82_vm1, %v718_v14, 0.0  ;;  %v810_v24 = vsel %vm82_vm1, %v777_v12, 0.0  ;;  %v818_v25 = vsel %vm82_vm1, %v787_v26, 0.0  ;;  %v855_v56 = vld [vmem:[%s1318_s0 + $0x90] sm:$0xff] }
  0x16   :  { %1366 = vst [vmem:[#allocation29_spill] sm:$0xff] %v799_v4  ;;  %1368 = vst [vmem:[#allocation31_spill] sm:$0xff] %v810_v24  ;;  %v30_v4 = vld [vmem:[%s1318_s0 + $0x68] sm:$0xff]  ;;  %v860_v52 = vld [vmem:[%s1318_s0 + $0x98] sm:$0xff] }
  0x17   :  { %1369 = vst [vmem:[#allocation32_spill] sm:$0xff] %v814_v9  ;;  %1370 = vst [vmem:[#allocation33_spill] sm:$0xff] %v818_v25  ;;  %v105_v63 = vadd.f32 %v551_v32, %v103_v36  ;;  %v108_v24 = vsel %vm82_vm1, %v30_v4, 0.0  ;;  %v31_v9 = vld [vmem:[%s1318_s0 + $0x70] sm:$0xff]  ;;  %v835_v25 = vld [vmem:[%s1318_s0 + $0x78] sm:$0xff]  ;;  %v120_v39 = vsel %vm82_vm1, %v860_v52, 0.0 }
  0x18   :  { %1371 = vst [vmem:[#allocation34_spill] sm:$0xff] %v826_v58  ;;  %1372 = vst [vmem:[#allocation35_spill] sm:$0xff] %v835_v25  ;;  %v840_v32 = vld [vmem:[%s1318_s0 + $0x80] sm:$0xff]  ;;  %v845_v36 = vld [vmem:[%s1318_s0 + $0x88] sm:$0xff]  ;;  %v110_v58 = vsel %vm82_vm1, %v31_v9, 0.0 }
  0x19   :  { %v107_v57 = vadd.f32 %v106_v31, %v105_v63  ;;  %1373 = vst [vmem:[#allocation36_spill] sm:$0xff] %v840_v32  ;;  %1374 = vst [vmem:[#allocation37_spill] sm:$0xff] %v845_v36  ;;  %v220_v63 = vmul.f32 %v455_v1, %v455_v1  ;;  %v221_v31 = vmul.f32 %v460_v2, %v460_v2  ;;  %v865_v51 = vld [vmem:[%s1318_s0 + $0xa0] sm:$0xff]  ;;  %v112_v1 = vsel %vm82_vm1, %v835_v25, 0.0  ;;  %v876_v44 = vld [vmem:[%s1318_s0 + $0xa8] sm:$0xff] }
  0x1a   :  { %1375 = vst [vmem:[#allocation38_spill] sm:$0xff] %v855_v56  ;;  %1376 = vst [vmem:[#allocation39_spill] sm:$0xff] %v860_v52  ;;  %v114_v2 = vsel %vm82_vm1, %v840_v32, 0.0  ;;  %v116_v45 = vsel %vm82_vm1, %v845_v36, 0.0  ;;  %v881_v43 = vld [vmem:[%s1318_s0 + $0xb0] sm:$0xff]  ;;  %v122_v38 = vsel %vm82_vm1, %v865_v51, 0.0  ;;  %v223_v25 = vmul.f32 %v476_v7, %v476_v7 }
  0x1b   :  { %1377 = vst [vmem:[#allocation40_spill] sm:$0xff] %v865_v51  ;;  %v109_v50 = vadd.f32 %v108_v24, %v107_v57  ;;  %1378 = vst [vmem:[#allocation41_spill] sm:$0xff] %v876_v44  ;;  %v886_v57 = vld [vmem:[%s1318_s0 + $0xb8] sm:$0xff]  ;;  %v118_v24 = vsel %vm82_vm1, %v855_v56, 0.0  ;;  %v899_v36 = vld [vmem:[%s1318_s0 + $0xc0] sm:$0xff]  ;;  %v124_v51 = vsel %vm82_vm1, %v876_v44, 0.0 }
  0x1c   :  { %1379 = vst [vmem:[#allocation42_spill] sm:$0xff] %v881_v43  ;;  %1380 = vst [vmem:[#allocation43_spill] sm:$0xff] %v886_v57  ;;  %v904_v32 = vld [vmem:[%s1318_s0 + $0xc8] sm:$0xff]  ;;  %v909_v52 = vld [vmem:[%s1318_s0 + $0xd0] sm:$0xff]  ;;  %v915_v3 = vsel %vm82_vm1, %v881_v43, 0.0 }
  0x1d   :  { %1381 = vst [vmem:[#allocation44_spill] sm:$0xff] %v899_v36  ;;  %1382 = vst [vmem:[#allocation45_spill] sm:$0xff] %v904_v32  ;;  %v111_v56 = vadd.f32 %v110_v58, %v109_v50  ;;  %v922_v0 = vld [vmem:[%s1318_s0 + $0xd8] sm:$0xff]  ;;  %v927_v26 = vld [vmem:[%s1318_s0 + $0xe0] sm:$0xff]  ;;  %v931_v50 = vsel %vm82_vm1, %v886_v57, 0.0  ;;  %v935_v58 = vsel %vm82_vm1, %v899_v36, 0.0 }
  0x1e   :  { %1383 = vst [vmem:[#allocation46_spill] sm:$0xff] %v909_v52  ;;  %1384 = vst [vmem:[#allocation47_spill] sm:$0xff] %v922_v0  ;;  %v939_v7 = vsel %vm82_vm1, %v904_v32, 0.0  ;;  %v943_v43 = vsel %vm82_vm1, %v909_v52, 0.0  ;;  %v948_v44 = vld [vmem:[%s1318_s0 + $0xe8] sm:$0xff]  ;;  %v953_v57 = vld [vmem:[%s1318_s0 + $0xf0] sm:$0xff]  ;;  %v224_v52 = vmul.f32 %v483_v10, %v483_v10  ;;  %v228_v10 = vmul.f32 %v507_v19, %v507_v19 }
  0x1f   :  { %1385 = vst [vmem:[#allocation48_spill] sm:$0xff] %v927_v26  ;;  %1386 = vst [vmem:[#allocation49_spill] sm:$0xff] %v935_v58  ;;  %v113_v36 = vadd.f32 %v112_v1, %v111_v56  ;;  %v957_v58 = vsel %vm82_vm1, %v922_v0, 0.0  ;;  %v961_v32 = vsel %vm82_vm1, %v927_v26, 0.0  ;;  %v225_v56 = vmul.f32 %v490_v13, %v490_v13 }
  0x20   :  { %1387 = vst [vmem:[#allocation50_spill] sm:$0xff] %v939_v7  ;;  %1388 = vst [vmem:[#allocation51_spill] sm:$0xff] %v943_v43  ;;  %v967_v43 = vsel %vm82_vm1, %v948_v44, 0.0  ;;  %v971_v7 = vsel %vm82_vm1, %v953_v57, 0.0  ;;  %v226_v1 = vmul.f32 %v497_v16, %v497_v16  ;;  %v227_v26 = vmul.f32 %v502_v18, %v502_v18 }
  0x21   :  { %1389 = vst [vmem:[#allocation52_spill] sm:$0xff] %v948_v44  ;;  %1390 = vst [vmem:[#allocation53_spill] sm:$0xff] %v953_v57  ;;  %v115_v0 = vadd.f32 %v114_v2, %v113_v36  ;;  %v229_v44 = vmul.f32 %v514_v21, %v514_v21  ;;  %v230_v57 = vmul.f32 %v519_v22, %v519_v22 }
  0x22   :  { %1391 = vst [vmem:[#allocation54_spill] sm:$0xff] %v971_v7  ;;  %v231_v7 = vmul.f32 %v524_v23, %v524_v23  ;;  %v232_v13 = vmul.f32 %v718_v14, %v718_v14  ;;  %v989_v16 = vmul.f32 %v30_v4, %v30_v4  ;;  %v991_v2 = vmul.f32 %v31_v9, %v31_v9 }
  0x23   :  { %v117_v36 = vadd.f32 %v116_v45, %v115_v0  ;;  %v253_v18 = vmul.f32 %v533_v27, %v533_v27  ;;  %v254_v19 = vmul.f32 %v538_v28, %v538_v28  ;;  %v255_v21 = vmul.f32 %v543_v29, %v543_v29 }
  0x24   :  { %v256_v22 = vmul.f32 %v556_v33, %v556_v33  ;;  %v257_v23 = vmul.f32 %v561_v34, %v561_v34  ;;  %v258_v45 = vmul.f32 %v566_v35, %v566_v35  ;;  %v259_v4 = vmul.f32 %v583_v40, %v583_v40 }
  0x25   :  { %v119_v0 = vadd.f32 %v118_v24, %v117_v36  ;;  %v260_v27 = vmul.f32 %v588_v41, %v588_v41  ;;  %v261_v28 = vmul.f32 %v593_v42, %v593_v42  ;;  %v262_v29 = vmul.f32 %v610_v46, %v610_v46 }
  0x26   :  { %v263_v33 = vmul.f32 %v615_v47, %v615_v47  ;;  %v284_v34 = vsel %vm82_vm1, %v220_v63, 0.0  ;;  %v285_v35 = vsel %vm82_vm1, %v221_v31, 0.0  ;;  %v264_v40 = vmul.f32 %v620_v48, %v620_v48 }
  0x27   :  { %v121_v9 = vadd.f32 %v120_v39, %v119_v0  ;;  %v286_v14 = vadd.f32 %v285_v35, %v284_v34  ;;  %v287_v41 = vsel %vm82_vm1, %v222_v37, 0.0  ;;  %v265_v42 = vmul.f32 %v637_v53, %v637_v53  ;;  %v1392_v0 = vld [vmem:[#allocation26_spill] sm:$0xff] }
  0x28   :  { %v266_v46 = vmul.f32 %v642_v54, %v642_v54  ;;  %v267_v47 = vmul.f32 %v647_v55, %v647_v55  ;;  %v289_v63 = vsel %vm82_vm1, %v223_v25, 0.0  ;;  %v268_v39 = vmul.f32 %v664_v59, %v664_v59  ;;  %v1393_v34 = vld [vmem:[#allocation30_spill] sm:$0xff] }
  0x29   :  { %v123_v24 = vadd.f32 %v122_v38, %v121_v9  ;;  %v269_v48 = vmul.f32 %v669_v60, %v669_v60  ;;  %v288_v31 = vadd.f32 %v287_v41, %v286_v14  ;;  %v270_v37 = vmul.f32 %v674_v61, %v674_v61  ;;  %v1394_v41 = vld [vmem:[#allocation49_spill] sm:$0xff] }
  0x2a   :  { %v271_v53 = vmul.f32 %v691_v5, %v691_v5  ;;  %v272_v54 = vmul.f32 %v696_v6, %v696_v6  ;;  %v291_v55 = vsel %vm82_vm1, %v224_v52, 0.0  ;;  %v273_v38 = vmul.f32 %v701_v8, %v701_v8 }
  0x2b   :  { %v125_v25 = vadd.f32 %v124_v51, %v123_v24  ;;  %v274_v59 = vmul.f32 %v723_v15, %v723_v15  ;;  %v290_v60 = vadd.f32 %v289_v63, %v288_v31  ;;  %v275_v36 = vmul.f32 %v728_v17, %v728_v17 }
  0x2c   :  { %v276_v61 = vmul.f32 %v733_v20, %v733_v20  ;;  %v277_v5 = vmul.f32 %v750_v49, %v750_v49  ;;  %v293_v6 = vsel %vm82_vm1, %v225_v56, 0.0  ;;  %v278_v52 = vmul.f32 %v755_v30, %v755_v30 }
  0x2d   :  { %v127_v51 = vadd.f32 %v915_v3, %v125_v25  ;;  %v279_v8 = vmul.f32 %v760_v62, %v760_v62  ;;  %v292_v15 = vadd.f32 %v291_v55, %v290_v60  ;;  %v280_v17 = vmul.f32 %v777_v12, %v777_v12  ;;  %v1396_v25 = vld [vmem:[#allocation51_spill] sm:$0xff] }
  0x2e   :  { %v281_v20 = vmul.f32 %v782_v11, %v782_v11  ;;  %v282_v49 = vmul.f32 %v1392_v0, %v1392_v0  ;;  %v295_v56 = vsel %vm82_vm1, %v226_v1, 0.0  ;;  %v283_v30 = vmul.f32 %v1393_v34, %v1393_v34  ;;  %v1398_v34 = vld [vmem:[#allocation54_spill] sm:$0xff] }
  0x2f   :  { %v129_v3 = vadd.f32 %v931_v50, %v127_v51  ;;  %v294_v35 = vadd.f32 %v293_v6, %v292_v15  ;;  %v297_v62 = vsel %vm82_vm1, %v227_v26, 0.0  ;;  %v299_v9 = vsel %vm82_vm1, %v228_v10, 0.0 }
  0x30   :  { %v301_v12 = vsel %vm82_vm1, %v229_v44, 0.0  ;;  %v303_v14 = vsel %vm82_vm1, %v230_v57, 0.0  ;;  %v305_v11 = vsel %vm82_vm1, %v231_v7, 0.0  ;;  %v307_v1 = vsel %vm82_vm1, %v232_v13, 0.0  ;;  %v1395_v7 = vld [vmem:[#allocation50_spill] sm:$0xff] }
  0x31   :  { %v131_v63 = vadd.f32 %v1394_v41, %v129_v3  ;;  %v296_v24 = vadd.f32 %v295_v56, %v294_v35  ;;  %v1072_v50 = vsel %vm82_vm1, %v253_v18, 0.0  ;;  %v1075_v31 = vsel %vm82_vm1, %v254_v19, 0.0  ;;  %v1397_v56 = vld [vmem:[#allocation35_spill] sm:$0xff] }
  0x32   :  { %v1078_v26 = vsel %vm82_vm1, %v255_v21, 0.0  ;;  %v1081_v44 = vsel %vm82_vm1, %v256_v22, 0.0  ;;  %v1084_v57 = vsel %vm82_vm1, %v257_v23, 0.0  ;;  %v1088_v13 = vsel %vm82_vm1, %v258_v45, 0.0 }
  0x33   :  { %v133_v10 = vadd.f32 %v1395_v7, %v131_v63  ;;  %v298_v55 = vadd.f32 %v297_v62, %v296_v24  ;;  %v1091_v18 = vsel %vm82_vm1, %v259_v4, 0.0  ;;  %v1094_v19 = vsel %vm82_vm1, %v260_v27, 0.0  ;;  %v1399_v62 = vld [vmem:[#allocation36_spill] sm:$0xff] }
  0x34   :  { %v1097_v21 = vsel %vm82_vm1, %v261_v28, 0.0  ;;  %v1100_v22 = vsel %vm82_vm1, %v262_v29, 0.0  ;;  %v1103_v23 = vsel %vm82_vm1, %v263_v33, 0.0  ;;  %v1107_v45 = vsel %vm82_vm1, %v264_v40, 0.0 }
  0x35   :  { %v135_v60 = vadd.f32 %v1396_v25, %v133_v10  ;;  %v300_v6 = vadd.f32 %v299_v9, %v298_v55  ;;  %v1110_v4 = vsel %vm82_vm1, %v265_v42, 0.0  ;;  %v1113_v27 = vsel %vm82_vm1, %v266_v46, 0.0  ;;  %v1401_v10 = vld [vmem:[#allocation38_spill] sm:$0xff] }
  0x36   :  { %v1116_v28 = vsel %vm82_vm1, %v267_v47, 0.0  ;;  %v1119_v29 = vsel %vm82_vm1, %v268_v39, 0.0  ;;  %v1122_v33 = vsel %vm82_vm1, %v269_v48, 0.0  ;;  %v1126_v40 = vsel %vm82_vm1, %v270_v37, 0.0  ;;  %v1402_v25 = vld [vmem:[#allocation2_spill] sm:$0xff] }
  0x37   :  { %v137_v51 = vadd.f32 %v957_v58, %v135_v60  ;;  %v302_v15 = vadd.f32 %v301_v12, %v300_v6  ;;  %v1129_v42 = vsel %vm82_vm1, %v271_v53, 0.0  ;;  %v1132_v46 = vsel %vm82_vm1, %v272_v54, 0.0 }
  0x38   :  { %v1135_v47 = vsel %vm82_vm1, %v273_v38, 0.0  ;;  %v1138_v39 = vsel %vm82_vm1, %v274_v59, 0.0  ;;  %v1141_v48 = vsel %vm82_vm1, %v275_v36, 0.0  ;;  %v1145_v37 = vsel %vm82_vm1, %v276_v61, 0.0 }
  0x39   :  { %v139_v58 = vadd.f32 %v961_v32, %v137_v51  ;;  %v304_v0 = vadd.f32 %v303_v14, %v302_v15  ;;  %v1148_v53 = vsel %vm82_vm1, %v277_v5, 0.0  ;;  %v1151_v54 = vsel %vm82_vm1, %v278_v52, 0.0  ;;  %v1165_v32 = vld [vmem:[%s1318_s0 + $0xf8] sm:$0xff]  ;;  %v1403_v51 = vld [vmem:[#allocation39_spill] sm:$0xff] }
  0x3a   :  { %v1154_v38 = vsel %vm82_vm1, %v279_v8, 0.0  ;;  %v1157_v59 = vsel %vm82_vm1, %v280_v17, 0.0  ;;  %v1160_v36 = vsel %vm82_vm1, %v281_v20, 0.0  ;;  %v1169_v52 = vsel %vm82_vm1, %v282_v49, 0.0 }
  0x3b   :  { %v141_v61 = vadd.f32 %v967_v43, %v139_v58  ;;  %v306_v5 = vadd.f32 %v305_v11, %v304_v0  ;;  %v1172_v8 = vsel %vm82_vm1, %v283_v30, 0.0  ;;  %v144_v17 = vsel %vm82_vm1, %v1165_v32, 0.0  ;;  %v1183_v43 = vld [vmem:[%s1318_s0 + $0x100] sm:$0xff]  ;;  %v1404_v58 = vld [vmem:[#allocation3_spill] sm:$0xff] }
  0x3c   :  { %v235_v20 = vmul.f32 %v1397_v56, %v1397_v56  ;;  %v309_v3 = vsel %vm82_vm1, %v989_v16, 0.0  ;;  %v146_v30 = vsel %vm82_vm1, %v1183_v43, 0.0  ;;  %v236_v9 = vmul.f32 %v1399_v62, %v1399_v62  ;;  %v1400_v16 = vld [vmem:[#allocation37_spill] sm:$0xff] }
  0x3d   :  { %v143_v49 = vadd.f32 %v1398_v34, %v141_v61  ;;  %v308_v35 = vadd.f32 %v307_v1, %v306_v5  ;;  %v311_v12 = vsel %vm82_vm1, %v991_v2, 0.0  ;;  %v237_v41 = vmul.f32 %v1400_v16, %v1400_v16  ;;  %v1405_v5 = vld [vmem:[#allocation40_spill] sm:$0xff]  ;;  %v1408_v62 = vld [vmem:[#allocation5_spill] sm:$0xff] }
  0x3e   :  { %v313_v63 = vsel %vm82_vm1, %v235_v20, 0.0  ;;  %v238_v1 = vmul.f32 %v1401_v10, %v1401_v10  ;;  %v315_v55 = vsel %vm82_vm1, %v236_v9, 0.0  ;;  %v239_v2 = vmul.f32 %v1403_v51, %v1403_v51  ;;  %v1406_v20 = vld [vmem:[#allocation4_spill] sm:$0xff] }
  0x3f   :  { %v145_v14 = vadd.f32 %v144_v17, %v143_v49  ;;  %v310_v11 = vadd.f32 %v309_v3, %v308_v35  ;;  %v317_v15 = vsel %vm82_vm1, %v237_v41, 0.0  ;;  %v240_v17 = vmul.f32 %v1405_v5, %v1405_v5  ;;  %v1407_v49 = vld [vmem:[#allocation41_spill] sm:$0xff]  ;;  %v1410_v41 = vld [vmem:[#allocation6_spill] sm:$0xff] }
  0x40   :  { %v319_v56 = vsel %vm82_vm1, %v238_v1, 0.0  ;;  %v241_v35 = vmul.f32 %v1407_v49, %v1407_v49 }
  0x41   :  { %v147_v24 = vadd.f32 %v146_v30, %v145_v14  ;;  %v312_v7 = vadd.f32 %v311_v12, %v310_v11  ;;  %v321_v30 = vsel %vm82_vm1, %v239_v2, 0.0  ;;  %v1409_v14 = vld [vmem:[#allocation42_spill] sm:$0xff]  ;;  %v323_v16 = vsel %vm82_vm1, %v240_v17, 0.0 }
  0x42   :  { %v242_v11 = vmul.f32 %v1409_v14, %v1409_v14  ;;  %v325_v1 = vsel %vm82_vm1, %v241_v35, 0.0 }
  0x43   :  { %v149_v60 = vadd.f32 %v1402_v25, %v147_v24  ;;  %v314_v6 = vadd.f32 %v313_v63, %v312_v7  ;;  %v1411_v7 = vld [vmem:[#allocation43_spill] sm:$0xff] }
  0x44   :  { %v243_v10 = vmul.f32 %v1411_v7, %v1411_v7  ;;  %v327_v2 = vsel %vm82_vm1, %v242_v11, 0.0 }
  0x45   :  { %v151_v0 = vadd.f32 %v1404_v58, %v149_v60  ;;  %v316_v61 = vadd.f32 %v315_v55, %v314_v6  ;;  %v1412_v55 = vld [vmem:[#allocation7_spill] sm:$0xff]  ;;  %v1413_v6 = vld [vmem:[#allocation44_spill] sm:$0xff] }
  0x46   :  { %v244_v51 = vmul.f32 %v1413_v6, %v1413_v6  ;;  %v329_v17 = vsel %vm82_vm1, %v243_v10, 0.0 }
  0x47   :  { %v153_v3 = vadd.f32 %v1406_v20, %v151_v0  ;;  %v318_v34 = vadd.f32 %v317_v15, %v316_v61  ;;  %v1414_v15 = vld [vmem:[#allocation8_spill] sm:$0xff]  ;;  %v1415_v61 = vld [vmem:[#allocation45_spill] sm:$0xff] }
  0x48   :  { %v245_v5 = vmul.f32 %v1415_v61, %v1415_v61  ;;  %v331_v35 = vsel %vm82_vm1, %v244_v51, 0.0 }
  0x49   :  { %v155_v9 = vadd.f32 %v1408_v62, %v153_v3  ;;  %v320_v12 = vadd.f32 %v319_v56, %v318_v34  ;;  %v1416_v56 = vld [vmem:[#allocation9_spill] sm:$0xff]  ;;  %v1417_v34 = vld [vmem:[#allocation46_spill] sm:$0xff] }
  0x4a   :  { %v246_v49 = vmul.f32 %v1417_v34, %v1417_v34  ;;  %v333_v11 = vsel %vm82_vm1, %v245_v5, 0.0 }
  0x4b   :  { %v157_v63 = vadd.f32 %v1410_v41, %v155_v9  ;;  %v322_v24 = vadd.f32 %v321_v30, %v320_v12  ;;  %v1418_v30 = vld [vmem:[#allocation10_spill] sm:$0xff]  ;;  %v1419_v12 = vld [vmem:[#allocation47_spill] sm:$0xff] }
  0x4c   :  { %v247_v14 = vmul.f32 %v1419_v12, %v1419_v12  ;;  %v335_v10 = vsel %vm82_vm1, %v246_v49, 0.0  ;;  %v1427_v49 = vld [vmem:[#allocation15_spill] sm:$0xff]  ;;  %v1428_v12 = vld [vmem:[#allocation16_spill] sm:$0xff] }
  0x4d   :  { %v159_v25 = vadd.f32 %v1412_v55, %v157_v63  ;;  %v324_v60 = vadd.f32 %v323_v16, %v322_v24  ;;  %v1420_v16 = vld [vmem:[#allocation11_spill] sm:$0xff]  ;;  %v1421_v24 = vld [vmem:[#allocation48_spill] sm:$0xff] }
  0x4e   :  { %v248_v7 = vmul.f32 %v1421_v24, %v1421_v24  ;;  %v337_v51 = vsel %vm82_vm1, %v247_v14, 0.0 }
  0x4f   :  { %v161_v58 = vadd.f32 %v1414_v15, %v159_v25  ;;  %v326_v0 = vadd.f32 %v325_v1, %v324_v60  ;;  %v1422_v1 = vld [vmem:[#allocation12_spill] sm:$0xff] }
  0x50   :  { %v1423_v60 = vld [vmem:[#allocation52_spill] sm:$0xff]  ;;  %v339_v5 = vsel %vm82_vm1, %v248_v7, 0.0  ;;  %v1430_v7 = vld [vmem:[#allocation18_spill] sm:$0xff] }
  0x51   :  { %v163_v20 = vadd.f32 %v1416_v56, %v161_v58  ;;  %v328_v3 = vadd.f32 %v327_v2, %v326_v0  ;;  %v249_v6 = vmul.f32 %v1423_v60, %v1423_v60  ;;  %v1424_v2 = vld [vmem:[#allocation13_spill] sm:$0xff] }
  0x52   :  { %v1425_v0 = vld [vmem:[#allocation53_spill] sm:$0xff] }
  0x53   :  { %v165_v62 = vadd.f32 %v1418_v30, %v163_v20  ;;  %v330_v9 = vadd.f32 %v329_v17, %v328_v3  ;;  %v250_v61 = vmul.f32 %v1425_v0, %v1425_v0  ;;  %v1426_v17 = vld [vmem:[#allocation14_spill] sm:$0xff]  ;;  %v251_v3 = vmul.f32 %v1165_v32, %v1165_v32 }
  0x54   :  { %v341_v34 = vsel %vm82_vm1, %v249_v6, 0.0  ;;  %v1432_v6 = vld [vmem:[#allocation20_spill] sm:$0xff]  ;;  %v1434_v0 = vld [vmem:[#allocation22_spill] sm:$0xff] }
  0x55   :  { %v167_v41 = vadd.f32 %v1420_v16, %v165_v62  ;;  %v332_v63 = vadd.f32 %v331_v35, %v330_v9  ;;  %v252_v62 = vmul.f32 %v1183_v43, %v1183_v43  ;;  %v343_v9 = vsel %vm82_vm1, %v250_v61, 0.0 }
  0x56   :  { %v345_v16 = vsel %vm82_vm1, %v251_v3, 0.0  ;;  %v1436_v3 = vld [vmem:[#allocation24_spill] sm:$0xff] }
  0x57   :  { %v169_v55 = vadd.f32 %v1422_v1, %v167_v41  ;;  %v334_v25 = vadd.f32 %v333_v11, %v332_v63  ;;  %v1429_v41 = vld [vmem:[#allocation17_spill] sm:$0xff]  ;;  %v347_v32 = vsel %vm82_vm1, %v252_v62, 0.0  ;;  %v1438_v62 = vld [vmem:[#allocation27_spill] sm:$0xff] }
  0x59   :  { %v171_v15 = vadd.f32 %v1424_v2, %v169_v55  ;;  %v336_v58 = vadd.f32 %v335_v10, %v334_v25  ;;  %v1431_v55 = vld [vmem:[#allocation19_spill] sm:$0xff]  ;;  %v1433_v2 = vld [vmem:[#allocation21_spill] sm:$0xff] }
  0x5b   :  { %v173_v56 = vadd.f32 %v1426_v17, %v171_v15  ;;  %v338_v20 = vadd.f32 %v337_v51, %v336_v58  ;;  %v1435_v17 = vld [vmem:[#allocation23_spill] sm:$0xff] }
  0x5d   :  { %v175_v35 = vadd.f32 %v1427_v49, %v173_v56  ;;  %v340_v30 = vadd.f32 %v339_v5, %v338_v20 }
  0x5f   :  { %v177_v14 = vadd.f32 %v1428_v12, %v175_v35  ;;  %v342_v11 = vadd.f32 %v341_v34, %v340_v30  ;;  %v1437_v35 = vld [vmem:[#allocation25_spill] sm:$0xff]  ;;  %v1439_v12 = vld [vmem:[#allocation28_spill] sm:$0xff] }
  0x61   :  { %v179_v63 = vadd.f32 %v1429_v41, %v177_v14  ;;  %v344_v24 = vadd.f32 %v343_v9, %v342_v11  ;;  %v1440_v11 = vld [vmem:[#allocation29_spill] sm:$0xff]  ;;  %v1441_v41 = vld [vmem:[#allocation31_spill] sm:$0xff] }
  0x63   :  { %v181_v10 = vadd.f32 %v1430_v7, %v179_v63  ;;  %v346_v1 = vadd.f32 %v345_v16, %v344_v24  ;;  %v1442_v24 = vld [vmem:[#allocation32_spill] sm:$0xff]  ;;  %v1443_v7 = vld [vmem:[#allocation33_spill] sm:$0xff] }
  0x65   :  { %v183_v25 = vadd.f32 %v1431_v55, %v181_v10  ;;  %v348_v60 = vadd.f32 %v347_v32, %v346_v1  ;;  %v1444_v1 = vld [vmem:[#allocation34_spill] sm:$0xff] }
  0x67   :  { %v185_v43 = vadd.f32 %v1432_v6, %v183_v25  ;;  %v350_v51 = vadd.f32 %v1072_v50, %v348_v60 }
  0x69   :  { %v187_v15 = vadd.f32 %v1433_v2, %v185_v43  ;;  %v352_v58 = vadd.f32 %v1075_v31, %v350_v51 }
  0x6b   :  { %v189_v61 = vadd.f32 %v1434_v0, %v187_v15  ;;  %v354_v5 = vadd.f32 %v1078_v26, %v352_v58 }
  0x6d   :  { %v191_v56 = vadd.f32 %v1435_v17, %v189_v61  ;;  %v356_v20 = vadd.f32 %v1081_v44, %v354_v5 }
  0x6f   :  { %v193_v34 = vadd.f32 %v1436_v3, %v191_v56  ;;  %v358_v49 = vadd.f32 %v1084_v57, %v356_v20 }
  0x71   :  { %v195_v30 = vadd.f32 %v1437_v35, %v193_v34  ;;  %v360_v50 = vadd.f32 %v1088_v13, %v358_v49 }
  0x73   :  { %v197_v9 = vadd.f32 %v1438_v62, %v195_v30  ;;  %v362_v31 = vadd.f32 %v1091_v18, %v360_v50 }
  0x75   :  { %v199_v14 = vadd.f32 %v1439_v12, %v197_v9  ;;  %v364_v26 = vadd.f32 %v1094_v19, %v362_v31 }
  0x77   :  { %v201_v16 = vadd.f32 %v1440_v11, %v199_v14  ;;  %v366_v44 = vadd.f32 %v1097_v21, %v364_v26 }
  0x79   :  { %v203_v63 = vadd.f32 %v1441_v41, %v201_v16  ;;  %v368_v57 = vadd.f32 %v1100_v22, %v366_v44 }
  0x7b   :  { %v205_v32 = vadd.f32 %v1442_v24, %v203_v63  ;;  %v370_v13 = vadd.f32 %v1103_v23, %v368_v57 }
  0x7d   :  { %v207_v10 = vadd.f32 %v1443_v7, %v205_v32  ;;  %v372_v18 = vadd.f32 %v1107_v45, %v370_v13  ;;  %v81_v45 = vld [vmem:[%s1319_s1] sm:$0x1] }
  0x7f   :  { %v209_v55 = vadd.f32 %v1444_v1, %v207_v10  ;;  %v374_v19 = vadd.f32 %v1110_v4, %v372_v18 }
  0x81   :  { %v210_v25 = vrot.slane %v209_v55, 4  ;;  %v376_v60 = vadd.f32 %v1113_v27, %v374_v19 }
  0x83   :  { %v211_v21 = vadd.f32 %v210_v25, %v209_v55  ;;  %v378_v6 = vadd.f32 %v1116_v28, %v376_v60 }
  0x85   :  { %v212_v43 = vrot.slane %v211_v21, 2  ;;  %v380_v22 = vadd.f32 %v1119_v29, %v378_v6 }
  0x87   :  { %v213_v51 = vadd.f32 %v212_v43, %v211_v21  ;;  %v382_v23 = vadd.f32 %v1122_v33, %v380_v22 }
  0x89   :  { %v214_v2 = vrot.slane %v213_v51, 1  ;;  %v384_v15 = vadd.f32 %v1126_v40, %v382_v23 }
  0x8b   :  { %v215_v4 = vadd.f32 %v214_v2, %v213_v51  ;;  %v386_v58 = vadd.f32 %v1129_v42, %v384_v15 }
  0x8d   :  { %v216_v27 = vadd.f32 %v215_v4, %v81_v45  ;;  %v388_v0 = vadd.f32 %v1132_v46, %v386_v58 }
  0x8f   :  { %218 = vst.msk [vmem:[%s1319_s1] sm:$0x1] %vm14_vm0, %v216_v27  ;;  %v390_v28 = vadd.f32 %v1135_v47, %v388_v0 }
  0x91   :  { %v392_v29 = vadd.f32 %v1138_v39, %v390_v28 }
  0x93   :  { %v394_v33 = vadd.f32 %v1141_v48, %v392_v29 }
  0x95   :  { %v396_v40 = vadd.f32 %v1145_v37, %v394_v33  ;;  %v219_v37 = vld [vmem:[%s1320_s2] sm:$0x1] }
  0x97   :  { %v398_v61 = vadd.f32 %v1148_v53, %v396_v40 }
  0x99   :  { %v400_v42 = vadd.f32 %v1151_v54, %v398_v61 }
  0x9b   :  { %v402_v5 = vadd.f32 %v1154_v38, %v400_v42 }
  0x9d   :  { %v404_v46 = vadd.f32 %v1157_v59, %v402_v5 }
  0x9f   :  { %v406_v17 = vadd.f32 %v1160_v36, %v404_v46 }
  0xa1   :  { %v408_v56 = vadd.f32 %v1169_v52, %v406_v17 }
  0xa3   :  { %v410_v47 = vadd.f32 %v1172_v8, %v408_v56 }
  0xa5   :  { %v411_v20 = vrot.slane %v410_v47, 4 }
  0xa7   :  { %v412_v39 = vadd.f32 %v411_v20, %v410_v47 }
  0xa9   :  { %v413_v3 = vrot.slane %v412_v39, 2 }
  0xab   :  { %v414_v48 = vadd.f32 %v413_v3, %v412_v39 }
  0xad   :  { %v415_v34 = vrot.slane %v414_v48, 1 }
  0xaf   :  { %v416_v53 = vadd.f32 %v415_v34, %v414_v48 }
  0xb1   :  { %v417_v54 = vadd.f32 %v416_v53, %v219_v37 }
  0xb3   :  { %418 = vst.msk [vmem:[%s1320_s2] sm:$0x1] %vm14_vm0, %v417_v54 }

// kernel: generator_forward.34
= control target key start
LH: loop header
LB: loop body
LE: loop exit
PB: predicated region body
PF: predicated region fallthrough
CT: control target
= control target key end

     0   :  { %s1177_s9 = smov 0   ;;  %s1179_s10 = smov 0   ;;  %s1290_s0 = inlined_call_operand.vmem [shape: bf16[512,128], index: 0, kind: input, shape index: {}]   ;;  %s1291_s1 = inlined_call_operand.vmem [shape: bf16[128,128], index: 1, kind: input, shape index: {}]   ;;  %s1292_s2 = inlined_call_operand.vmem [shape: f32[512,128], index: 2, kind: output, shape index: {}]  }
   0x1   :  { %s1181_s11 = smov 0  }
   0x2 LB: > { %s31_s12 = sadd.s32 1, %s1156_s10  ;;  %p907_p0 = scmp.ge.s32.totalorder %s1160_s11, 1  ;;  %s1160_s11 = sphi %s1181_s11, %s12_s11   ;;  %s1156_s10 = sphi %s1179_s10, %s1294_s10   ;;  %s1152_s9 = sphi %s1177_s9, %s1293_s9  }
   0x3   : > { %p33_p1 = scmp.ge.s32.totalorder %s31_s12, 2  ;;  %p155_p2 = scmp.lt.s32.totalorder %s1160_s11, 3 }
   0x5   : > { %s1296_s12 = smov (%p33_p1, %s31_s12), 0  ;;  %p156_p3 = pnand %p907_p0, %p155_p2 }
   0x6   : > { %v1050_v0 = vld [vmem:[%s1291_s1] sm:$0xff] (!%p156_p3)   ;;  %s908_s15 = sshll.u32 (!%p156_p3), %s1152_s9, 5  ;;  %v1051_v1 = vld [vmem:[%s1291_s1 + $0x8] sm:$0xff] (!%p156_p3)   ;;  %v1052_v2 = vld [vmem:[%s1291_s1 + $0x10] sm:$0xff] (!%p156_p3)  }
   0x7   : > { %159 = sbr.rel (%p156_p3) target bundleno = 297 (0x129), region = 28  ;;  %p192_p4 = scmp.lt.s32.totalorder (!%p156_p3), %s908_s15, 63  ;;  %962 = vmatprep.subr.bf16.mxu0 (!%p156_p3), %v1050_v0  ;;  %1010 = vmatprep.subr.bf16.mxu1 (!%p156_p3), %v1050_v0  ;;  %v1053_v3 = vld [vmem:[%s1291_s1 + $0x18] sm:$0xff] (!%p156_p3)   ;;  %v1054_v6 = vld [vmem:[%s1291_s1 + $0x20] sm:$0xff] (!%p156_p3)   ;;  %v1055_v7 = vld [vmem:[%s1291_s1 + $0x28] sm:$0xff] (!%p156_p3)  }
   0x8   : > { %963 = vmatpush3.bf16.msra.mxu0 (!%p156_p3), %v1050_v0  ;;  %1018 = vmatpush3.bf16.msra.mxu1 (!%p156_p3), %v1050_v0  ;;  %v1056_v8 = vld [vmem:[%s1291_s1 + $0x30] sm:$0xff] (!%p156_p3)   ;;  %v1057_v9 = vld [vmem:[%s1291_s1 + $0x38] sm:$0xff] (!%p156_p3)  }
   0x9   : > { %964 = vmatprep.subr.bf16.mxu0 (!%p156_p3), %v1051_v1  ;;  %1011 = vmatprep.subr.bf16.mxu1 (!%p156_p3), %v1051_v1 }
   0xc   : > { %965 = vmatpush3.bf16.msra.mxu0 (!%p156_p3), %v1051_v1  ;;  %1019 = vmatpush3.bf16.msra.mxu1 (!%p156_p3), %v1051_v1 }
   0xd   : > { %966 = vmatprep.subr.bf16.mxu0 (!%p156_p3), %v1052_v2  ;;  %1012 = vmatprep.subr.bf16.mxu1 (!%p156_p3), %v1052_v2 }
   0xe   : > { %s1298_s15 = smov (!%p192_p4, %s908_s15), 63 }
   0xf   : > { %s909_s20 = sshll.u32 %s1298_s15, 2  ;;  %s911_s6 = sshll.u32 %s1298_s15, 3 }
  0x10   : > { %s1210_s23 = scalar_lea.vmem %s1290_s0, %s909_s20  ;;  %967 = vmatpush3.bf16.msra.mxu0 %v1052_v2  ;;  %1020 = vmatpush3.bf16.msra.mxu1 %v1052_v2  ;;  %s1247_s9 = scalar_lea.vmem %s1292_s2, %s911_s6 }
  0x11   : > { %v1058_v4 = vld [vmem:[%s1210_s23] sm:$0xff]   ;;  %968 = vmatprep.subr.bf16.mxu0 %v1053_v3  ;;  %1013 = vmatprep.subr.bf16.mxu1 %v1053_v3  ;;  %v1060_v10 = vld [vmem:[%s1210_s23 + $0x8] sm:$0xff]   ;;  %v1062_v12 = vld [vmem:[%s1210_s23 + $0x10] sm:$0xff]  }
  0x12   : > { %v1059_v5 = vld [vmem:[%s1210_s23 + $0x40] sm:$0xff]   ;;  %978 = vmatprep.mubr.bf16.mxu0 %v1058_v4  ;;  %v1061_v11 = vld [vmem:[%s1210_s23 + $0x48] sm:$0xff]   ;;  %v1063_v13 = vld [vmem:[%s1210_s23 + $0x50] sm:$0xff]  }
  0x13   : > { %994 = vmatprep.mubr.bf16.mxu1 %v1059_v5  ;;  %v1064_v14 = vld [vmem:[%s1210_s23 + $0x18] sm:$0xff]   ;;  %v1066_v16 = vld [vmem:[%s1210_s23 + $0x20] sm:$0xff]   ;;  %v1068_v18 = vld [vmem:[%s1210_s23 + $0x28] sm:$0xff]  }
  0x14   : > { %969 = vmatpush3.bf16.msra.mxu0 %v1053_v3  ;;  %1021 = vmatpush3.bf16.msra.mxu1 %v1053_v3  ;;  %v1065_v15 = vld [vmem:[%s1210_s23 + $0x58] sm:$0xff]   ;;  %v1067_v17 = vld [vmem:[%s1210_s23 + $0x60] sm:$0xff]   ;;  %v1069_v19 = vld [vmem:[%s1210_s23 + $0x68] sm:$0xff]  }
  0x15   : > { %970 = vmatprep.subr.bf16.mxu0 %v1054_v6  ;;  %1014 = vmatprep.subr.bf16.mxu1 %v1054_v6  ;;  %v1070_v20 = vld [vmem:[%s1210_s23 + $0x30] sm:$0xff]   ;;  %v1072_v22 = vld [vmem:[%s1210_s23 + $0x38] sm:$0xff]  }
  0x16   : > { %v1071_v21 = vld [vmem:[%s1210_s23 + $0x70] sm:$0xff]   ;;  %v1073_v23 = vld [vmem:[%s1210_s23 + $0x78] sm:$0xff]  }
  0x18   : > { %971 = vmatpush3.bf16.msra.mxu0 %v1054_v6  ;;  %1022 = vmatpush3.bf16.msra.mxu1 %v1054_v6 }
  0x19   : > { %972 = vmatprep.subr.bf16.mxu0 %v1055_v7  ;;  %1015 = vmatprep.subr.bf16.mxu1 %v1055_v7 }
  0x1c   : > { %973 = vmatpush3.bf16.msra.mxu0 %v1055_v7  ;;  %1023 = vmatpush3.bf16.msra.mxu1 %v1055_v7 }
  0x1d   : > { %974 = vmatprep.subr.bf16.mxu0 %v1056_v8  ;;  %1016 = vmatprep.subr.bf16.mxu1 %v1056_v8 }
  0x20   : > { %975 = vmatpush3.bf16.msra.mxu0 %v1056_v8  ;;  %1024 = vmatpush3.bf16.msra.mxu1 %v1056_v8 }
  0x21   : > { %976 = vmatprep.subr.bf16.mxu0 %v1057_v9  ;;  %1017 = vmatprep.subr.bf16.mxu1 %v1057_v9 }
  0x24   : > { %977 = vmatpush3.bf16.msra.mxu0 %v1057_v9  ;;  %1025 = vmatpush3.bf16.msra.mxu1 %v1057_v9 }
  0x27   : > { %979 = vmatmul.mubr.bf16.vlgmr.msra.gmra.mrb[0].mxu0 %v1060_v10  ;;  %995 = vmatmul.mubr.bf16.vlgmr.msra.gmra.mrb[0].mxu1 %v1061_v11 }
  0x28   : > { %982 = vmatprep.mubr.bf16.mxu0 %v1062_v12  ;;  %998 = vmatprep.mubr.bf16.mxu1 %v1063_v13 }
  0x2f   : > { %983 = vmatmul.mubr.bf16.gmra.mrb[4].mxu0 %v1064_v14  ;;  %999 = vmatmul.mubr.bf16.gmra.mrb[4].mxu1 %v1065_v15 }
  0x30   : > { %986 = vmatprep.mubr.bf16.mxu0 %v1066_v16  ;;  %1002 = vmatprep.mubr.bf16.mxu1 %v1067_v17 }
  0x37   : > { %987 = vmatmul.mubr.bf16.gmra.mrb[8].mxu0 %v1068_v18  ;;  %1003 = vmatmul.mubr.bf16.gmra.mrb[8].mxu1 %v1069_v19 }
  0x38   : > { %990 = vmatprep.mubr.bf16.mxu0 %v1070_v20  ;;  %1006 = vmatprep.mubr.bf16.mxu1 %v1071_v21 }
  0x3f   : > { %991 = vmatmul.mubr.bf16.gmra.mrb[12].mxu0 %v1072_v22  ;;  %1007 = vmatmul.mubr.bf16.gmra.mrb[12].mxu1 %v1073_v23 }
  0xfa   : > { %v980_v24 = vpop.f32.mrb[0].mxu0  ;;  %v996_v25 = vpop.f32.mrb[0].mxu1 }
  0xfb   : > { %1074 = vtanh.f32 %v980_v24  ;;  %v513_v26 = vpop.f32.mrb[1].mxu0  ;;  %v577_v27 = vpop.f32.mrb[1].mxu1 }
  0xfc   : > { %1076 = vtanh.f32 %v996_v25  ;;  %v981_v28 = vpop.f32.mrb[2].mxu0  ;;  %v997_v29 = vpop.f32.mrb[2].mxu1 }
  0xfd   : > { %1078 = vtanh.f32 %v513_v26  ;;  %v516_v30 = vpop.f32.mrb[3].mxu0  ;;  %v580_v31 = vpop.f32.mrb[3].mxu1 }
  0xfe   : > { %1080 = vtanh.f32 %v577_v27 }
  0xff   : > { %1082 = vtanh.f32 %v981_v28 }
 0x100   : > { %1084 = vtanh.f32 %v997_v29 }
 0x101   : > { %1086 = vtanh.f32 %v516_v30 }
 0x102   : > { %1088 = vtanh.f32 %v580_v31  ;;  %v984_v32 = vpop.f32.mrb[4].mxu0  ;;  %v1000_v33 = vpop.f32.mrb[4].mxu1 }
 0x103   : > { %1090 = vtanh.f32 %v984_v32  ;;  %v529_v34 = vpop.f32.mrb[5].mxu0  ;;  %v593_v35 = vpop.f32.mrb[5].mxu1 }
 0x104   : > { %1092 = vtanh.f32 %v1000_v33  ;;  %v985_v36 = vpop.f32.mrb[6].mxu0  ;;  %v1001_v37 = vpop.f32.mrb[6].mxu1 }
 0x105   : > { %v1075_v38 = vpop.eup %1074  ;;  %1094 = vtanh.f32 %v529_v34  ;;  %v532_v39 = vpop.f32.mrb[7].mxu0 }
 0x106   : > { %v596_v40 = vpop.f32.mrb[7].mxu1  ;;  %v1077_v41 = vpop.eup %1076  ;;  %773 = vst [vmem:[%s1247_s9 + $0x10] sm:$0xff] %v1075_v38  ;;  %1096 = vtanh.f32 %v593_v35 }
 0x107   : > { %v1079_v42 = vpop.eup %1078  ;;  %789 = vst [vmem:[%s1247_s9 + $0x90] sm:$0xff] %v1077_v41  ;;  %1098 = vtanh.f32 %v985_v36 }
 0x108   : > { %v1081_v43 = vpop.eup %1080  ;;  %771 = vst [vmem:[%s1247_s9] sm:$0xff] %v1079_v42  ;;  %1100 = vtanh.f32 %v1001_v37 }
 0x109   : > { %v1083_v44 = vpop.eup %1082  ;;  %787 = vst [vmem:[%s1247_s9 + $0x80] sm:$0xff] %v1081_v43  ;;  %1102 = vtanh.f32 %v532_v39 }
 0x10a   : > { %v1085_v45 = vpop.eup %1084  ;;  %774 = vst [vmem:[%s1247_s9 + $0x18] sm:$0xff] %v1083_v44  ;;  %1104 = vtanh.f32 %v596_v40  ;;  %v988_v46 = vpop.f32.mrb[8].mxu0 }
 0x10b   : > { %v1004_v47 = vpop.f32.mrb[8].mxu1  ;;  %v1087_v48 = vpop.eup %1086  ;;  %790 = vst [vmem:[%s1247_s9 + $0x98] sm:$0xff] %v1085_v45  ;;  %1106 = vtanh.f32 %v988_v46 }
 0x10c   : > { %v545_v49 = vpop.f32.mrb[9].mxu0  ;;  %v609_v50 = vpop.f32.mrb[9].mxu1  ;;  %772 = vst [vmem:[%s1247_s9 + $0x8] sm:$0xff] %v1087_v48  ;;  %1108 = vtanh.f32 %v1004_v47 }
 0x10d   : > { %v1089_v51 = vpop.eup %1088  ;;  %v989_v52 = vpop.f32.mrb[10].mxu0  ;;  %1110 = vtanh.f32 %v545_v49 }
 0x10e   : > { %v1005_v53 = vpop.f32.mrb[10].mxu1  ;;  %v1091_v54 = vpop.eup %1090  ;;  %788 = vst [vmem:[%s1247_s9 + $0x88] sm:$0xff] %v1089_v51  ;;  %1112 = vtanh.f32 %v609_v50 }
 0x10f   : > { %v548_v55 = vpop.f32.mrb[11].mxu0  ;;  %v612_v56 = vpop.f32.mrb[11].mxu1  ;;  %777 = vst [vmem:[%s1247_s9 + $0x30] sm:$0xff] %v1091_v54  ;;  %1114 = vtanh.f32 %v989_v52 }
 0x110   : > { %v1093_v57 = vpop.eup %1092  ;;  %1116 = vtanh.f32 %v1005_v53 }
 0x111   : > { %v1095_v58 = vpop.eup %1094  ;;  %793 = vst [vmem:[%s1247_s9 + $0xb0] sm:$0xff] %v1093_v57  ;;  %1118 = vtanh.f32 %v548_v55 }
 0x112   : > { %v1097_v59 = vpop.eup %1096  ;;  %775 = vst [vmem:[%s1247_s9 + $0x20] sm:$0xff] %v1095_v58  ;;  %1120 = vtanh.f32 %v612_v56  ;;  %v992_v62 = vpop.f32.mrb[12].mxu0 }
 0x113   : > { %v1099_v60 = vpop.eup %1098  ;;  %791 = vst [vmem:[%s1247_s9 + $0xa0] sm:$0xff] %v1097_v59  ;;  %v1008_v63 = vpop.f32.mrb[12].mxu1  ;;  %1122 = vtanh.f32 %v992_v62 }
 0x114   : > { %v1101_v61 = vpop.eup %1100  ;;  %778 = vst [vmem:[%s1247_s9 + $0x38] sm:$0xff] %v1099_v60  ;;  %v561_v1 = vpop.f32.mrb[13].mxu0  ;;  %1124 = vtanh.f32 %v1008_v63 }
 0x115   : > { %v1103_v0 = vpop.eup %1102  ;;  %794 = vst [vmem:[%s1247_s9 + $0xb8] sm:$0xff] %v1101_v61  ;;  %v625_v2 = vpop.f32.mrb[13].mxu1  ;;  %1126 = vtanh.f32 %v561_v1 }
 0x116   : > { %v1105_v3 = vpop.eup %1104  ;;  %776 = vst [vmem:[%s1247_s9 + $0x28] sm:$0xff] %v1103_v0  ;;  %v993_v4 = vpop.f32.mrb[14].mxu0  ;;  %1128 = vtanh.f32 %v625_v2 }
 0x117   : > { %v1009_v5 = vpop.f32.mrb[14].mxu1  ;;  %v1107_v6 = vpop.eup %1106  ;;  %792 = vst [vmem:[%s1247_s9 + $0xa8] sm:$0xff] %v1105_v3  ;;  %1130 = vtanh.f32 %v993_v4 }
 0x118   : > { %v564_v7 = vpop.f32.mrb[15].mxu0  ;;  %v628_v8 = vpop.f32.mrb[15].mxu1  ;;  %781 = vst [vmem:[%s1247_s9 + $0x50] sm:$0xff] %v1107_v6  ;;  %1132 = vtanh.f32 %v1009_v5 }
 0x119   : > { %v1109_v9 = vpop.eup %1108  ;;  %1134 = vtanh.f32 %v564_v7 }
 0x11a   : > { %v1111_v10 = vpop.eup %1110  ;;  %797 = vst [vmem:[%s1247_s9 + $0xd0] sm:$0xff] %v1109_v9  ;;  %1136 = vtanh.f32 %v628_v8 }
 0x11b   : > { %v1113_v11 = vpop.eup %1112  ;;  %779 = vst [vmem:[%s1247_s9 + $0x40] sm:$0xff] %v1111_v10 }
 0x11c   : > { %v1115_v12 = vpop.eup %1114  ;;  %795 = vst [vmem:[%s1247_s9 + $0xc0] sm:$0xff] %v1113_v11 }
 0x11d   : > { %v1117_v13 = vpop.eup %1116  ;;  %782 = vst [vmem:[%s1247_s9 + $0x58] sm:$0xff] %v1115_v12 }
 0x11e   : > { %v1119_v14 = vpop.eup %1118  ;;  %798 = vst [vmem:[%s1247_s9 + $0xd8] sm:$0xff] %v1117_v13 }
 0x11f   : > { %v1121_v15 = vpop.eup %1120  ;;  %780 = vst [vmem:[%s1247_s9 + $0x48] sm:$0xff] %v1119_v14 }
 0x120   : > { %v1123_v16 = vpop.eup %1122  ;;  %796 = vst [vmem:[%s1247_s9 + $0xc8] sm:$0xff] %v1121_v15 }
 0x121   : > { %v1125_v17 = vpop.eup %1124  ;;  %785 = vst [vmem:[%s1247_s9 + $0x70] sm:$0xff] %v1123_v16 }
 0x122   : > { %v1127_v18 = vpop.eup %1126  ;;  %801 = vst [vmem:[%s1247_s9 + $0xf0] sm:$0xff] %v1125_v17 }
 0x123   : > { %v1129_v19 = vpop.eup %1128  ;;  %783 = vst [vmem:[%s1247_s9 + $0x60] sm:$0xff] %v1127_v18 }
 0x124   : > { %v1131_v20 = vpop.eup %1130  ;;  %799 = vst [vmem:[%s1247_s9 + $0xe0] sm:$0xff] %v1129_v19 }
 0x125   : > { %v1133_v21 = vpop.eup %1132  ;;  %786 = vst [vmem:[%s1247_s9 + $0x78] sm:$0xff] %v1131_v20 }
 0x126   : > { %v1135_v22 = vpop.eup %1134  ;;  %802 = vst [vmem:[%s1247_s9 + $0xf8] sm:$0xff] %v1133_v21 }
 0x127   : > { %v1137_v23 = vpop.eup %1136  ;;  %784 = vst [vmem:[%s1247_s9 + $0x68] sm:$0xff] %v1135_v22 }
 0x128   : > { %800 = vst [vmem:[%s1247_s9 + $0xe8] sm:$0xff] %v1137_v23 }
 0x129 PF: > { %s12_s11 = sadd.s32 1, %s1160_s11   ;;  %s1293_s9 = smov %s1156_s10 }
 0x12a   : > { %p9_p5 = scmp.ge.s32.totalorder %s12_s11, 4   ;;  %s1294_s10 = smov %s1296_s12 }
 0x12c   :  { %11 = sbr.rel (!%p9_p5) target bundleno = 2 (0x2), region = 69 }

</bundles_post_ra>
